<compile_context>
chip_gen: v6e
topology: v6e:2x2x1
jax: 0.10.0
libtpu: 0.0.40
codegen_flags: <defaults>
</compile_context>

<pallas_src>
import functools

import jax
import jax.numpy as jnp
from jax import lax
from jax.experimental import pallas as pl
from jax.experimental.pallas import tpu as pltpu


def _round_up(x, m):
    return ((x + m - 1) // m) * m


def _physical_vmem_bytes():
    """Physical VMEM per core; conservative 64 MiB (v7x) fallback."""
    try:
        info = pltpu.get_tpu_info()
        return int(getattr(info, "vmem_capacity_bytes", 64 * 1024 * 1024))
    except Exception:
        return 64 * 1024 * 1024


def _layer_vmem_bytes(tc, bp, ip, hp, out_itemsize, single_buffer_weights):
    """Estimate of VMEM used by one layer's pallas_call for a chunk size tc."""
    x_blk = 2 * tc * bp * ip * 2                      # bf16 input, double-buffered
    out_blk = 2 * tc * bp * hp * out_itemsize         # output, double-buffered
    pre = tc * bp * 4 * hp * 2                        # bf16 pre-activation scratch
    wmul = 1 if single_buffer_weights else 2
    weights = wmul * ((ip + hp) * 4 * hp * 2 + 8 * 4 * hp * 4)
    state = 2 * 2 * bp * hp * 4                       # resident hn/cn outputs
    return x_blk + out_blk + pre + weights + state


def _pad_gate_weights(w_t, h_pad):
    """(D, 4H) -> (D, 4*h_pad). Gate blocks repacked to [i, f, o, g] order and
    each placed at lane offset k*h_pad (lane-aligned slices in the kernel)."""
    d, four_h = w_t.shape
    h = four_h // 4
    w = w_t.reshape(d, 4, h)
    w = w[:, jnp.array([0, 1, 3, 2]), :]              # i, f, o, g
    w = jnp.pad(w, ((0, 0), (0, 0), (0, h_pad - h)))
    return w.reshape(d, 4 * h_pad)


def _lstm_layer_kernel(x_ref, wih_ref, whh_ref, b_ref,
                       out_ref, hn_ref, cn_ref, pre_sc,
                       *, tail_valid, unroll):
    """One grid step == one chunk of Tc timesteps of a single LSTM layer.

    x_ref   : (Tc, Bp, Ip)    bf16 chunk of layer input
    wih_ref : (Ip, 4*Hp)      bf16 W_ih^T  (gate blocks [i|f|o|g] at k*Hp)
    whh_ref : (Hp, 4*Hp)      bf16 W_hh^T
    b_ref   : (1, 4*Hp)       f32  b_ih + b_hh
    out_ref : (Tc, Bp, Hp)    bf16/f32 hidden outputs for this chunk
    hn_ref  : (Bp, Hp)        f32  recurrent h state == final hidden (resident)
    cn_ref  : (Bp, Hp)        f32  recurrent c state == final cell   (resident)
    pre_sc  : (Tc, Bp, 4*Hp)  bf16 hoisted input projection for the chunk
    """
    tc, bp, ip = x_ref.shape
    hp = hn_ref.shape[1]

    # hx is None in the module's default call -> zero initial state.
    @pl.when(pl.program_id(0) == 0)
    def _():
        hn_ref[...] = jnp.zeros_like(hn_ref)
        cn_ref[...] = jnp.zeros_like(cn_ref)

    # ---- Hoisted input projection: one big MXU matmul per chunk, bias folded,
    # accumulated in f32 and rounded once into the bf16 scratch.
    x2d = x_ref[...].reshape(tc * bp, ip)
    pre = jnp.dot(x2d, wih_ref[...], preferred_element_type=jnp.float32)
    pre_sc[...] = (pre + b_ref[...]).astype(pre_sc.dtype).reshape(tc, bp, 4 * hp)

    if tail_valid is not None:
        # Last (padded) chunk only has `tail_valid` real timesteps.
        n_valid = jnp.where(pl.program_id(0) == pl.num_programs(0) - 1,
                            tail_valid, tc)

    # ---- Sequential recurrence over the chunk (only h @ W_hh^T per step).
    def step(t, carry):
        h, c = carry                                            # f32 (Bp, Hp)
        gates = (pre_sc[t].astype(jnp.float32)
                 + jnp.dot(h.astype(jnp.bfloat16), whh_ref[...],
                           preferred_element_type=jnp.float32))
        # Gates are packed [i | f | o | g]: one tanh-form sigmoid over 3*Hp
        # lanes + one tanh over Hp lanes (2 wide EUP issues per step).
        sig = 0.5 * jnp.tanh(0.5 * gates[:, 0:3 * hp]) + 0.5
        g_g = jnp.tanh(gates[:, 3 * hp:4 * hp])
        i_g = sig[:, 0 * hp:1 * hp]
        f_g = sig[:, 1 * hp:2 * hp]
        o_g = sig[:, 2 * hp:3 * hp]
        c_new = f_g * c + i_g * g_g
        h_new = o_g * jnp.tanh(c_new)
        out_ref[t] = h_new.astype(out_ref.dtype)
        if tail_valid is not None:
            keep = t < n_valid
            h_new = jnp.where(keep, h_new, h)                   # freeze state on
            c_new = jnp.where(keep, c_new, c)                   # padded tail steps
        return h_new, c_new

    h_fin, c_fin = lax.fori_loop(0, tc, step, (hn_ref[...], cn_ref[...]),
                                 unroll=unroll)
    hn_ref[...] = h_fin
    cn_ref[...] = c_fin


def _lstm_layer_pallas(x_pad, w_ih, w_hh, b_ih, b_hh, *, seq_len, t_chunk,
                       out_dtype=jnp.bfloat16, single_buffer_weights=True,
                       unroll=4):
    """Run one LSTM layer over a (batch-padded) sequence.

    x_pad : (S_in, Bp, Ip) with S_in >= seq_len, Bp a multiple of 8.
    Returns padded out (S_pad, Bp, Hp) out_dtype, h_n/c_n (Bp, Hp) f32.
    """
    S_in, Bp, Ip = x_pad.shape
    assert Bp % 8 == 0 and seq_len <= S_in
    H = w_ih.shape[0] // 4
    in_dim = w_ih.shape[1]
    assert in_dim <= Ip
    # TODO(synk): production H should be >= 128; per-gate lane padding inflates
    #             tiny hidden sizes (demo H=32 -> Hp=128) by 4x on the gate axis.
    Hp = _round_up(max(H, 128), 128)

    # ---- Chunk sizing under the per-generation VMEM budget.
    phys_vmem = _physical_vmem_bytes()
    budget = int(phys_vmem * 0.7)
    out_itemsize = jnp.dtype(out_dtype).itemsize
    Tc = max(1, min(t_chunk, seq_len))
    while Tc > 1 and _layer_vmem_bytes(Tc, Bp, Ip, Hp, out_itemsize,
                                       single_buffer_weights) > budget:
        Tc = max(1, Tc // 2)
    n_chunks = pl.cdiv(seq_len, Tc)
    S_pad = n_chunks * Tc
    tail = seq_len - (n_chunks - 1) * Tc
    tail_valid = None if tail == Tc else tail

    if S_pad > S_in:
        x_pad = jnp.pad(x_pad, ((0, S_pad - S_in), (0, 0), (0, 0)))
    elif S_pad < S_in:
        x_pad = x_pad[:S_pad]
    x_pad = x_pad.astype(jnp.bfloat16)   # no-op for layers fed bf16 directly

    # ---- Weight / bias prep: transpose, repack gates [i|f|o|g], lane-pad each
    # gate block to Hp, zero-pad contraction dims, bf16 matmul operands.
    wih_p = _pad_gate_weights(w_ih.T.astype(jnp.float32), Hp)          # (in_dim, 4Hp)
    wih_p = jnp.pad(wih_p, ((0, Ip - in_dim), (0, 0))).astype(jnp.bfloat16)
    whh_p = _pad_gate_weights(w_hh.T.astype(jnp.float32), Hp)          # (H, 4Hp)
    whh_p = jnp.pad(whh_p, ((0, Hp - H), (0, 0))).astype(jnp.bfloat16)
    bias_p = _pad_gate_weights((b_ih + b_hh).reshape(1, 4 * H)
                               .astype(jnp.float32), Hp)               # (1, 4Hp)

    def _resident(shape):
        idx = lambda i: (0,) * len(shape)
        if single_buffer_weights:
            # Constant index_map -> single buffer (no wasted second weight copy).
            return pl.BlockSpec(shape, idx, pipeline_mode=pl.Buffered(buffer_count=1))
        return pl.BlockSpec(shape, idx)

    needed = _layer_vmem_bytes(Tc, Bp, Ip, Hp, out_itemsize, single_buffer_weights)
    vmem_limit = int(min(phys_vmem * 9 // 10,
                         max(2 * needed, 32 * 1024 * 1024)))

    kernel = functools.partial(_lstm_layer_kernel,
                               tail_valid=tail_valid, unroll=unroll)

    out, h_n, c_n = pl.pallas_call(
        kernel,
        out_shape=(
            jax.ShapeDtypeStruct((S_pad, Bp, Hp), out_dtype),
            jax.ShapeDtypeStruct((Bp, Hp), jnp.float32),
            jax.ShapeDtypeStruct((Bp, Hp), jnp.float32),
        ),
        grid_spec=pltpu.PrefetchScalarGridSpec(
            num_scalar_prefetch=0,
            grid=(n_chunks,),
            in_specs=[
                pl.BlockSpec((Tc, Bp, Ip), lambda i: (i, 0, 0)),
                _resident((Ip, 4 * Hp)),
                _resident((Hp, 4 * Hp)),
                _resident((1, 4 * Hp)),
            ],
            out_specs=[
                pl.BlockSpec((Tc, Bp, Hp), lambda i: (i, 0, 0)),
                pl.BlockSpec((Bp, Hp), lambda i: (0, 0)),   # resident == h state
                pl.BlockSpec((Bp, Hp), lambda i: (0, 0)),   # resident == c state
            ],
            scratch_shapes=[
                pltpu.VMEM((Tc, Bp, 4 * Hp), jnp.bfloat16),  # chunk pre-activations
            ],
        ),
        compiler_params=pltpu.CompilerParams(
            dimension_semantics=("arbitrary",),              # time is sequential
            vmem_limit_bytes=vmem_limit),
    )(x_pad, wih_p, whh_p, bias_p)
    return out, h_n, c_n


def custom_lstm_forward(x, params, *, t_chunk=None, single_buffer_weights=True,
                        unroll=4):
    """Multi-layer unidirectional LSTM, hx=None (zero init).

    x: (S, B, input_size) time-major (batch_first=False);
    params: list of (w_ih, w_hh, b_ih, b_hh) per layer.
    Returns (layer_output, (h_n, c_n)) matching the PyTorch module.
    """
    S, B, _ = x.shape
    H = params[0][1].shape[1]
    num_layers = len(params)
    Bp = _round_up(max(B, 8), 8)
    if t_chunk is None:
        # Target Tc*Bp >= 256 so the hoisted projection fills the MXU M dim
        # on v6e/v7x (2x256); VMEM sizing inside the layer shrinks it if needed.
        t_chunk = max(8, 256 // Bp)

    # Non-final layer outputs stay bf16 end-to-end (no XLA recast round trip).
    layer_in = jnp.pad(x.astype(jnp.float32),
                       ((0, 0), (0, Bp - B), (0, 0))).astype(jnp.bfloat16)
    h_list, c_list = [], []
    for li, (w_ih, w_hh, b_ih, b_hh) in enumerate(params):
        last = (li == num_layers - 1)
        layer_in, h_p, c_p = _lstm_layer_pallas(
            layer_in, w_ih, w_hh, b_ih, b_hh,
            seq_len=S, t_chunk=t_chunk,
            out_dtype=jnp.float32 if last else jnp.bfloat16,
            single_buffer_weights=single_buffer_weights, unroll=unroll)
        h_list.append(h_p[:B, :H])
        c_list.append(c_p[:B, :H])

    out = layer_in[:S, :B, :H]
    return out, (jnp.stack(h_list, 0), jnp.stack(c_list, 0))


def _reference_lstm(x, params, matmul_dtype=jnp.float32, pre_dtype=None):
    """Pure-JAX reference of the PyTorch forward. matmul_dtype=bf16 and
    pre_dtype=bf16 mimic the kernel's numerics for a tight structural check."""
    layer_output = x.astype(jnp.float32)
    h_list, c_list = [], []
    for (w_ih, w_hh, b_ih, b_hh) in params:
        H = w_hh.shape[1]
        B = x.shape[1]
        wih_t = w_ih.T.astype(matmul_dtype)
        whh_t = w_hh.T.astype(matmul_dtype)
        bias = (b_ih + b_hh).astype(jnp.float32)
        h = jnp.zeros((B, H), jnp.float32)
        c = jnp.zeros((B, H), jnp.float32)
        outs = []
        for t in range(layer_output.shape[0]):
            x_t = layer_output[t].astype(matmul_dtype)
            pre = jnp.dot(x_t, wih_t, preferred_element_type=jnp.float32) + bias
            if pre_dtype is not None:
                pre = pre.astype(pre_dtype).astype(jnp.float32)
            gates = pre + jnp.dot(h.astype(matmul_dtype), whh_t,
                                  preferred_element_type=jnp.float32)
            i_g = jax.nn.sigmoid(gates[:, 0 * H:1 * H])
            f_g = jax.nn.sigmoid(gates[:, 1 * H:2 * H])
            g_g = jnp.tanh(gates[:, 2 * H:3 * H])
            o_g = jax.nn.sigmoid(gates[:, 3 * H:4 * H])
            c = f_g * c + i_g * g_g
            h = o_g * jnp.tanh(c)
            outs.append(h)
        layer_output = jnp.stack(outs, axis=0)
        h_list.append(h)
        c_list.append(c)
    return layer_output, (jnp.stack(h_list, 0), jnp.stack(c_list, 0))


def init_params(key, input_size, hidden_size, num_layers):
    """uniform(-1/sqrt(H), 1/sqrt(H)) init, matching CustomLSTMCell.reset_parameters."""
    std = 1.0 / (hidden_size ** 0.5)
    params = []
    for layer in range(num_layers):
        in_dim = input_size if layer == 0 else hidden_size
        key, k1, k2, k3, k4 = jax.random.split(key, 5)
        w_ih = jax.random.uniform(k1, (4 * hidden_size, in_dim),
                                  jnp.float32, -std, std)
        w_hh = jax.random.uniform(k2, (4 * hidden_size, hidden_size),
                                  jnp.float32, -std, std)
        b_ih = jax.random.uniform(k3, (4 * hidden_size,), jnp.float32, -std, std)
        b_hh = jax.random.uniform(k4, (4 * hidden_size,), jnp.float32, -std, std)
        params.append((w_ih, w_hh, b_ih, b_hh))
    return params


if __name__ == "__main__":
    SEQ, BATCH, INPUT, HIDDEN, LAYERS = 8, 2, 16, 32, 2

    key = jax.random.PRNGKey(0)
    key, kx = jax.random.split(key)
    # layout: (seq_len, batch, input_size)  — batch_first=False
    x = jax.random.normal(kx, (SEQ, BATCH, INPUT), jnp.float32)
    params = init_params(key, INPUT, HIDDEN, LAYERS)

    # Tight reference mimics the kernel numerics (bf16 matmul operands,
    # bf16-rounded pre-activations); loose reference is exact f32 semantics.
    ref_out_b, (ref_h_b, ref_c_b) = _reference_lstm(x, params, jnp.bfloat16,
                                                    pre_dtype=jnp.bfloat16)
    ref_out_f, (ref_h_f, ref_c_f) = _reference_lstm(x, params, jnp.float32)

    def run(t_chunk, single_buffer):
        fwd = jax.jit(functools.partial(custom_lstm_forward, t_chunk=t_chunk,
                                        single_buffer_weights=single_buffer))
        out, (h_n, c_n) = fwd(x, params)
        return (jax.block_until_ready(out), jax.block_until_ready(h_n),
                jax.block_until_ready(c_n))

    # t_chunk=4 -> 2 full chunks (cross-chunk state carry); t_chunk=3 -> padded
    # tail chunk (masked state updates); None -> auto-sized single chunk.
    configs = (4, 3, None)
    try:
        results = [run(tc, True) for tc in configs]
    except Exception:
        # TODO(synk): pl.Buffered(1) single-buffering unavailable on this JAX —
        # fall back to default double-buffered resident weights.
        results = [run(tc, False) for tc in configs]

    for out, h_n, c_n in results:
        assert out.shape == (SEQ, BATCH, HIDDEN)
        assert h_n.shape == (LAYERS, BATCH, HIDDEN)
        assert c_n.shape == (LAYERS, BATCH, HIDDEN)
        # Tight structural check vs the kernel-numerics reference.
        assert jnp.allclose(out, ref_out_b, atol=2e-3, rtol=2e-3)
        assert jnp.allclose(h_n, ref_h_b, atol=2e-3, rtol=2e-3)
        assert jnp.allclose(c_n, ref_c_b, atol=2e-3, rtol=2e-3)
        # Loose sanity check vs exact f32 PyTorch semantics (bf16 matmul noise).
        assert jnp.allclose(out, ref_out_f, atol=1e-1, rtol=1e-1)
        assert jnp.allclose(h_n, ref_h_f, atol=1e-1, rtol=1e-1)
        assert jnp.allclose(c_n, ref_c_f, atol=1e-1, rtol=1e-1)

    print("KERNEL_OK")
</pallas_src>

<mosaic_0001>
module attributes {stable_mosaic.version = 11 : i64} {
  func.func @_lstm_layer_kernel(%arg0: i32, %arg1: memref<4x8x16xbf16, #tpu.memory_space<vmem>>, %arg2: memref<16x512xbf16, #tpu.memory_space<vmem>>, %arg3: memref<128x512xbf16, #tpu.memory_space<vmem>>, %arg4: memref<1x512xf32, #tpu.memory_space<vmem>>, %arg5: memref<4x8x128xbf16, #tpu.memory_space<vmem>>, %arg6: memref<8x128xf32, #tpu.memory_space<vmem>>, %arg7: memref<8x128xf32, #tpu.memory_space<vmem>>, %arg8: memref<4x8x512xbf16, #tpu.memory_space<vmem>>) attributes {dimension_semantics = [#tpu.dimension_semantics<arbitrary>], iteration_bounds = array<i64: 2>, scalar_prefetch = 0 : i64, scratch_operands = 1 : i64, tpu.core_type = #tpu.core_type<tc>, window_params = [{transform_indices = @transform_0, window_bounds = array<i64: 4, 8, 16>}, {pipeline_mode = #tpu.pipeline_mode<synchronous>, transform_indices = @transform_1, window_bounds = array<i64: 16, 512>}, {pipeline_mode = #tpu.pipeline_mode<synchronous>, transform_indices = @transform_2, window_bounds = array<i64: 128, 512>}, {pipeline_mode = #tpu.pipeline_mode<synchronous>, transform_indices = @transform_3, window_bounds = array<i64: 1, 512>}, {transform_indices = @transform_4, window_bounds = array<i64: 4, 8, 128>}, {pipeline_mode = #tpu.pipeline_mode<synchronous>, transform_indices = @transform_5, window_bounds = array<i64: 8, 128>}, {pipeline_mode = #tpu.pipeline_mode<synchronous>, transform_indices = @transform_6, window_bounds = array<i64: 8, 128>}]} {
    %c0_i32 = arith.constant 0 : i32
    %0 = arith.cmpi eq, %arg0, %c0_i32 : i32
    %1 = arith.extui %0 : i1 to i32
    %c0_i32_0 = arith.constant 0 : i32
    %2 = arith.cmpi ne, %1, %c0_i32_0 : i32
    scf.if %2 {
      %cst_59 = arith.constant 0.000000e+00 : f32
      %141 = vector.broadcast %cst_59 : f32 to vector<8x128xf32>
      %c0_60 = arith.constant 0 : index
      %c0_61 = arith.constant 0 : index
      %142 = vector.load %arg6[%c0_60, %c0_61] : memref<8x128xf32, #tpu.memory_space<vmem>>, vector<8x128xf32>
      tpu.vector_store %arg6[%c0_60, %c0_61], %141 {strides = array<i32>} : memref<8x128xf32, #tpu.memory_space<vmem>>, vector<8x128xf32>,
      %cst_62 = arith.constant 0.000000e+00 : f32
      %143 = vector.broadcast %cst_62 : f32 to vector<8x128xf32>
      %c0_63 = arith.constant 0 : index
      %c0_64 = arith.constant 0 : index
      %144 = vector.load %arg7[%c0_63, %c0_64] : memref<8x128xf32, #tpu.memory_space<vmem>>, vector<8x128xf32>
      tpu.vector_store %arg7[%c0_63, %c0_64], %143 {strides = array<i32>} : memref<8x128xf32, #tpu.memory_space<vmem>>, vector<8x128xf32>,
    } else {
    }
    %c0 = arith.constant 0 : index
    %c0_1 = arith.constant 0 : index
    %c0_2 = arith.constant 0 : index
    %3 = vector.load %arg1[%c0, %c0_1, %c0_2] : memref<4x8x16xbf16, #tpu.memory_space<vmem>>, vector<4x8x16xbf16>
    %4 = vector.shape_cast %3 : vector<4x8x16xbf16> to vector<32x16xbf16>
    %c0_3 = arith.constant 0 : index
    %c0_4 = arith.constant 0 : index
    %5 = vector.load %arg2[%c0_3, %c0_4] : memref<16x512xbf16, #tpu.memory_space<vmem>>, vector<16x512xbf16>
    %cst = arith.constant dense<0.000000e+00> : vector<32x512xf32>
    %6 = tpu.matmul %4, %5, %cst {dimension_numbers = #tpu.dot_dimension_numbers<[1], [0], [0], [1], [0, 0, 1, 1], [], []>} : vector<32x16xbf16>, vector<16x512xbf16>, vector<32x512xf32> -> vector<32x512xf32>
    %c0_5 = arith.constant 0 : index
    %c0_6 = arith.constant 0 : index
    %7 = vector.load %arg4[%c0_5, %c0_6] : memref<1x512xf32, #tpu.memory_space<vmem>>, vector<1x512xf32>
    %8 = vector.broadcast %7 : vector<1x512xf32> to vector<32x512xf32>
    %9 = arith.addf %6, %8 : vector<32x512xf32>
    %10 = arith.truncf %9 : vector<32x512xf32> to vector<32x512xbf16>
    %11 = vector.shape_cast %10 : vector<32x512xbf16> to vector<4x8x512xbf16>
    %c0_7 = arith.constant 0 : index
    %c0_8 = arith.constant 0 : index
    %c0_9 = arith.constant 0 : index
    %12 = vector.load %arg8[%c0_7, %c0_8, %c0_9] : memref<4x8x512xbf16, #tpu.memory_space<vmem>>, vector<4x8x512xbf16>
    tpu.vector_store %arg8[%c0_7, %c0_8, %c0_9], %11 {strides = array<i32>} : memref<4x8x512xbf16, #tpu.memory_space<vmem>>, vector<4x8x512xbf16>,
    %c0_10 = arith.constant 0 : index
    %c0_11 = arith.constant 0 : index
    %13 = vector.load %arg6[%c0_10, %c0_11] : memref<8x128xf32, #tpu.memory_space<vmem>>, vector<8x128xf32>
    %c0_12 = arith.constant 0 : index
    %c0_13 = arith.constant 0 : index
    %14 = vector.load %arg7[%c0_12, %c0_13] : memref<8x128xf32, #tpu.memory_space<vmem>>, vector<8x128xf32>
    %c0_i32_14 = arith.constant 0 : i32
    %15 = arith.index_cast %c0_i32_14 : i32 to index
    %c0_15 = arith.constant 0 : index
    %c0_16 = arith.constant 0 : index
    %16 = vector.load %arg8[%15, %c0_15, %c0_16] : memref<4x8x512xbf16, #tpu.memory_space<vmem>>, vector<1x8x512xbf16>
    %17 = vector.shape_cast %16 : vector<1x8x512xbf16> to vector<8x512xbf16>
    %18 = arith.extf %17 : vector<8x512xbf16> to vector<8x512xf32>
    %19 = arith.truncf %13 : vector<8x128xf32> to vector<8x128xbf16>
    %c0_17 = arith.constant 0 : index
    %c0_18 = arith.constant 0 : index
    %20 = vector.load %arg3[%c0_17, %c0_18] : memref<128x512xbf16, #tpu.memory_space<vmem>>, vector<128x512xbf16>
    %cst_19 = arith.constant dense<0.000000e+00> : vector<8x512xf32>
    %21 = tpu.matmul %19, %20, %cst_19 {dimension_numbers = #tpu.dot_dimension_numbers<[1], [0], [0], [1], [0, 0, 1, 1], [], []>} : vector<8x128xbf16>, vector<128x512xbf16>, vector<8x512xf32> -> vector<8x512xf32>
    %22 = arith.addf %18, %21 : vector<8x512xf32>
    %23 = vector.extract_strided_slice %22 {offsets = [0, 0], sizes = [8, 384], strides = [1, 1]} : vector<8x512xf32> to vector<8x384xf32>
    %cst_20 = arith.constant 5.000000e-01 : f32
    %24 = vector.broadcast %cst_20 : f32 to vector<8x384xf32>
    %25 = arith.mulf %24, %23 : vector<8x384xf32>
    %26 = math.tanh %25 : vector<8x384xf32>
    %cst_21 = arith.constant 5.000000e-01 : f32
    %27 = vector.broadcast %cst_21 : f32 to vector<8x384xf32>
    %28 = arith.mulf %27, %26 : vector<8x384xf32>
    %cst_22 = arith.constant 5.000000e-01 : f32
    %29 = vector.broadcast %cst_22 : f32 to vector<8x384xf32>
    %30 = arith.addf %28, %29 : vector<8x384xf32>
    %31 = vector.extract_strided_slice %22 {offsets = [0, 384], sizes = [8, 128], strides = [1, 1]} : vector<8x512xf32> to vector<8x128xf32>
    %32 = math.tanh %31 : vector<8x128xf32>
    %33 = vector.extract_strided_slice %30 {offsets = [0, 0], sizes = [8, 128], strides = [1, 1]} : vector<8x384xf32> to vector<8x128xf32>
    %34 = vector.extract_strided_slice %30 {offsets = [0, 128], sizes = [8, 128], strides = [1, 1]} : vector<8x384xf32> to vector<8x128xf32>
    %35 = vector.extract_strided_slice %30 {offsets = [0, 256], sizes = [8, 128], strides = [1, 1]} : vector<8x384xf32> to vector<8x128xf32>
    %36 = arith.mulf %34, %14 : vector<8x128xf32>
    %37 = arith.mulf %33, %32 : vector<8x128xf32>
    %38 = arith.addf %36, %37 : vector<8x128xf32>
    %39 = math.tanh %38 : vector<8x128xf32>
    %40 = arith.mulf %35, %39 : vector<8x128xf32>
    %41 = arith.truncf %40 : vector<8x128xf32> to vector<8x128xbf16>
    %42 = arith.index_cast %c0_i32_14 : i32 to index
    %c0_23 = arith.constant 0 : index
    %c0_24 = arith.constant 0 : index
    %43 = vector.load %arg5[%42, %c0_23, %c0_24] : memref<4x8x128xbf16, #tpu.memory_space<vmem>>, vector<1x8x128xbf16>
    %44 = vector.shape_cast %43 : vector<1x8x128xbf16> to vector<8x128xbf16>
    %45 = vector.shape_cast %41 : vector<8x128xbf16> to vector<1x8x128xbf16>
    tpu.vector_store %arg5[%42, %c0_23, %c0_24], %45 {strides = array<i32>} : memref<4x8x128xbf16, #tpu.memory_space<vmem>>, vector<1x8x128xbf16>,
    %c1_i32 = arith.constant 1 : i32
    %46 = arith.index_cast %c1_i32 : i32 to index
    %c0_25 = arith.constant 0 : index
    %c0_26 = arith.constant 0 : index
    %47 = vector.load %arg8[%46, %c0_25, %c0_26] : memref<4x8x512xbf16, #tpu.memory_space<vmem>>, vector<1x8x512xbf16>
    %48 = vector.shape_cast %47 : vector<1x8x512xbf16> to vector<8x512xbf16>
    %49 = arith.extf %48 : vector<8x512xbf16> to vector<8x512xf32>
    %50 = arith.truncf %40 : vector<8x128xf32> to vector<8x128xbf16>
    %c0_27 = arith.constant 0 : index
    %c0_28 = arith.constant 0 : index
    %51 = vector.load %arg3[%c0_27, %c0_28] : memref<128x512xbf16, #tpu.memory_space<vmem>>, vector<128x512xbf16>
    %cst_29 = arith.constant dense<0.000000e+00> : vector<8x512xf32>
    %52 = tpu.matmul %50, %51, %cst_29 {dimension_numbers = #tpu.dot_dimension_numbers<[1], [0], [0], [1], [0, 0, 1, 1], [], []>} : vector<8x128xbf16>, vector<128x512xbf16>, vector<8x512xf32> -> vector<8x512xf32>
    %53 = arith.addf %49, %52 : vector<8x512xf32>
    %54 = vector.extract_strided_slice %53 {offsets = [0, 0], sizes = [8, 384], strides = [1, 1]} : vector<8x512xf32> to vector<8x384xf32>
    %cst_30 = arith.constant 5.000000e-01 : f32
    %55 = vector.broadcast %cst_30 : f32 to vector<8x384xf32>
    %56 = arith.mulf %55, %54 : vector<8x384xf32>
    %57 = math.tanh %56 : vector<8x384xf32>
    %cst_31 = arith.constant 5.000000e-01 : f32
    %58 = vector.broadcast %cst_31 : f32 to vector<8x384xf32>
    %59 = arith.mulf %58, %57 : vector<8x384xf32>
    %cst_32 = arith.constant 5.000000e-01 : f32
    %60 = vector.broadcast %cst_32 : f32 to vector<8x384xf32>
    %61 = arith.addf %59, %60 : vector<8x384xf32>
    %62 = vector.extract_strided_slice %53 {offsets = [0, 384], sizes = [8, 128], strides = [1, 1]} : vector<8x512xf32> to vector<8x128xf32>
    %63 = math.tanh %62 : vector<8x128xf32>
    %64 = vector.extract_strided_slice %61 {offsets = [0, 0], sizes = [8, 128], strides = [1, 1]} : vector<8x384xf32> to vector<8x128xf32>
    %65 = vector.extract_strided_slice %61 {offsets = [0, 128], sizes = [8, 128], strides = [1, 1]} : vector<8x384xf32> to vector<8x128xf32>
    %66 = vector.extract_strided_slice %61 {offsets = [0, 256], sizes = [8, 128], strides = [1, 1]} : vector<8x384xf32> to vector<8x128xf32>
    %67 = arith.mulf %65, %38 : vector<8x128xf32>
    %68 = arith.mulf %64, %63 : vector<8x128xf32>
    %69 = arith.addf %67, %68 : vector<8x128xf32>
    %70 = math.tanh %69 : vector<8x128xf32>
    %71 = arith.mulf %66, %70 : vector<8x128xf32>
    %72 = arith.truncf %71 : vector<8x128xf32> to vector<8x128xbf16>
    %73 = arith.index_cast %c1_i32 : i32 to index
    %c0_33 = arith.constant 0 : index
    %c0_34 = arith.constant 0 : index
    %74 = vector.load %arg5[%73, %c0_33, %c0_34] : memref<4x8x128xbf16, #tpu.memory_space<vmem>>, vector<1x8x128xbf16>
    %75 = vector.shape_cast %74 : vector<1x8x128xbf16> to vector<8x128xbf16>
    %76 = vector.shape_cast %72 : vector<8x128xbf16> to vector<1x8x128xbf16>
    tpu.vector_store %arg5[%73, %c0_33, %c0_34], %76 {strides = array<i32>} : memref<4x8x128xbf16, #tpu.memory_space<vmem>>, vector<1x8x128xbf16>,
    %c2_i32 = arith.constant 2 : i32
    %77 = arith.index_cast %c2_i32 : i32 to index
    %c0_35 = arith.constant 0 : index
    %c0_36 = arith.constant 0 : index
    %78 = vector.load %arg8[%77, %c0_35, %c0_36] : memref<4x8x512xbf16, #tpu.memory_space<vmem>>, vector<1x8x512xbf16>
    %79 = vector.shape_cast %78 : vector<1x8x512xbf16> to vector<8x512xbf16>
    %80 = arith.extf %79 : vector<8x512xbf16> to vector<8x512xf32>
    %81 = arith.truncf %71 : vector<8x128xf32> to vector<8x128xbf16>
    %c0_37 = arith.constant 0 : index
    %c0_38 = arith.constant 0 : index
    %82 = vector.load %arg3[%c0_37, %c0_38] : memref<128x512xbf16, #tpu.memory_space<vmem>>, vector<128x512xbf16>
    %cst_39 = arith.constant dense<0.000000e+00> : vector<8x512xf32>
    %83 = tpu.matmul %81, %82, %cst_39 {dimension_numbers = #tpu.dot_dimension_numbers<[1], [0], [0], [1], [0, 0, 1, 1], [], []>} : vector<8x128xbf16>, vector<128x512xbf16>, vector<8x512xf32> -> vector<8x512xf32>
    %84 = arith.addf %80, %83 : vector<8x512xf32>
    %85 = vector.extract_strided_slice %84 {offsets = [0, 0], sizes = [8, 384], strides = [1, 1]} : vector<8x512xf32> to vector<8x384xf32>
    %cst_40 = arith.constant 5.000000e-01 : f32
    %86 = vector.broadcast %cst_40 : f32 to vector<8x384xf32>
    %87 = arith.mulf %86, %85 : vector<8x384xf32>
    %88 = math.tanh %87 : vector<8x384xf32>
    %cst_41 = arith.constant 5.000000e-01 : f32
    %89 = vector.broadcast %cst_41 : f32 to vector<8x384xf32>
    %90 = arith.mulf %89, %88 : vector<8x384xf32>
    %cst_42 = arith.constant 5.000000e-01 : f32
    %91 = vector.broadcast %cst_42 : f32 to vector<8x384xf32>
    %92 = arith.addf %90, %91 : vector<8x384xf32>
    %93 = vector.extract_strided_slice %84 {offsets = [0, 384], sizes = [8, 128], strides = [1, 1]} : vector<8x512xf32> to vector<8x128xf32>
    %94 = math.tanh %93 : vector<8x128xf32>
    %95 = vector.extract_strided_slice %92 {offsets = [0, 0], sizes = [8, 128], strides = [1, 1]} : vector<8x384xf32> to vector<8x128xf32>
    %96 = vector.extract_strided_slice %92 {offsets = [0, 128], sizes = [8, 128], strides = [1, 1]} : vector<8x384xf32> to vector<8x128xf32>
    %97 = vector.extract_strided_slice %92 {offsets = [0, 256], sizes = [8, 128], strides = [1, 1]} : vector<8x384xf32> to vector<8x128xf32>
    %98 = arith.mulf %96, %69 : vector<8x128xf32>
    %99 = arith.mulf %95, %94 : vector<8x128xf32>
    %100 = arith.addf %98, %99 : vector<8x128xf32>
    %101 = math.tanh %100 : vector<8x128xf32>
    %102 = arith.mulf %97, %101 : vector<8x128xf32>
    %103 = arith.truncf %102 : vector<8x128xf32> to vector<8x128xbf16>
    %104 = arith.index_cast %c2_i32 : i32 to index
    %c0_43 = arith.constant 0 : index
    %c0_44 = arith.constant 0 : index
    %105 = vector.load %arg5[%104, %c0_43, %c0_44] : memref<4x8x128xbf16, #tpu.memory_space<vmem>>, vector<1x8x128xbf16>
    %106 = vector.shape_cast %105 : vector<1x8x128xbf16> to vector<8x128xbf16>
    %107 = vector.shape_cast %103 : vector<8x128xbf16> to vector<1x8x128xbf16>
    tpu.vector_store %arg5[%104, %c0_43, %c0_44], %107 {strides = array<i32>} : memref<4x8x128xbf16, #tpu.memory_space<vmem>>, vector<1x8x128xbf16>,
    %c3_i32 = arith.constant 3 : i32
    %108 = arith.index_cast %c3_i32 : i32 to index
    %c0_45 = arith.constant 0 : index
    %c0_46 = arith.constant 0 : index
    %109 = vector.load %arg8[%108, %c0_45, %c0_46] : memref<4x8x512xbf16, #tpu.memory_space<vmem>>, vector<1x8x512xbf16>
    %110 = vector.shape_cast %109 : vector<1x8x512xbf16> to vector<8x512xbf16>
    %111 = arith.extf %110 : vector<8x512xbf16> to vector<8x512xf32>
    %112 = arith.truncf %102 : vector<8x128xf32> to vector<8x128xbf16>
    %c0_47 = arith.constant 0 : index
    %c0_48 = arith.constant 0 : index
    %113 = vector.load %arg3[%c0_47, %c0_48] : memref<128x512xbf16, #tpu.memory_space<vmem>>, vector<128x512xbf16>
    %cst_49 = arith.constant dense<0.000000e+00> : vector<8x512xf32>
    %114 = tpu.matmul %112, %113, %cst_49 {dimension_numbers = #tpu.dot_dimension_numbers<[1], [0], [0], [1], [0, 0, 1, 1], [], []>} : vector<8x128xbf16>, vector<128x512xbf16>, vector<8x512xf32> -> vector<8x512xf32>
    %115 = arith.addf %111, %114 : vector<8x512xf32>
    %116 = vector.extract_strided_slice %115 {offsets = [0, 0], sizes = [8, 384], strides = [1, 1]} : vector<8x512xf32> to vector<8x384xf32>
    %cst_50 = arith.constant 5.000000e-01 : f32
    %117 = vector.broadcast %cst_50 : f32 to vector<8x384xf32>
    %118 = arith.mulf %117, %116 : vector<8x384xf32>
    %119 = math.tanh %118 : vector<8x384xf32>
    %cst_51 = arith.constant 5.000000e-01 : f32
    %120 = vector.broadcast %cst_51 : f32 to vector<8x384xf32>
    %121 = arith.mulf %120, %119 : vector<8x384xf32>
    %cst_52 = arith.constant 5.000000e-01 : f32
    %122 = vector.broadcast %cst_52 : f32 to vector<8x384xf32>
    %123 = arith.addf %121, %122 : vector<8x384xf32>
    %124 = vector.extract_strided_slice %115 {offsets = [0, 384], sizes = [8, 128], strides = [1, 1]} : vector<8x512xf32> to vector<8x128xf32>
    %125 = math.tanh %124 : vector<8x128xf32>
    %126 = vector.extract_strided_slice %123 {offsets = [0, 0], sizes = [8, 128], strides = [1, 1]} : vector<8x384xf32> to vector<8x128xf32>
    %127 = vector.extract_strided_slice %123 {offsets = [0, 128], sizes = [8, 128], strides = [1, 1]} : vector<8x384xf32> to vector<8x128xf32>
    %128 = vector.extract_strided_slice %123 {offsets = [0, 256], sizes = [8, 128], strides = [1, 1]} : vector<8x384xf32> to vector<8x128xf32>
    %129 = arith.mulf %127, %100 : vector<8x128xf32>
    %130 = arith.mulf %126, %125 : vector<8x128xf32>
    %131 = arith.addf %129, %130 : vector<8x128xf32>
    %132 = math.tanh %131 : vector<8x128xf32>
    %133 = arith.mulf %128, %132 : vector<8x128xf32>
    %134 = arith.truncf %133 : vector<8x128xf32> to vector<8x128xbf16>
    %135 = arith.index_cast %c3_i32 : i32 to index
    %c0_53 = arith.constant 0 : index
    %c0_54 = arith.constant 0 : index
    %136 = vector.load %arg5[%135, %c0_53, %c0_54] : memref<4x8x128xbf16, #tpu.memory_space<vmem>>, vector<1x8x128xbf16>
    %137 = vector.shape_cast %136 : vector<1x8x128xbf16> to vector<8x128xbf16>
    %138 = vector.shape_cast %134 : vector<8x128xbf16> to vector<1x8x128xbf16>
    tpu.vector_store %arg5[%135, %c0_53, %c0_54], %138 {strides = array<i32>} : memref<4x8x128xbf16, #tpu.memory_space<vmem>>, vector<1x8x128xbf16>,
    %c4_i32 = arith.constant 4 : i32
    %c0_55 = arith.constant 0 : index
    %c0_56 = arith.constant 0 : index
    %139 = vector.load %arg6[%c0_55, %c0_56] : memref<8x128xf32, #tpu.memory_space<vmem>>, vector<8x128xf32>
    tpu.vector_store %arg6[%c0_55, %c0_56], %133 {strides = array<i32>} : memref<8x128xf32, #tpu.memory_space<vmem>>, vector<8x128xf32>,
    %c0_57 = arith.constant 0 : index
    %c0_58 = arith.constant 0 : index
    %140 = vector.load %arg7[%c0_57, %c0_58] : memref<8x128xf32, #tpu.memory_space<vmem>>, vector<8x128xf32>
    tpu.vector_store %arg7[%c0_57, %c0_58], %131 {strides = array<i32>} : memref<8x128xf32, #tpu.memory_space<vmem>>, vector<8x128xf32>,
    return
  }
  func.func @transform_0(%arg0: i32) -> (i32, i32, i32) {
    %c0_i32 = arith.constant 0 : i32
    %c0_i32_0 = arith.constant 0 : i32
    %c0_i32_1 = arith.constant 0 : i32
    return %arg0, %c0_i32, %c0_i32_0 : i32, i32, i32
  }
  func.func @transform_1(%arg0: i32) -> (i32, i32) {
    %c0_i32 = arith.constant 0 : i32
    %c0_i32_0 = arith.constant 0 : i32
    %c0_i32_1 = arith.constant 0 : i32
    return %c0_i32, %c0_i32_0 : i32, i32
  }
  func.func @transform_2(%arg0: i32) -> (i32, i32) {
    %c0_i32 = arith.constant 0 : i32
    %c0_i32_0 = arith.constant 0 : i32
    %c0_i32_1 = arith.constant 0 : i32
    return %c0_i32, %c0_i32_0 : i32, i32
  }
  func.func @transform_3(%arg0: i32) -> (i32, i32) {
    %c0_i32 = arith.constant 0 : i32
    %c0_i32_0 = arith.constant 0 : i32
    %c0_i32_1 = arith.constant 0 : i32
    return %c0_i32, %c0_i32_0 : i32, i32
  }
  func.func @transform_4(%arg0: i32) -> (i32, i32, i32) {
    %c0_i32 = arith.constant 0 : i32
    %c0_i32_0 = arith.constant 0 : i32
    %c0_i32_1 = arith.constant 0 : i32
    return %arg0, %c0_i32, %c0_i32_0 : i32, i32, i32
  }
  func.func @transform_5(%arg0: i32) -> (i32, i32) {
    %c0_i32 = arith.constant 0 : i32
    %c0_i32_0 = arith.constant 0 : i32
    %c0_i32_1 = arith.constant 0 : i32
    return %c0_i32, %c0_i32_0 : i32, i32
  }
  func.func @transform_6(%arg0: i32) -> (i32, i32) {
    %c0_i32 = arith.constant 0 : i32
    %c0_i32_0 = arith.constant 0 : i32
    %c0_i32_1 = arith.constant 0 : i32
    return %c0_i32, %c0_i32_0 : i32, i32
  }
}

module attributes {stable_mosaic.version = 11 : i64} {
  func.func @_lstm_layer_kernel(%arg0: i32, %arg1: memref<4x8x128xbf16, #tpu.memory_space<vmem>>, %arg2: memref<128x512xbf16, #tpu.memory_space<vmem>>, %arg3: memref<128x512xbf16, #tpu.memory_space<vmem>>, %arg4: memref<1x512xf32, #tpu.memory_space<vmem>>, %arg5: memref<4x8x128xf32, #tpu.memory_space<vmem>>, %arg6: memref<8x128xf32, #tpu.memory_space<vmem>>, %arg7: memref<8x128xf32, #tpu.memory_space<vmem>>, %arg8: memref<4x8x512xbf16, #tpu.memory_space<vmem>>) attributes {dimension_semantics = [#tpu.dimension_semantics<arbitrary>], iteration_bounds = array<i64: 2>, scalar_prefetch = 0 : i64, scratch_operands = 1 : i64, tpu.core_type = #tpu.core_type<tc>, window_params = [{transform_indices = @transform_0, window_bounds = array<i64: 4, 8, 128>}, {pipeline_mode = #tpu.pipeline_mode<synchronous>, transform_indices = @transform_1, window_bounds = array<i64: 128, 512>}, {pipeline_mode = #tpu.pipeline_mode<synchronous>, transform_indices = @transform_2, window_bounds = array<i64: 128, 512>}, {pipeline_mode = #tpu.pipeline_mode<synchronous>, transform_indices = @transform_3, window_bounds = array<i64: 1, 512>}, {transform_indices = @transform_4, window_bounds = array<i64: 4, 8, 128>}, {pipeline_mode = #tpu.pipeline_mode<synchronous>, transform_indices = @transform_5, window_bounds = array<i64: 8, 128>}, {pipeline_mode = #tpu.pipeline_mode<synchronous>, transform_indices = @transform_6, window_bounds = array<i64: 8, 128>}]} {
    %c0_i32 = arith.constant 0 : i32
    %0 = arith.cmpi eq, %arg0, %c0_i32 : i32
    %1 = arith.extui %0 : i1 to i32
    %c0_i32_0 = arith.constant 0 : i32
    %2 = arith.cmpi ne, %1, %c0_i32_0 : i32
    scf.if %2 {
      %cst_59 = arith.constant 0.000000e+00 : f32
      %137 = vector.broadcast %cst_59 : f32 to vector<8x128xf32>
      %c0_60 = arith.constant 0 : index
      %c0_61 = arith.constant 0 : index
      %138 = vector.load %arg6[%c0_60, %c0_61] : memref<8x128xf32, #tpu.memory_space<vmem>>, vector<8x128xf32>
      tpu.vector_store %arg6[%c0_60, %c0_61], %137 {strides = array<i32>} : memref<8x128xf32, #tpu.memory_space<vmem>>, vector<8x128xf32>,
      %cst_62 = arith.constant 0.000000e+00 : f32
      %139 = vector.broadcast %cst_62 : f32 to vector<8x128xf32>
      %c0_63 = arith.constant 0 : index
      %c0_64 = arith.constant 0 : index
      %140 = vector.load %arg7[%c0_63, %c0_64] : memref<8x128xf32, #tpu.memory_space<vmem>>, vector<8x128xf32>
      tpu.vector_store %arg7[%c0_63, %c0_64], %139 {strides = array<i32>} : memref<8x128xf32, #tpu.memory_space<vmem>>, vector<8x128xf32>,
    } else {
    }
    %c0 = arith.constant 0 : index
    %c0_1 = arith.constant 0 : index
    %c0_2 = arith.constant 0 : index
    %3 = vector.load %arg1[%c0, %c0_1, %c0_2] : memref<4x8x128xbf16, #tpu.memory_space<vmem>>, vector<4x8x128xbf16>
    %4 = vector.shape_cast %3 : vector<4x8x128xbf16> to vector<32x128xbf16>
    %c0_3 = arith.constant 0 : index
    %c0_4 = arith.constant 0 : index
    %5 = vector.load %arg2[%c0_3, %c0_4] : memref<128x512xbf16, #tpu.memory_space<vmem>>, vector<128x512xbf16>
    %cst = arith.constant dense<0.000000e+00> : vector<32x512xf32>
    %6 = tpu.matmul %4, %5, %cst {dimension_numbers = #tpu.dot_dimension_numbers<[1], [0], [0], [1], [0, 0, 1, 1], [], []>} : vector<32x128xbf16>, vector<128x512xbf16>, vector<32x512xf32> -> vector<32x512xf32>
    %c0_5 = arith.constant 0 : index
    %c0_6 = arith.constant 0 : index
    %7 = vector.load %arg4[%c0_5, %c0_6] : memref<1x512xf32, #tpu.memory_space<vmem>>, vector<1x512xf32>
    %8 = vector.broadcast %7 : vector<1x512xf32> to vector<32x512xf32>
    %9 = arith.addf %6, %8 : vector<32x512xf32>
    %10 = arith.truncf %9 : vector<32x512xf32> to vector<32x512xbf16>
    %11 = vector.shape_cast %10 : vector<32x512xbf16> to vector<4x8x512xbf16>
    %c0_7 = arith.constant 0 : index
    %c0_8 = arith.constant 0 : index
    %c0_9 = arith.constant 0 : index
    %12 = vector.load %arg8[%c0_7, %c0_8, %c0_9] : memref<4x8x512xbf16, #tpu.memory_space<vmem>>, vector<4x8x512xbf16>
    tpu.vector_store %arg8[%c0_7, %c0_8, %c0_9], %11 {strides = array<i32>} : memref<4x8x512xbf16, #tpu.memory_space<vmem>>, vector<4x8x512xbf16>,
    %c0_10 = arith.constant 0 : index
    %c0_11 = arith.constant 0 : index
    %13 = vector.load %arg6[%c0_10, %c0_11] : memref<8x128xf32, #tpu.memory_space<vmem>>, vector<8x128xf32>
    %c0_12 = arith.constant 0 : index
    %c0_13 = arith.constant 0 : index
    %14 = vector.load %arg7[%c0_12, %c0_13] : memref<8x128xf32, #tpu.memory_space<vmem>>, vector<8x128xf32>
    %c0_i32_14 = arith.constant 0 : i32
    %15 = arith.index_cast %c0_i32_14 : i32 to index
    %c0_15 = arith.constant 0 : index
    %c0_16 = arith.constant 0 : index
    %16 = vector.load %arg8[%15, %c0_15, %c0_16] : memref<4x8x512xbf16, #tpu.memory_space<vmem>>, vector<1x8x512xbf16>
    %17 = vector.shape_cast %16 : vector<1x8x512xbf16> to vector<8x512xbf16>
    %18 = arith.extf %17 : vector<8x512xbf16> to vector<8x512xf32>
    %19 = arith.truncf %13 : vector<8x128xf32> to vector<8x128xbf16>
    %c0_17 = arith.constant 0 : index
    %c0_18 = arith.constant 0 : index
    %20 = vector.load %arg3[%c0_17, %c0_18] : memref<128x512xbf16, #tpu.memory_space<vmem>>, vector<128x512xbf16>
    %cst_19 = arith.constant dense<0.000000e+00> : vector<8x512xf32>
    %21 = tpu.matmul %19, %20, %cst_19 {dimension_numbers = #tpu.dot_dimension_numbers<[1], [0], [0], [1], [0, 0, 1, 1], [], []>} : vector<8x128xbf16>, vector<128x512xbf16>, vector<8x512xf32> -> vector<8x512xf32>
    %22 = arith.addf %18, %21 : vector<8x512xf32>
    %23 = vector.extract_strided_slice %22 {offsets = [0, 0], sizes = [8, 384], strides = [1, 1]} : vector<8x512xf32> to vector<8x384xf32>
    %cst_20 = arith.constant 5.000000e-01 : f32
    %24 = vector.broadcast %cst_20 : f32 to vector<8x384xf32>
    %25 = arith.mulf %24, %23 : vector<8x384xf32>
    %26 = math.tanh %25 : vector<8x384xf32>
    %cst_21 = arith.constant 5.000000e-01 : f32
    %27 = vector.broadcast %cst_21 : f32 to vector<8x384xf32>
    %28 = arith.mulf %27, %26 : vector<8x384xf32>
    %cst_22 = arith.constant 5.000000e-01 : f32
    %29 = vector.broadcast %cst_22 : f32 to vector<8x384xf32>
    %30 = arith.addf %28, %29 : vector<8x384xf32>
    %31 = vector.extract_strided_slice %22 {offsets = [0, 384], sizes = [8, 128], strides = [1, 1]} : vector<8x512xf32> to vector<8x128xf32>
    %32 = math.tanh %31 : vector<8x128xf32>
    %33 = vector.extract_strided_slice %30 {offsets = [0, 0], sizes = [8, 128], strides = [1, 1]} : vector<8x384xf32> to vector<8x128xf32>
    %34 = vector.extract_strided_slice %30 {offsets = [0, 128], sizes = [8, 128], strides = [1, 1]} : vector<8x384xf32> to vector<8x128xf32>
    %35 = vector.extract_strided_slice %30 {offsets = [0, 256], sizes = [8, 128], strides = [1, 1]} : vector<8x384xf32> to vector<8x128xf32>
    %36 = arith.mulf %34, %14 : vector<8x128xf32>
    %37 = arith.mulf %33, %32 : vector<8x128xf32>
    %38 = arith.addf %36, %37 : vector<8x128xf32>
    %39 = math.tanh %38 : vector<8x128xf32>
    %40 = arith.mulf %35, %39 : vector<8x128xf32>
    %41 = arith.index_cast %c0_i32_14 : i32 to index
    %c0_23 = arith.constant 0 : index
    %c0_24 = arith.constant 0 : index
    %42 = vector.load %arg5[%41, %c0_23, %c0_24] : memref<4x8x128xf32, #tpu.memory_space<vmem>>, vector<1x8x128xf32>
    %43 = vector.shape_cast %42 : vector<1x8x128xf32> to vector<8x128xf32>
    %44 = vector.shape_cast %40 : vector<8x128xf32> to vector<1x8x128xf32>
    tpu.vector_store %arg5[%41, %c0_23, %c0_24], %44 {strides = array<i32>} : memref<4x8x128xf32, #tpu.memory_space<vmem>>, vector<1x8x128xf32>,
    %c1_i32 = arith.constant 1 : i32
    %45 = arith.index_cast %c1_i32 : i32 to index
    %c0_25 = arith.constant 0 : index
    %c0_26 = arith.constant 0 : index
    %46 = vector.load %arg8[%45, %c0_25, %c0_26] : memref<4x8x512xbf16, #tpu.memory_space<vmem>>, vector<1x8x512xbf16>
    %47 = vector.shape_cast %46 : vector<1x8x512xbf16> to vector<8x512xbf16>
    %48 = arith.extf %47 : vector<8x512xbf16> to vector<8x512xf32>
    %49 = arith.truncf %40 : vector<8x128xf32> to vector<8x128xbf16>
    %c0_27 = arith.constant 0 : index
    %c0_28 = arith.constant 0 : index
    %50 = vector.load %arg3[%c0_27, %c0_28] : memref<128x512xbf16, #tpu.memory_space<vmem>>, vector<128x512xbf16>
    %cst_29 = arith.constant dense<0.000000e+00> : vector<8x512xf32>
    %51 = tpu.matmul %49, %50, %cst_29 {dimension_numbers = #tpu.dot_dimension_numbers<[1], [0], [0], [1], [0, 0, 1, 1], [], []>} : vector<8x128xbf16>, vector<128x512xbf16>, vector<8x512xf32> -> vector<8x512xf32>
    %52 = arith.addf %48, %51 : vector<8x512xf32>
    %53 = vector.extract_strided_slice %52 {offsets = [0, 0], sizes = [8, 384], strides = [1, 1]} : vector<8x512xf32> to vector<8x384xf32>
    %cst_30 = arith.constant 5.000000e-01 : f32
    %54 = vector.broadcast %cst_30 : f32 to vector<8x384xf32>
    %55 = arith.mulf %54, %53 : vector<8x384xf32>
    %56 = math.tanh %55 : vector<8x384xf32>
    %cst_31 = arith.constant 5.000000e-01 : f32
    %57 = vector.broadcast %cst_31 : f32 to vector<8x384xf32>
    %58 = arith.mulf %57, %56 : vector<8x384xf32>
    %cst_32 = arith.constant 5.000000e-01 : f32
    %59 = vector.broadcast %cst_32 : f32 to vector<8x384xf32>
    %60 = arith.addf %58, %59 : vector<8x384xf32>
    %61 = vector.extract_strided_slice %52 {offsets = [0, 384], sizes = [8, 128], strides = [1, 1]} : vector<8x512xf32> to vector<8x128xf32>
    %62 = math.tanh %61 : vector<8x128xf32>
    %63 = vector.extract_strided_slice %60 {offsets = [0, 0], sizes = [8, 128], strides = [1, 1]} : vector<8x384xf32> to vector<8x128xf32>
    %64 = vector.extract_strided_slice %60 {offsets = [0, 128], sizes = [8, 128], strides = [1, 1]} : vector<8x384xf32> to vector<8x128xf32>
    %65 = vector.extract_strided_slice %60 {offsets = [0, 256], sizes = [8, 128], strides = [1, 1]} : vector<8x384xf32> to vector<8x128xf32>
    %66 = arith.mulf %64, %38 : vector<8x128xf32>
    %67 = arith.mulf %63, %62 : vector<8x128xf32>
    %68 = arith.addf %66, %67 : vector<8x128xf32>
    %69 = math.tanh %68 : vector<8x128xf32>
    %70 = arith.mulf %65, %69 : vector<8x128xf32>
    %71 = arith.index_cast %c1_i32 : i32 to index
    %c0_33 = arith.constant 0 : index
    %c0_34 = arith.constant 0 : index
    %72 = vector.load %arg5[%71, %c0_33, %c0_34] : memref<4x8x128xf32, #tpu.memory_space<vmem>>, vector<1x8x128xf32>
    %73 = vector.shape_cast %72 : vector<1x8x128xf32> to vector<8x128xf32>
    %74 = vector.shape_cast %70 : vector<8x128xf32> to vector<1x8x128xf32>
    tpu.vector_store %arg5[%71, %c0_33, %c0_34], %74 {strides = array<i32>} : memref<4x8x128xf32, #tpu.memory_space<vmem>>, vector<1x8x128xf32>,
    %c2_i32 = arith.constant 2 : i32
    %75 = arith.index_cast %c2_i32 : i32 to index
    %c0_35 = arith.constant 0 : index
    %c0_36 = arith.constant 0 : index
    %76 = vector.load %arg8[%75, %c0_35, %c0_36] : memref<4x8x512xbf16, #tpu.memory_space<vmem>>, vector<1x8x512xbf16>
    %77 = vector.shape_cast %76 : vector<1x8x512xbf16> to vector<8x512xbf16>
    %78 = arith.extf %77 : vector<8x512xbf16> to vector<8x512xf32>
    %79 = arith.truncf %70 : vector<8x128xf32> to vector<8x128xbf16>
    %c0_37 = arith.constant 0 : index
    %c0_38 = arith.constant 0 : index
    %80 = vector.load %arg3[%c0_37, %c0_38] : memref<128x512xbf16, #tpu.memory_space<vmem>>, vector<128x512xbf16>
    %cst_39 = arith.constant dense<0.000000e+00> : vector<8x512xf32>
    %81 = tpu.matmul %79, %80, %cst_39 {dimension_numbers = #tpu.dot_dimension_numbers<[1], [0], [0], [1], [0, 0, 1, 1], [], []>} : vector<8x128xbf16>, vector<128x512xbf16>, vector<8x512xf32> -> vector<8x512xf32>
    %82 = arith.addf %78, %81 : vector<8x512xf32>
    %83 = vector.extract_strided_slice %82 {offsets = [0, 0], sizes = [8, 384], strides = [1, 1]} : vector<8x512xf32> to vector<8x384xf32>
    %cst_40 = arith.constant 5.000000e-01 : f32
    %84 = vector.broadcast %cst_40 : f32 to vector<8x384xf32>
    %85 = arith.mulf %84, %83 : vector<8x384xf32>
    %86 = math.tanh %85 : vector<8x384xf32>
    %cst_41 = arith.constant 5.000000e-01 : f32
    %87 = vector.broadcast %cst_41 : f32 to vector<8x384xf32>
    %88 = arith.mulf %87, %86 : vector<8x384xf32>
    %cst_42 = arith.constant 5.000000e-01 : f32
    %89 = vector.broadcast %cst_42 : f32 to vector<8x384xf32>
    %90 = arith.addf %88, %89 : vector<8x384xf32>
    %91 = vector.extract_strided_slice %82 {offsets = [0, 384], sizes = [8, 128], strides = [1, 1]} : vector<8x512xf32> to vector<8x128xf32>
    %92 = math.tanh %91 : vector<8x128xf32>
    %93 = vector.extract_strided_slice %90 {offsets = [0, 0], sizes = [8, 128], strides = [1, 1]} : vector<8x384xf32> to vector<8x128xf32>
    %94 = vector.extract_strided_slice %90 {offsets = [0, 128], sizes = [8, 128], strides = [1, 1]} : vector<8x384xf32> to vector<8x128xf32>
    %95 = vector.extract_strided_slice %90 {offsets = [0, 256], sizes = [8, 128], strides = [1, 1]} : vector<8x384xf32> to vector<8x128xf32>
    %96 = arith.mulf %94, %68 : vector<8x128xf32>
    %97 = arith.mulf %93, %92 : vector<8x128xf32>
    %98 = arith.addf %96, %97 : vector<8x128xf32>
    %99 = math.tanh %98 : vector<8x128xf32>
    %100 = arith.mulf %95, %99 : vector<8x128xf32>
    %101 = arith.index_cast %c2_i32 : i32 to index
    %c0_43 = arith.constant 0 : index
    %c0_44 = arith.constant 0 : index
    %102 = vector.load %arg5[%101, %c0_43, %c0_44] : memref<4x8x128xf32, #tpu.memory_space<vmem>>, vector<1x8x128xf32>
    %103 = vector.shape_cast %102 : vector<1x8x128xf32> to vector<8x128xf32>
    %104 = vector.shape_cast %100 : vector<8x128xf32> to vector<1x8x128xf32>
    tpu.vector_store %arg5[%101, %c0_43, %c0_44], %104 {strides = array<i32>} : memref<4x8x128xf32, #tpu.memory_space<vmem>>, vector<1x8x128xf32>,
    %c3_i32 = arith.constant 3 : i32
    %105 = arith.index_cast %c3_i32 : i32 to index
    %c0_45 = arith.constant 0 : index
    %c0_46 = arith.constant 0 : index
    %106 = vector.load %arg8[%105, %c0_45, %c0_46] : memref<4x8x512xbf16, #tpu.memory_space<vmem>>, vector<1x8x512xbf16>
    %107 = vector.shape_cast %106 : vector<1x8x512xbf16> to vector<8x512xbf16>
    %108 = arith.extf %107 : vector<8x512xbf16> to vector<8x512xf32>
    %109 = arith.truncf %100 : vector<8x128xf32> to vector<8x128xbf16>
    %c0_47 = arith.constant 0 : index
    %c0_48 = arith.constant 0 : index
    %110 = vector.load %arg3[%c0_47, %c0_48] : memref<128x512xbf16, #tpu.memory_space<vmem>>, vector<128x512xbf16>
    %cst_49 = arith.constant dense<0.000000e+00> : vector<8x512xf32>
    %111 = tpu.matmul %109, %110, %cst_49 {dimension_numbers = #tpu.dot_dimension_numbers<[1], [0], [0], [1], [0, 0, 1, 1], [], []>} : vector<8x128xbf16>, vector<128x512xbf16>, vector<8x512xf32> -> vector<8x512xf32>
    %112 = arith.addf %108, %111 : vector<8x512xf32>
    %113 = vector.extract_strided_slice %112 {offsets = [0, 0], sizes = [8, 384], strides = [1, 1]} : vector<8x512xf32> to vector<8x384xf32>
    %cst_50 = arith.constant 5.000000e-01 : f32
    %114 = vector.broadcast %cst_50 : f32 to vector<8x384xf32>
    %115 = arith.mulf %114, %113 : vector<8x384xf32>
    %116 = math.tanh %115 : vector<8x384xf32>
    %cst_51 = arith.constant 5.000000e-01 : f32
    %117 = vector.broadcast %cst_51 : f32 to vector<8x384xf32>
    %118 = arith.mulf %117, %116 : vector<8x384xf32>
    %cst_52 = arith.constant 5.000000e-01 : f32
    %119 = vector.broadcast %cst_52 : f32 to vector<8x384xf32>
    %120 = arith.addf %118, %119 : vector<8x384xf32>
    %121 = vector.extract_strided_slice %112 {offsets = [0, 384], sizes = [8, 128], strides = [1, 1]} : vector<8x512xf32> to vector<8x128xf32>
    %122 = math.tanh %121 : vector<8x128xf32>
    %123 = vector.extract_strided_slice %120 {offsets = [0, 0], sizes = [8, 128], strides = [1, 1]} : vector<8x384xf32> to vector<8x128xf32>
    %124 = vector.extract_strided_slice %120 {offsets = [0, 128], sizes = [8, 128], strides = [1, 1]} : vector<8x384xf32> to vector<8x128xf32>
    %125 = vector.extract_strided_slice %120 {offsets = [0, 256], sizes = [8, 128], strides = [1, 1]} : vector<8x384xf32> to vector<8x128xf32>
    %126 = arith.mulf %124, %98 : vector<8x128xf32>
    %127 = arith.mulf %123, %122 : vector<8x128xf32>
    %128 = arith.addf %126, %127 : vector<8x128xf32>
    %129 = math.tanh %128 : vector<8x128xf32>
    %130 = arith.mulf %125, %129 : vector<8x128xf32>
    %131 = arith.index_cast %c3_i32 : i32 to index
    %c0_53 = arith.constant 0 : index
    %c0_54 = arith.constant 0 : index
    %132 = vector.load %arg5[%131, %c0_53, %c0_54] : memref<4x8x128xf32, #tpu.memory_space<vmem>>, vector<1x8x128xf32>
    %133 = vector.shape_cast %132 : vector<1x8x128xf32> to vector<8x128xf32>
    %134 = vector.shape_cast %130 : vector<8x128xf32> to vector<1x8x128xf32>
    tpu.vector_store %arg5[%131, %c0_53, %c0_54], %134 {strides = array<i32>} : memref<4x8x128xf32, #tpu.memory_space<vmem>>, vector<1x8x128xf32>,
    %c4_i32 = arith.constant 4 : i32
    %c0_55 = arith.constant 0 : index
    %c0_56 = arith.constant 0 : index
    %135 = vector.load %arg6[%c0_55, %c0_56] : memref<8x128xf32, #tpu.memory_space<vmem>>, vector<8x128xf32>
    tpu.vector_store %arg6[%c0_55, %c0_56], %130 {strides = array<i32>} : memref<8x128xf32, #tpu.memory_space<vmem>>, vector<8x128xf32>,
    %c0_57 = arith.constant 0 : index
    %c0_58 = arith.constant 0 : index
    %136 = vector.load %arg7[%c0_57, %c0_58] : memref<8x128xf32, #tpu.memory_space<vmem>>, vector<8x128xf32>
    tpu.vector_store %arg7[%c0_57, %c0_58], %128 {strides = array<i32>} : memref<8x128xf32, #tpu.memory_space<vmem>>, vector<8x128xf32>,
    return
  }
  func.func @transform_0(%arg0: i32) -> (i32, i32, i32) {
    %c0_i32 = arith.constant 0 : i32
    %c0_i32_0 = arith.constant 0 : i32
    %c0_i32_1 = arith.constant 0 : i32
    return %arg0, %c0_i32, %c0_i32_0 : i32, i32, i32
  }
  func.func @transform_1(%arg0: i32) -> (i32, i32) {
    %c0_i32 = arith.constant 0 : i32
    %c0_i32_0 = arith.constant 0 : i32
    %c0_i32_1 = arith.constant 0 : i32
    return %c0_i32, %c0_i32_0 : i32, i32
  }
  func.func @transform_2(%arg0: i32) -> (i32, i32) {
    %c0_i32 = arith.constant 0 : i32
    %c0_i32_0 = arith.constant 0 : i32
    %c0_i32_1 = arith.constant 0 : i32
    return %c0_i32, %c0_i32_0 : i32, i32
  }
  func.func @transform_3(%arg0: i32) -> (i32, i32) {
    %c0_i32 = arith.constant 0 : i32
    %c0_i32_0 = arith.constant 0 : i32
    %c0_i32_1 = arith.constant 0 : i32
    return %c0_i32, %c0_i32_0 : i32, i32
  }
  func.func @transform_4(%arg0: i32) -> (i32, i32, i32) {
    %c0_i32 = arith.constant 0 : i32
    %c0_i32_0 = arith.constant 0 : i32
    %c0_i32_1 = arith.constant 0 : i32
    return %arg0, %c0_i32, %c0_i32_0 : i32, i32, i32
  }
  func.func @transform_5(%arg0: i32) -> (i32, i32) {
    %c0_i32 = arith.constant 0 : i32
    %c0_i32_0 = arith.constant 0 : i32
    %c0_i32_1 = arith.constant 0 : i32
    return %c0_i32, %c0_i32_0 : i32, i32
  }
  func.func @transform_6(%arg0: i32) -> (i32, i32) {
    %c0_i32 = arith.constant 0 : i32
    %c0_i32_0 = arith.constant 0 : i32
    %c0_i32_1 = arith.constant 0 : i32
    return %c0_i32, %c0_i32_0 : i32, i32
  }
}

module attributes {stable_mosaic.version = 11 : i64} {
  func.func @_lstm_layer_kernel(%arg0: i32, %arg1: memref<4x8x16xbf16, #tpu.memory_space<vmem>>, %arg2: memref<16x512xbf16, #tpu.memory_space<vmem>>, %arg3: memref<128x512xbf16, #tpu.memory_space<vmem>>, %arg4: memref<1x512xf32, #tpu.memory_space<vmem>>, %arg5: memref<4x8x128xbf16, #tpu.memory_space<vmem>>, %arg6: memref<8x128xf32, #tpu.memory_space<vmem>>, %arg7: memref<8x128xf32, #tpu.memory_space<vmem>>, %arg8: memref<4x8x512xbf16, #tpu.memory_space<vmem>>) attributes {dimension_semantics = [#tpu.dimension_semantics<arbitrary>], iteration_bounds = array<i64: 2>, scalar_prefetch = 0 : i64, scratch_operands = 1 : i64, tpu.core_type = #tpu.core_type<tc>, window_params = [{transform_indices = @transform_0, window_bounds = array<i64: 4, 8, 16>}, {pipeline_mode = #tpu.pipeline_mode<synchronous>, transform_indices = @transform_1, window_bounds = array<i64: 16, 512>}, {pipeline_mode = #tpu.pipeline_mode<synchronous>, transform_indices = @transform_2, window_bounds = array<i64: 128, 512>}, {pipeline_mode = #tpu.pipeline_mode<synchronous>, transform_indices = @transform_3, window_bounds = array<i64: 1, 512>}, {transform_indices = @transform_4, window_bounds = array<i64: 4, 8, 128>}, {pipeline_mode = #tpu.pipeline_mode<synchronous>, transform_indices = @transform_5, window_bounds = array<i64: 8, 128>}, {pipeline_mode = #tpu.pipeline_mode<synchronous>, transform_indices = @transform_6, window_bounds = array<i64: 8, 128>}]} {
    %c0_i32 = arith.constant 0 : i32
    %0 = arith.cmpi eq, %arg0, %c0_i32 : i32
    %1 = arith.extui %0 : i1 to i32
    %c0_i32_0 = arith.constant 0 : i32
    %2 = arith.cmpi ne, %1, %c0_i32_0 : i32
    scf.if %2 {
      %cst_59 = arith.constant 0.000000e+00 : f32
      %141 = vector.broadcast %cst_59 : f32 to vector<8x128xf32>
      %c0_60 = arith.constant 0 : index
      %c0_61 = arith.constant 0 : index
      %142 = vector.load %arg6[%c0_60, %c0_61] : memref<8x128xf32, #tpu.memory_space<vmem>>, vector<8x128xf32>
      tpu.vector_store %arg6[%c0_60, %c0_61], %141 {strides = array<i32>} : memref<8x128xf32, #tpu.memory_space<vmem>>, vector<8x128xf32>,
      %cst_62 = arith.constant 0.000000e+00 : f32
      %143 = vector.broadcast %cst_62 : f32 to vector<8x128xf32>
      %c0_63 = arith.constant 0 : index
      %c0_64 = arith.constant 0 : index
      %144 = vector.load %arg7[%c0_63, %c0_64] : memref<8x128xf32, #tpu.memory_space<vmem>>, vector<8x128xf32>
      tpu.vector_store %arg7[%c0_63, %c0_64], %143 {strides = array<i32>} : memref<8x128xf32, #tpu.memory_space<vmem>>, vector<8x128xf32>,
    } else {
    }
    %c0 = arith.constant 0 : index
    %c0_1 = arith.constant 0 : index
    %c0_2 = arith.constant 0 : index
    %3 = vector.load %arg1[%c0, %c0_1, %c0_2] : memref<4x8x16xbf16, #tpu.memory_space<vmem>>, vector<4x8x16xbf16>
    %4 = vector.shape_cast %3 : vector<4x8x16xbf16> to vector<32x16xbf16>
    %c0_3 = arith.constant 0 : index
    %c0_4 = arith.constant 0 : index
    %5 = vector.load %arg2[%c0_3, %c0_4] : memref<16x512xbf16, #tpu.memory_space<vmem>>, vector<16x512xbf16>
    %cst = arith.constant dense<0.000000e+00> : vector<32x512xf32>
    %6 = tpu.matmul %4, %5, %cst {dimension_numbers = #tpu.dot_dimension_numbers<[1], [0], [0], [1], [0, 0, 1, 1], [], []>} : vector<32x16xbf16>, vector<16x512xbf16>, vector<32x512xf32> -> vector<32x512xf32>
    %c0_5 = arith.constant 0 : index
    %c0_6 = arith.constant 0 : index
    %7 = vector.load %arg4[%c0_5, %c0_6] : memref<1x512xf32, #tpu.memory_space<vmem>>, vector<1x512xf32>
    %8 = vector.broadcast %7 : vector<1x512xf32> to vector<32x512xf32>
    %9 = arith.addf %6, %8 : vector<32x512xf32>
    %10 = arith.truncf %9 : vector<32x512xf32> to vector<32x512xbf16>
    %11 = vector.shape_cast %10 : vector<32x512xbf16> to vector<4x8x512xbf16>
    %c0_7 = arith.constant 0 : index
    %c0_8 = arith.constant 0 : index
    %c0_9 = arith.constant 0 : index
    %12 = vector.load %arg8[%c0_7, %c0_8, %c0_9] : memref<4x8x512xbf16, #tpu.memory_space<vmem>>, vector<4x8x512xbf16>
    tpu.vector_store %arg8[%c0_7, %c0_8, %c0_9], %11 {strides = array<i32>} : memref<4x8x512xbf16, #tpu.memory_space<vmem>>, vector<4x8x512xbf16>,
    %c0_10 = arith.constant 0 : index
    %c0_11 = arith.constant 0 : index
    %13 = vector.load %arg6[%c0_10, %c0_11] : memref<8x128xf32, #tpu.memory_space<vmem>>, vector<8x128xf32>
    %c0_12 = arith.constant 0 : index
    %c0_13 = arith.constant 0 : index
    %14 = vector.load %arg7[%c0_12, %c0_13] : memref<8x128xf32, #tpu.memory_space<vmem>>, vector<8x128xf32>
    %c0_i32_14 = arith.constant 0 : i32
    %15 = arith.index_cast %c0_i32_14 : i32 to index
    %c0_15 = arith.constant 0 : index
    %c0_16 = arith.constant 0 : index
    %16 = vector.load %arg8[%15, %c0_15, %c0_16] : memref<4x8x512xbf16, #tpu.memory_space<vmem>>, vector<1x8x512xbf16>
    %17 = vector.shape_cast %16 : vector<1x8x512xbf16> to vector<8x512xbf16>
    %18 = arith.extf %17 : vector<8x512xbf16> to vector<8x512xf32>
    %19 = arith.truncf %13 : vector<8x128xf32> to vector<8x128xbf16>
    %c0_17 = arith.constant 0 : index
    %c0_18 = arith.constant 0 : index
    %20 = vector.load %arg3[%c0_17, %c0_18] : memref<128x512xbf16, #tpu.memory_space<vmem>>, vector<128x512xbf16>
    %cst_19 = arith.constant dense<0.000000e+00> : vector<8x512xf32>
    %21 = tpu.matmul %19, %20, %cst_19 {dimension_numbers = #tpu.dot_dimension_numbers<[1], [0], [0], [1], [0, 0, 1, 1], [], []>} : vector<8x128xbf16>, vector<128x512xbf16>, vector<8x512xf32> -> vector<8x512xf32>
    %22 = arith.addf %18, %21 : vector<8x512xf32>
    %23 = vector.extract_strided_slice %22 {offsets = [0, 0], sizes = [8, 384], strides = [1, 1]} : vector<8x512xf32> to vector<8x384xf32>
    %cst_20 = arith.constant 5.000000e-01 : f32
    %24 = vector.broadcast %cst_20 : f32 to vector<8x384xf32>
    %25 = arith.mulf %24, %23 : vector<8x384xf32>
    %26 = math.tanh %25 : vector<8x384xf32>
    %cst_21 = arith.constant 5.000000e-01 : f32
    %27 = vector.broadcast %cst_21 : f32 to vector<8x384xf32>
    %28 = arith.mulf %27, %26 : vector<8x384xf32>
    %cst_22 = arith.constant 5.000000e-01 : f32
    %29 = vector.broadcast %cst_22 : f32 to vector<8x384xf32>
    %30 = arith.addf %28, %29 : vector<8x384xf32>
    %31 = vector.extract_strided_slice %22 {offsets = [0, 384], sizes = [8, 128], strides = [1, 1]} : vector<8x512xf32> to vector<8x128xf32>
    %32 = math.tanh %31 : vector<8x128xf32>
    %33 = vector.extract_strided_slice %30 {offsets = [0, 0], sizes = [8, 128], strides = [1, 1]} : vector<8x384xf32> to vector<8x128xf32>
    %34 = vector.extract_strided_slice %30 {offsets = [0, 128], sizes = [8, 128], strides = [1, 1]} : vector<8x384xf32> to vector<8x128xf32>
    %35 = vector.extract_strided_slice %30 {offsets = [0, 256], sizes = [8, 128], strides = [1, 1]} : vector<8x384xf32> to vector<8x128xf32>
    %36 = arith.mulf %34, %14 : vector<8x128xf32>
    %37 = arith.mulf %33, %32 : vector<8x128xf32>
    %38 = arith.addf %36, %37 : vector<8x128xf32>
    %39 = math.tanh %38 : vector<8x128xf32>
    %40 = arith.mulf %35, %39 : vector<8x128xf32>
    %41 = arith.truncf %40 : vector<8x128xf32> to vector<8x128xbf16>
    %42 = arith.index_cast %c0_i32_14 : i32 to index
    %c0_23 = arith.constant 0 : index
    %c0_24 = arith.constant 0 : index
    %43 = vector.load %arg5[%42, %c0_23, %c0_24] : memref<4x8x128xbf16, #tpu.memory_space<vmem>>, vector<1x8x128xbf16>
    %44 = vector.shape_cast %43 : vector<1x8x128xbf16> to vector<8x128xbf16>
    %45 = vector.shape_cast %41 : vector<8x128xbf16> to vector<1x8x128xbf16>
    tpu.vector_store %arg5[%42, %c0_23, %c0_24], %45 {strides = array<i32>} : memref<4x8x128xbf16, #tpu.memory_space<vmem>>, vector<1x8x128xbf16>,
    %c1_i32 = arith.constant 1 : i32
    %46 = arith.index_cast %c1_i32 : i32 to index
    %c0_25 = arith.constant 0 : index
    %c0_26 = arith.constant 0 : index
    %47 = vector.load %arg8[%46, %c0_25, %c0_26] : memref<4x8x512xbf16, #tpu.memory_space<vmem>>, vector<1x8x512xbf16>
    %48 = vector.shape_cast %47 : vector<1x8x512xbf16> to vector<8x512xbf16>
    %49 = arith.extf %48 : vector<8x512xbf16> to vector<8x512xf32>
    %50 = arith.truncf %40 : vector<8x128xf32> to vector<8x128xbf16>
    %c0_27 = arith.constant 0 : index
    %c0_28 = arith.constant 0 : index
    %51 = vector.load %arg3[%c0_27, %c0_28] : memref<128x512xbf16, #tpu.memory_space<vmem>>, vector<128x512xbf16>
    %cst_29 = arith.constant dense<0.000000e+00> : vector<8x512xf32>
    %52 = tpu.matmul %50, %51, %cst_29 {dimension_numbers = #tpu.dot_dimension_numbers<[1], [0], [0], [1], [0, 0, 1, 1], [], []>} : vector<8x128xbf16>, vector<128x512xbf16>, vector<8x512xf32> -> vector<8x512xf32>
    %53 = arith.addf %49, %52 : vector<8x512xf32>
    %54 = vector.extract_strided_slice %53 {offsets = [0, 0], sizes = [8, 384], strides = [1, 1]} : vector<8x512xf32> to vector<8x384xf32>
    %cst_30 = arith.constant 5.000000e-01 : f32
    %55 = vector.broadcast %cst_30 : f32 to vector<8x384xf32>
    %56 = arith.mulf %55, %54 : vector<8x384xf32>
    %57 = math.tanh %56 : vector<8x384xf32>
    %cst_31 = arith.constant 5.000000e-01 : f32
    %58 = vector.broadcast %cst_31 : f32 to vector<8x384xf32>
    %59 = arith.mulf %58, %57 : vector<8x384xf32>
    %cst_32 = arith.constant 5.000000e-01 : f32
    %60 = vector.broadcast %cst_32 : f32 to vector<8x384xf32>
    %61 = arith.addf %59, %60 : vector<8x384xf32>
    %62 = vector.extract_strided_slice %53 {offsets = [0, 384], sizes = [8, 128], strides = [1, 1]} : vector<8x512xf32> to vector<8x128xf32>
    %63 = math.tanh %62 : vector<8x128xf32>
    %64 = vector.extract_strided_slice %61 {offsets = [0, 0], sizes = [8, 128], strides = [1, 1]} : vector<8x384xf32> to vector<8x128xf32>
    %65 = vector.extract_strided_slice %61 {offsets = [0, 128], sizes = [8, 128], strides = [1, 1]} : vector<8x384xf32> to vector<8x128xf32>
    %66 = vector.extract_strided_slice %61 {offsets = [0, 256], sizes = [8, 128], strides = [1, 1]} : vector<8x384xf32> to vector<8x128xf32>
    %67 = arith.mulf %65, %38 : vector<8x128xf32>
    %68 = arith.mulf %64, %63 : vector<8x128xf32>
    %69 = arith.addf %67, %68 : vector<8x128xf32>
    %70 = math.tanh %69 : vector<8x128xf32>
    %71 = arith.mulf %66, %70 : vector<8x128xf32>
    %72 = arith.truncf %71 : vector<8x128xf32> to vector<8x128xbf16>
    %73 = arith.index_cast %c1_i32 : i32 to index
    %c0_33 = arith.constant 0 : index
    %c0_34 = arith.constant 0 : index
    %74 = vector.load %arg5[%73, %c0_33, %c0_34] : memref<4x8x128xbf16, #tpu.memory_space<vmem>>, vector<1x8x128xbf16>
    %75 = vector.shape_cast %74 : vector<1x8x128xbf16> to vector<8x128xbf16>
    %76 = vector.shape_cast %72 : vector<8x128xbf16> to vector<1x8x128xbf16>
    tpu.vector_store %arg5[%73, %c0_33, %c0_34], %76 {strides = array<i32>} : memref<4x8x128xbf16, #tpu.memory_space<vmem>>, vector<1x8x128xbf16>,
    %c2_i32 = arith.constant 2 : i32
    %77 = arith.index_cast %c2_i32 : i32 to index
    %c0_35 = arith.constant 0 : index
    %c0_36 = arith.constant 0 : index
    %78 = vector.load %arg8[%77, %c0_35, %c0_36] : memref<4x8x512xbf16, #tpu.memory_space<vmem>>, vector<1x8x512xbf16>
    %79 = vector.shape_cast %78 : vector<1x8x512xbf16> to vector<8x512xbf16>
    %80 = arith.extf %79 : vector<8x512xbf16> to vector<8x512xf32>
    %81 = arith.truncf %71 : vector<8x128xf32> to vector<8x128xbf16>
    %c0_37 = arith.constant 0 : index
    %c0_38 = arith.constant 0 : index
    %82 = vector.load %arg3[%c0_37, %c0_38] : memref<128x512xbf16, #tpu.memory_space<vmem>>, vector<128x512xbf16>
    %cst_39 = arith.constant dense<0.000000e+00> : vector<8x512xf32>
    %83 = tpu.matmul %81, %82, %cst_39 {dimension_numbers = #tpu.dot_dimension_numbers<[1], [0], [0], [1], [0, 0, 1, 1], [], []>} : vector<8x128xbf16>, vector<128x512xbf16>, vector<8x512xf32> -> vector<8x512xf32>
    %84 = arith.addf %80, %83 : vector<8x512xf32>
    %85 = vector.extract_strided_slice %84 {offsets = [0, 0], sizes = [8, 384], strides = [1, 1]} : vector<8x512xf32> to vector<8x384xf32>
    %cst_40 = arith.constant 5.000000e-01 : f32
    %86 = vector.broadcast %cst_40 : f32 to vector<8x384xf32>
    %87 = arith.mulf %86, %85 : vector<8x384xf32>
    %88 = math.tanh %87 : vector<8x384xf32>
    %cst_41 = arith.constant 5.000000e-01 : f32
    %89 = vector.broadcast %cst_41 : f32 to vector<8x384xf32>
    %90 = arith.mulf %89, %88 : vector<8x384xf32>
    %cst_42 = arith.constant 5.000000e-01 : f32
    %91 = vector.broadcast %cst_42 : f32 to vector<8x384xf32>
    %92 = arith.addf %90, %91 : vector<8x384xf32>
    %93 = vector.extract_strided_slice %84 {offsets = [0, 384], sizes = [8, 128], strides = [1, 1]} : vector<8x512xf32> to vector<8x128xf32>
    %94 = math.tanh %93 : vector<8x128xf32>
    %95 = vector.extract_strided_slice %92 {offsets = [0, 0], sizes = [8, 128], strides = [1, 1]} : vector<8x384xf32> to vector<8x128xf32>
    %96 = vector.extract_strided_slice %92 {offsets = [0, 128], sizes = [8, 128], strides = [1, 1]} : vector<8x384xf32> to vector<8x128xf32>
    %97 = vector.extract_strided_slice %92 {offsets = [0, 256], sizes = [8, 128], strides = [1, 1]} : vector<8x384xf32> to vector<8x128xf32>
    %98 = arith.mulf %96, %69 : vector<8x128xf32>
    %99 = arith.mulf %95, %94 : vector<8x128xf32>
    %100 = arith.addf %98, %99 : vector<8x128xf32>
    %101 = math.tanh %100 : vector<8x128xf32>
    %102 = arith.mulf %97, %101 : vector<8x128xf32>
    %103 = arith.truncf %102 : vector<8x128xf32> to vector<8x128xbf16>
    %104 = arith.index_cast %c2_i32 : i32 to index
    %c0_43 = arith.constant 0 : index
    %c0_44 = arith.constant 0 : index
    %105 = vector.load %arg5[%104, %c0_43, %c0_44] : memref<4x8x128xbf16, #tpu.memory_space<vmem>>, vector<1x8x128xbf16>
    %106 = vector.shape_cast %105 : vector<1x8x128xbf16> to vector<8x128xbf16>
    %107 = vector.shape_cast %103 : vector<8x128xbf16> to vector<1x8x128xbf16>
    tpu.vector_store %arg5[%104, %c0_43, %c0_44], %107 {strides = array<i32>} : memref<4x8x128xbf16, #tpu.memory_space<vmem>>, vector<1x8x128xbf16>,
    %c3_i32 = arith.constant 3 : i32
    %108 = arith.index_cast %c3_i32 : i32 to index
    %c0_45 = arith.constant 0 : index
    %c0_46 = arith.constant 0 : index
    %109 = vector.load %arg8[%108, %c0_45, %c0_46] : memref<4x8x512xbf16, #tpu.memory_space<vmem>>, vector<1x8x512xbf16>
    %110 = vector.shape_cast %109 : vector<1x8x512xbf16> to vector<8x512xbf16>
    %111 = arith.extf %110 : vector<8x512xbf16> to vector<8x512xf32>
    %112 = arith.truncf %102 : vector<8x128xf32> to vector<8x128xbf16>
    %c0_47 = arith.constant 0 : index
    %c0_48 = arith.constant 0 : index
    %113 = vector.load %arg3[%c0_47, %c0_48] : memref<128x512xbf16, #tpu.memory_space<vmem>>, vector<128x512xbf16>
    %cst_49 = arith.constant dense<0.000000e+00> : vector<8x512xf32>
    %114 = tpu.matmul %112, %113, %cst_49 {dimension_numbers = #tpu.dot_dimension_numbers<[1], [0], [0], [1], [0, 0, 1, 1], [], []>} : vector<8x128xbf16>, vector<128x512xbf16>, vector<8x512xf32> -> vector<8x512xf32>
    %115 = arith.addf %111, %114 : vector<8x512xf32>
    %116 = vector.extract_strided_slice %115 {offsets = [0, 0], sizes = [8, 384], strides = [1, 1]} : vector<8x512xf32> to vector<8x384xf32>
    %cst_50 = arith.constant 5.000000e-01 : f32
    %117 = vector.broadcast %cst_50 : f32 to vector<8x384xf32>
    %118 = arith.mulf %117, %116 : vector<8x384xf32>
    %119 = math.tanh %118 : vector<8x384xf32>
    %cst_51 = arith.constant 5.000000e-01 : f32
    %120 = vector.broadcast %cst_51 : f32 to vector<8x384xf32>
    %121 = arith.mulf %120, %119 : vector<8x384xf32>
    %cst_52 = arith.constant 5.000000e-01 : f32
    %122 = vector.broadcast %cst_52 : f32 to vector<8x384xf32>
    %123 = arith.addf %121, %122 : vector<8x384xf32>
    %124 = vector.extract_strided_slice %115 {offsets = [0, 384], sizes = [8, 128], strides = [1, 1]} : vector<8x512xf32> to vector<8x128xf32>
    %125 = math.tanh %124 : vector<8x128xf32>
    %126 = vector.extract_strided_slice %123 {offsets = [0, 0], sizes = [8, 128], strides = [1, 1]} : vector<8x384xf32> to vector<8x128xf32>
    %127 = vector.extract_strided_slice %123 {offsets = [0, 128], sizes = [8, 128], strides = [1, 1]} : vector<8x384xf32> to vector<8x128xf32>
    %128 = vector.extract_strided_slice %123 {offsets = [0, 256], sizes = [8, 128], strides = [1, 1]} : vector<8x384xf32> to vector<8x128xf32>
    %129 = arith.mulf %127, %100 : vector<8x128xf32>
    %130 = arith.mulf %126, %125 : vector<8x128xf32>
    %131 = arith.addf %129, %130 : vector<8x128xf32>
    %132 = math.tanh %131 : vector<8x128xf32>
    %133 = arith.mulf %128, %132 : vector<8x128xf32>
    %134 = arith.truncf %133 : vector<8x128xf32> to vector<8x128xbf16>
    %135 = arith.index_cast %c3_i32 : i32 to index
    %c0_53 = arith.constant 0 : index
    %c0_54 = arith.constant 0 : index
    %136 = vector.load %arg5[%135, %c0_53, %c0_54] : memref<4x8x128xbf16, #tpu.memory_space<vmem>>, vector<1x8x128xbf16>
    %137 = vector.shape_cast %136 : vector<1x8x128xbf16> to vector<8x128xbf16>
    %138 = vector.shape_cast %134 : vector<8x128xbf16> to vector<1x8x128xbf16>
    tpu.vector_store %arg5[%135, %c0_53, %c0_54], %138 {strides = array<i32>} : memref<4x8x128xbf16, #tpu.memory_space<vmem>>, vector<1x8x128xbf16>,
    %c4_i32 = arith.constant 4 : i32
    %c0_55 = arith.constant 0 : index
    %c0_56 = arith.constant 0 : index
    %139 = vector.load %arg6[%c0_55, %c0_56] : memref<8x128xf32, #tpu.memory_space<vmem>>, vector<8x128xf32>
    tpu.vector_store %arg6[%c0_55, %c0_56], %133 {strides = array<i32>} : memref<8x128xf32, #tpu.memory_space<vmem>>, vector<8x128xf32>,
    %c0_57 = arith.constant 0 : index
    %c0_58 = arith.constant 0 : index
    %140 = vector.load %arg7[%c0_57, %c0_58] : memref<8x128xf32, #tpu.memory_space<vmem>>, vector<8x128xf32>
    tpu.vector_store %arg7[%c0_57, %c0_58], %131 {strides = array<i32>} : memref<8x128xf32, #tpu.memory_space<vmem>>, vector<8x128xf32>,
    return
  }
  func.func @transform_0(%arg0: i32) -> (i32, i32, i32) {
    %c0_i32 = arith.constant 0 : i32
    %c0_i32_0 = arith.constant 0 : i32
    %c0_i32_1 = arith.constant 0 : i32
    return %arg0, %c0_i32, %c0_i32_0 : i32, i32, i32
  }
  func.func @transform_1(%arg0: i32) -> (i32, i32) {
    %c0_i32 = arith.constant 0 : i32
    %c0_i32_0 = arith.constant 0 : i32
    %c0_i32_1 = arith.constant 0 : i32
    return %c0_i32, %c0_i32_0 : i32, i32
  }
  func.func @transform_2(%arg0: i32) -> (i32, i32) {
    %c0_i32 = arith.constant 0 : i32
    %c0_i32_0 = arith.constant 0 : i32
    %c0_i32_1 = arith.constant 0 : i32
    return %c0_i32, %c0_i32_0 : i32, i32
  }
  func.func @transform_3(%arg0: i32) -> (i32, i32) {
    %c0_i32 = arith.constant 0 : i32
    %c0_i32_0 = arith.constant 0 : i32
    %c0_i32_1 = arith.constant 0 : i32
    return %c0_i32, %c0_i32_0 : i32, i32
  }
  func.func @transform_4(%arg0: i32) -> (i32, i32, i32) {
    %c0_i32 = arith.constant 0 : i32
    %c0_i32_0 = arith.constant 0 : i32
    %c0_i32_1 = arith.constant 0 : i32
    return %arg0, %c0_i32, %c0_i32_0 : i32, i32, i32
  }
  func.func @transform_5(%arg0: i32) -> (i32, i32) {
    %c0_i32 = arith.constant 0 : i32
    %c0_i32_0 = arith.constant 0 : i32
    %c0_i32_1 = arith.constant 0 : i32
    return %c0_i32, %c0_i32_0 : i32, i32
  }
  func.func @transform_6(%arg0: i32) -> (i32, i32) {
    %c0_i32 = arith.constant 0 : i32
    %c0_i32_0 = arith.constant 0 : i32
    %c0_i32_1 = arith.constant 0 : i32
    return %c0_i32, %c0_i32_0 : i32, i32
  }
}

module attributes {stable_mosaic.version = 11 : i64} {
  func.func @_lstm_layer_kernel(%arg0: i32, %arg1: memref<4x8x128xbf16, #tpu.memory_space<vmem>>, %arg2: memref<128x512xbf16, #tpu.memory_space<vmem>>, %arg3: memref<128x512xbf16, #tpu.memory_space<vmem>>, %arg4: memref<1x512xf32, #tpu.memory_space<vmem>>, %arg5: memref<4x8x128xf32, #tpu.memory_space<vmem>>, %arg6: memref<8x128xf32, #tpu.memory_space<vmem>>, %arg7: memref<8x128xf32, #tpu.memory_space<vmem>>, %arg8: memref<4x8x512xbf16, #tpu.memory_space<vmem>>) attributes {dimension_semantics = [#tpu.dimension_semantics<arbitrary>], iteration_bounds = array<i64: 2>, scalar_prefetch = 0 : i64, scratch_operands = 1 : i64, tpu.core_type = #tpu.core_type<tc>, window_params = [{transform_indices = @transform_0, window_bounds = array<i64: 4, 8, 128>}, {pipeline_mode = #tpu.pipeline_mode<synchronous>, transform_indices = @transform_1, window_bounds = array<i64: 128, 512>}, {pipeline_mode = #tpu.pipeline_mode<synchronous>, transform_indices = @transform_2, window_bounds = array<i64: 128, 512>}, {pipeline_mode = #tpu.pipeline_mode<synchronous>, transform_indices = @transform_3, window_bounds = array<i64: 1, 512>}, {transform_indices = @transform_4, window_bounds = array<i64: 4, 8, 128>}, {pipeline_mode = #tpu.pipeline_mode<synchronous>, transform_indices = @transform_5, window_bounds = array<i64: 8, 128>}, {pipeline_mode = #tpu.pipeline_mode<synchronous>, transform_indices = @transform_6, window_bounds = array<i64: 8, 128>}]} {
    %c0_i32 = arith.constant 0 : i32
    %0 = arith.cmpi eq, %arg0, %c0_i32 : i32
    %1 = arith.extui %0 : i1 to i32
    %c0_i32_0 = arith.constant 0 : i32
    %2 = arith.cmpi ne, %1, %c0_i32_0 : i32
    scf.if %2 {
      %cst_59 = arith.constant 0.000000e+00 : f32
      %137 = vector.broadcast %cst_59 : f32 to vector<8x128xf32>
      %c0_60 = arith.constant 0 : index
      %c0_61 = arith.constant 0 : index
      %138 = vector.load %arg6[%c0_60, %c0_61] : memref<8x128xf32, #tpu.memory_space<vmem>>, vector<8x128xf32>
      tpu.vector_store %arg6[%c0_60, %c0_61], %137 {strides = array<i32>} : memref<8x128xf32, #tpu.memory_space<vmem>>, vector<8x128xf32>,
      %cst_62 = arith.constant 0.000000e+00 : f32
      %139 = vector.broadcast %cst_62 : f32 to vector<8x128xf32>
      %c0_63 = arith.constant 0 : index
      %c0_64 = arith.constant 0 : index
      %140 = vector.load %arg7[%c0_63, %c0_64] : memref<8x128xf32, #tpu.memory_space<vmem>>, vector<8x128xf32>
      tpu.vector_store %arg7[%c0_63, %c0_64], %139 {strides = array<i32>} : memref<8x128xf32, #tpu.memory_space<vmem>>, vector<8x128xf32>,
    } else {
    }
    %c0 = arith.constant 0 : index
    %c0_1 = arith.constant 0 : index
    %c0_2 = arith.constant 0 : index
    %3 = vector.load %arg1[%c0, %c0_1, %c0_2] : memref<4x8x128xbf16, #tpu.memory_space<vmem>>, vector<4x8x128xbf16>
    %4 = vector.shape_cast %3 : vector<4x8x128xbf16> to vector<32x128xbf16>
    %c0_3 = arith.constant 0 : index
    %c0_4 = arith.constant 0 : index
    %5 = vector.load %arg2[%c0_3, %c0_4] : memref<128x512xbf16, #tpu.memory_space<vmem>>, vector<128x512xbf16>
    %cst = arith.constant dense<0.000000e+00> : vector<32x512xf32>
    %6 = tpu.matmul %4, %5, %cst {dimension_numbers = #tpu.dot_dimension_numbers<[1], [0], [0], [1], [0, 0, 1, 1], [], []>} : vector<32x128xbf16>, vector<128x512xbf16>, vector<32x512xf32> -> vector<32x512xf32>
    %c0_5 = arith.constant 0 : index
    %c0_6 = arith.constant 0 : index
    %7 = vector.load %arg4[%c0_5, %c0_6] : memref<1x512xf32, #tpu.memory_space<vmem>>, vector<1x512xf32>
    %8 = vector.broadcast %7 : vector<1x512xf32> to vector<32x512xf32>
    %9 = arith.addf %6, %8 : vector<32x512xf32>
    %10 = arith.truncf %9 : vector<32x512xf32> to vector<32x512xbf16>
    %11 = vector.shape_cast %10 : vector<32x512xbf16> to vector<4x8x512xbf16>
    %c0_7 = arith.constant 0 : index
    %c0_8 = arith.constant 0 : index
    %c0_9 = arith.constant 0 : index
    %12 = vector.load %arg8[%c0_7, %c0_8, %c0_9] : memref<4x8x512xbf16, #tpu.memory_space<vmem>>, vector<4x8x512xbf16>
    tpu.vector_store %arg8[%c0_7, %c0_8, %c0_9], %11 {strides = array<i32>} : memref<4x8x512xbf16, #tpu.memory_space<vmem>>, vector<4x8x512xbf16>,
    %c0_10 = arith.constant 0 : index
    %c0_11 = arith.constant 0 : index
    %13 = vector.load %arg6[%c0_10, %c0_11] : memref<8x128xf32, #tpu.memory_space<vmem>>, vector<8x128xf32>
    %c0_12 = arith.constant 0 : index
    %c0_13 = arith.constant 0 : index
    %14 = vector.load %arg7[%c0_12, %c0_13] : memref<8x128xf32, #tpu.memory_space<vmem>>, vector<8x128xf32>
    %c0_i32_14 = arith.constant 0 : i32
    %15 = arith.index_cast %c0_i32_14 : i32 to index
    %c0_15 = arith.constant 0 : index
    %c0_16 = arith.constant 0 : index
    %16 = vector.load %arg8[%15, %c0_15, %c0_16] : memref<4x8x512xbf16, #tpu.memory_space<vmem>>, vector<1x8x512xbf16>
    %17 = vector.shape_cast %16 : vector<1x8x512xbf16> to vector<8x512xbf16>
    %18 = arith.extf %17 : vector<8x512xbf16> to vector<8x512xf32>
    %19 = arith.truncf %13 : vector<8x128xf32> to vector<8x128xbf16>
    %c0_17 = arith.constant 0 : index
    %c0_18 = arith.constant 0 : index
    %20 = vector.load %arg3[%c0_17, %c0_18] : memref<128x512xbf16, #tpu.memory_space<vmem>>, vector<128x512xbf16>
    %cst_19 = arith.constant dense<0.000000e+00> : vector<8x512xf32>
    %21 = tpu.matmul %19, %20, %cst_19 {dimension_numbers = #tpu.dot_dimension_numbers<[1], [0], [0], [1], [0, 0, 1, 1], [], []>} : vector<8x128xbf16>, vector<128x512xbf16>, vector<8x512xf32> -> vector<8x512xf32>
    %22 = arith.addf %18, %21 : vector<8x512xf32>
    %23 = vector.extract_strided_slice %22 {offsets = [0, 0], sizes = [8, 384], strides = [1, 1]} : vector<8x512xf32> to vector<8x384xf32>
    %cst_20 = arith.constant 5.000000e-01 : f32
    %24 = vector.broadcast %cst_20 : f32 to vector<8x384xf32>
    %25 = arith.mulf %24, %23 : vector<8x384xf32>
    %26 = math.tanh %25 : vector<8x384xf32>
    %cst_21 = arith.constant 5.000000e-01 : f32
    %27 = vector.broadcast %cst_21 : f32 to vector<8x384xf32>
    %28 = arith.mulf %27, %26 : vector<8x384xf32>
    %cst_22 = arith.constant 5.000000e-01 : f32
    %29 = vector.broadcast %cst_22 : f32 to vector<8x384xf32>
    %30 = arith.addf %28, %29 : vector<8x384xf32>
    %31 = vector.extract_strided_slice %22 {offsets = [0, 384], sizes = [8, 128], strides = [1, 1]} : vector<8x512xf32> to vector<8x128xf32>
    %32 = math.tanh %31 : vector<8x128xf32>
    %33 = vector.extract_strided_slice %30 {offsets = [0, 0], sizes = [8, 128], strides = [1, 1]} : vector<8x384xf32> to vector<8x128xf32>
    %34 = vector.extract_strided_slice %30 {offsets = [0, 128], sizes = [8, 128], strides = [1, 1]} : vector<8x384xf32> to vector<8x128xf32>
    %35 = vector.extract_strided_slice %30 {offsets = [0, 256], sizes = [8, 128], strides = [1, 1]} : vector<8x384xf32> to vector<8x128xf32>
    %36 = arith.mulf %34, %14 : vector<8x128xf32>
    %37 = arith.mulf %33, %32 : vector<8x128xf32>
    %38 = arith.addf %36, %37 : vector<8x128xf32>
    %39 = math.tanh %38 : vector<8x128xf32>
    %40 = arith.mulf %35, %39 : vector<8x128xf32>
    %41 = arith.index_cast %c0_i32_14 : i32 to index
    %c0_23 = arith.constant 0 : index
    %c0_24 = arith.constant 0 : index
    %42 = vector.load %arg5[%41, %c0_23, %c0_24] : memref<4x8x128xf32, #tpu.memory_space<vmem>>, vector<1x8x128xf32>
    %43 = vector.shape_cast %42 : vector<1x8x128xf32> to vector<8x128xf32>
    %44 = vector.shape_cast %40 : vector<8x128xf32> to vector<1x8x128xf32>
    tpu.vector_store %arg5[%41, %c0_23, %c0_24], %44 {strides = array<i32>} : memref<4x8x128xf32, #tpu.memory_space<vmem>>, vector<1x8x128xf32>,
    %c1_i32 = arith.constant 1 : i32
    %45 = arith.index_cast %c1_i32 : i32 to index
    %c0_25 = arith.constant 0 : index
    %c0_26 = arith.constant 0 : index
    %46 = vector.load %arg8[%45, %c0_25, %c0_26] : memref<4x8x512xbf16, #tpu.memory_space<vmem>>, vector<1x8x512xbf16>
    %47 = vector.shape_cast %46 : vector<1x8x512xbf16> to vector<8x512xbf16>
    %48 = arith.extf %47 : vector<8x512xbf16> to vector<8x512xf32>
    %49 = arith.truncf %40 : vector<8x128xf32> to vector<8x128xbf16>
    %c0_27 = arith.constant 0 : index
    %c0_28 = arith.constant 0 : index
    %50 = vector.load %arg3[%c0_27, %c0_28] : memref<128x512xbf16, #tpu.memory_space<vmem>>, vector<128x512xbf16>
    %cst_29 = arith.constant dense<0.000000e+00> : vector<8x512xf32>
    %51 = tpu.matmul %49, %50, %cst_29 {dimension_numbers = #tpu.dot_dimension_numbers<[1], [0], [0], [1], [0, 0, 1, 1], [], []>} : vector<8x128xbf16>, vector<128x512xbf16>, vector<8x512xf32> -> vector<8x512xf32>
    %52 = arith.addf %48, %51 : vector<8x512xf32>
    %53 = vector.extract_strided_slice %52 {offsets = [0, 0], sizes = [8, 384], strides = [1, 1]} : vector<8x512xf32> to vector<8x384xf32>
    %cst_30 = arith.constant 5.000000e-01 : f32
    %54 = vector.broadcast %cst_30 : f32 to vector<8x384xf32>
    %55 = arith.mulf %54, %53 : vector<8x384xf32>
    %56 = math.tanh %55 : vector<8x384xf32>
    %cst_31 = arith.constant 5.000000e-01 : f32
    %57 = vector.broadcast %cst_31 : f32 to vector<8x384xf32>
    %58 = arith.mulf %57, %56 : vector<8x384xf32>
    %cst_32 = arith.constant 5.000000e-01 : f32
    %59 = vector.broadcast %cst_32 : f32 to vector<8x384xf32>
    %60 = arith.addf %58, %59 : vector<8x384xf32>
    %61 = vector.extract_strided_slice %52 {offsets = [0, 384], sizes = [8, 128], strides = [1, 1]} : vector<8x512xf32> to vector<8x128xf32>
    %62 = math.tanh %61 : vector<8x128xf32>
    %63 = vector.extract_strided_slice %60 {offsets = [0, 0], sizes = [8, 128], strides = [1, 1]} : vector<8x384xf32> to vector<8x128xf32>
    %64 = vector.extract_strided_slice %60 {offsets = [0, 128], sizes = [8, 128], strides = [1, 1]} : vector<8x384xf32> to vector<8x128xf32>
    %65 = vector.extract_strided_slice %60 {offsets = [0, 256], sizes = [8, 128], strides = [1, 1]} : vector<8x384xf32> to vector<8x128xf32>
    %66 = arith.mulf %64, %38 : vector<8x128xf32>
    %67 = arith.mulf %63, %62 : vector<8x128xf32>
    %68 = arith.addf %66, %67 : vector<8x128xf32>
    %69 = math.tanh %68 : vector<8x128xf32>
    %70 = arith.mulf %65, %69 : vector<8x128xf32>
    %71 = arith.index_cast %c1_i32 : i32 to index
    %c0_33 = arith.constant 0 : index
    %c0_34 = arith.constant 0 : index
    %72 = vector.load %arg5[%71, %c0_33, %c0_34] : memref<4x8x128xf32, #tpu.memory_space<vmem>>, vector<1x8x128xf32>
    %73 = vector.shape_cast %72 : vector<1x8x128xf32> to vector<8x128xf32>
    %74 = vector.shape_cast %70 : vector<8x128xf32> to vector<1x8x128xf32>
    tpu.vector_store %arg5[%71, %c0_33, %c0_34], %74 {strides = array<i32>} : memref<4x8x128xf32, #tpu.memory_space<vmem>>, vector<1x8x128xf32>,
    %c2_i32 = arith.constant 2 : i32
    %75 = arith.index_cast %c2_i32 : i32 to index
    %c0_35 = arith.constant 0 : index
    %c0_36 = arith.constant 0 : index
    %76 = vector.load %arg8[%75, %c0_35, %c0_36] : memref<4x8x512xbf16, #tpu.memory_space<vmem>>, vector<1x8x512xbf16>
    %77 = vector.shape_cast %76 : vector<1x8x512xbf16> to vector<8x512xbf16>
    %78 = arith.extf %77 : vector<8x512xbf16> to vector<8x512xf32>
    %79 = arith.truncf %70 : vector<8x128xf32> to vector<8x128xbf16>
    %c0_37 = arith.constant 0 : index
    %c0_38 = arith.constant 0 : index
    %80 = vector.load %arg3[%c0_37, %c0_38] : memref<128x512xbf16, #tpu.memory_space<vmem>>, vector<128x512xbf16>
    %cst_39 = arith.constant dense<0.000000e+00> : vector<8x512xf32>
    %81 = tpu.matmul %79, %80, %cst_39 {dimension_numbers = #tpu.dot_dimension_numbers<[1], [0], [0], [1], [0, 0, 1, 1], [], []>} : vector<8x128xbf16>, vector<128x512xbf16>, vector<8x512xf32> -> vector<8x512xf32>
    %82 = arith.addf %78, %81 : vector<8x512xf32>
    %83 = vector.extract_strided_slice %82 {offsets = [0, 0], sizes = [8, 384], strides = [1, 1]} : vector<8x512xf32> to vector<8x384xf32>
    %cst_40 = arith.constant 5.000000e-01 : f32
    %84 = vector.broadcast %cst_40 : f32 to vector<8x384xf32>
    %85 = arith.mulf %84, %83 : vector<8x384xf32>
    %86 = math.tanh %85 : vector<8x384xf32>
    %cst_41 = arith.constant 5.000000e-01 : f32
    %87 = vector.broadcast %cst_41 : f32 to vector<8x384xf32>
    %88 = arith.mulf %87, %86 : vector<8x384xf32>
    %cst_42 = arith.constant 5.000000e-01 : f32
    %89 = vector.broadcast %cst_42 : f32 to vector<8x384xf32>
    %90 = arith.addf %88, %89 : vector<8x384xf32>
    %91 = vector.extract_strided_slice %82 {offsets = [0, 384], sizes = [8, 128], strides = [1, 1]} : vector<8x512xf32> to vector<8x128xf32>
    %92 = math.tanh %91 : vector<8x128xf32>
    %93 = vector.extract_strided_slice %90 {offsets = [0, 0], sizes = [8, 128], strides = [1, 1]} : vector<8x384xf32> to vector<8x128xf32>
    %94 = vector.extract_strided_slice %90 {offsets = [0, 128], sizes = [8, 128], strides = [1, 1]} : vector<8x384xf32> to vector<8x128xf32>
    %95 = vector.extract_strided_slice %90 {offsets = [0, 256], sizes = [8, 128], strides = [1, 1]} : vector<8x384xf32> to vector<8x128xf32>
    %96 = arith.mulf %94, %68 : vector<8x128xf32>
    %97 = arith.mulf %93, %92 : vector<8x128xf32>
    %98 = arith.addf %96, %97 : vector<8x128xf32>
    %99 = math.tanh %98 : vector<8x128xf32>
    %100 = arith.mulf %95, %99 : vector<8x128xf32>
    %101 = arith.index_cast %c2_i32 : i32 to index
    %c0_43 = arith.constant 0 : index
    %c0_44 = arith.constant 0 : index
    %102 = vector.load %arg5[%101, %c0_43, %c0_44] : memref<4x8x128xf32, #tpu.memory_space<vmem>>, vector<1x8x128xf32>
    %103 = vector.shape_cast %102 : vector<1x8x128xf32> to vector<8x128xf32>
    %104 = vector.shape_cast %100 : vector<8x128xf32> to vector<1x8x128xf32>
    tpu.vector_store %arg5[%101, %c0_43, %c0_44], %104 {strides = array<i32>} : memref<4x8x128xf32, #tpu.memory_space<vmem>>, vector<1x8x128xf32>,
    %c3_i32 = arith.constant 3 : i32
    %105 = arith.index_cast %c3_i32 : i32 to index
    %c0_45 = arith.constant 0 : index
    %c0_46 = arith.constant 0 : index
    %106 = vector.load %arg8[%105, %c0_45, %c0_46] : memref<4x8x512xbf16, #tpu.memory_space<vmem>>, vector<1x8x512xbf16>
    %107 = vector.shape_cast %106 : vector<1x8x512xbf16> to vector<8x512xbf16>
    %108 = arith.extf %107 : vector<8x512xbf16> to vector<8x512xf32>
    %109 = arith.truncf %100 : vector<8x128xf32> to vector<8x128xbf16>
    %c0_47 = arith.constant 0 : index
    %c0_48 = arith.constant 0 : index
    %110 = vector.load %arg3[%c0_47, %c0_48] : memref<128x512xbf16, #tpu.memory_space<vmem>>, vector<128x512xbf16>
    %cst_49 = arith.constant dense<0.000000e+00> : vector<8x512xf32>
    %111 = tpu.matmul %109, %110, %cst_49 {dimension_numbers = #tpu.dot_dimension_numbers<[1], [0], [0], [1], [0, 0, 1, 1], [], []>} : vector<8x128xbf16>, vector<128x512xbf16>, vector<8x512xf32> -> vector<8x512xf32>
    %112 = arith.addf %108, %111 : vector<8x512xf32>
    %113 = vector.extract_strided_slice %112 {offsets = [0, 0], sizes = [8, 384], strides = [1, 1]} : vector<8x512xf32> to vector<8x384xf32>
    %cst_50 = arith.constant 5.000000e-01 : f32
    %114 = vector.broadcast %cst_50 : f32 to vector<8x384xf32>
    %115 = arith.mulf %114, %113 : vector<8x384xf32>
    %116 = math.tanh %115 : vector<8x384xf32>
    %cst_51 = arith.constant 5.000000e-01 : f32
    %117 = vector.broadcast %cst_51 : f32 to vector<8x384xf32>
    %118 = arith.mulf %117, %116 : vector<8x384xf32>
    %cst_52 = arith.constant 5.000000e-01 : f32
    %119 = vector.broadcast %cst_52 : f32 to vector<8x384xf32>
    %120 = arith.addf %118, %119 : vector<8x384xf32>
    %121 = vector.extract_strided_slice %112 {offsets = [0, 384], sizes = [8, 128], strides = [1, 1]} : vector<8x512xf32> to vector<8x128xf32>
    %122 = math.tanh %121 : vector<8x128xf32>
    %123 = vector.extract_strided_slice %120 {offsets = [0, 0], sizes = [8, 128], strides = [1, 1]} : vector<8x384xf32> to vector<8x128xf32>
    %124 = vector.extract_strided_slice %120 {offsets = [0, 128], sizes = [8, 128], strides = [1, 1]} : vector<8x384xf32> to vector<8x128xf32>
    %125 = vector.extract_strided_slice %120 {offsets = [0, 256], sizes = [8, 128], strides = [1, 1]} : vector<8x384xf32> to vector<8x128xf32>
    %126 = arith.mulf %124, %98 : vector<8x128xf32>
    %127 = arith.mulf %123, %122 : vector<8x128xf32>
    %128 = arith.addf %126, %127 : vector<8x128xf32>
    %129 = math.tanh %128 : vector<8x128xf32>
    %130 = arith.mulf %125, %129 : vector<8x128xf32>
    %131 = arith.index_cast %c3_i32 : i32 to index
    %c0_53 = arith.constant 0 : index
    %c0_54 = arith.constant 0 : index
    %132 = vector.load %arg5[%131, %c0_53, %c0_54] : memref<4x8x128xf32, #tpu.memory_space<vmem>>, vector<1x8x128xf32>
    %133 = vector.shape_cast %132 : vector<1x8x128xf32> to vector<8x128xf32>
    %134 = vector.shape_cast %130 : vector<8x128xf32> to vector<1x8x128xf32>
    tpu.vector_store %arg5[%131, %c0_53, %c0_54], %134 {strides = array<i32>} : memref<4x8x128xf32, #tpu.memory_space<vmem>>, vector<1x8x128xf32>,
    %c4_i32 = arith.constant 4 : i32
    %c0_55 = arith.constant 0 : index
    %c0_56 = arith.constant 0 : index
    %135 = vector.load %arg6[%c0_55, %c0_56] : memref<8x128xf32, #tpu.memory_space<vmem>>, vector<8x128xf32>
    tpu.vector_store %arg6[%c0_55, %c0_56], %130 {strides = array<i32>} : memref<8x128xf32, #tpu.memory_space<vmem>>, vector<8x128xf32>,
    %c0_57 = arith.constant 0 : index
    %c0_58 = arith.constant 0 : index
    %136 = vector.load %arg7[%c0_57, %c0_58] : memref<8x128xf32, #tpu.memory_space<vmem>>, vector<8x128xf32>
    tpu.vector_store %arg7[%c0_57, %c0_58], %128 {strides = array<i32>} : memref<8x128xf32, #tpu.memory_space<vmem>>, vector<8x128xf32>,
    return
  }
  func.func @transform_0(%arg0: i32) -> (i32, i32, i32) {
    %c0_i32 = arith.constant 0 : i32
    %c0_i32_0 = arith.constant 0 : i32
    %c0_i32_1 = arith.constant 0 : i32
    return %arg0, %c0_i32, %c0_i32_0 : i32, i32, i32
  }
  func.func @transform_1(%arg0: i32) -> (i32, i32) {
    %c0_i32 = arith.constant 0 : i32
    %c0_i32_0 = arith.constant 0 : i32
    %c0_i32_1 = arith.constant 0 : i32
    return %c0_i32, %c0_i32_0 : i32, i32
  }
  func.func @transform_2(%arg0: i32) -> (i32, i32) {
    %c0_i32 = arith.constant 0 : i32
    %c0_i32_0 = arith.constant 0 : i32
    %c0_i32_1 = arith.constant 0 : i32
    return %c0_i32, %c0_i32_0 : i32, i32
  }
  func.func @transform_3(%arg0: i32) -> (i32, i32) {
    %c0_i32 = arith.constant 0 : i32
    %c0_i32_0 = arith.constant 0 : i32
    %c0_i32_1 = arith.constant 0 : i32
    return %c0_i32, %c0_i32_0 : i32, i32
  }
  func.func @transform_4(%arg0: i32) -> (i32, i32, i32) {
    %c0_i32 = arith.constant 0 : i32
    %c0_i32_0 = arith.constant 0 : i32
    %c0_i32_1 = arith.constant 0 : i32
    return %arg0, %c0_i32, %c0_i32_0 : i32, i32, i32
  }
  func.func @transform_5(%arg0: i32) -> (i32, i32) {
    %c0_i32 = arith.constant 0 : i32
    %c0_i32_0 = arith.constant 0 : i32
    %c0_i32_1 = arith.constant 0 : i32
    return %c0_i32, %c0_i32_0 : i32, i32
  }
  func.func @transform_6(%arg0: i32) -> (i32, i32) {
    %c0_i32 = arith.constant 0 : i32
    %c0_i32_0 = arith.constant 0 : i32
    %c0_i32_1 = arith.constant 0 : i32
    return %c0_i32, %c0_i32_0 : i32, i32
  }
}

</mosaic_0001>

<bundles_post_ra>
// kernel: custom_lstm_forward.2
= control target key start
LH: loop header
LB: loop body
LE: loop exit
PB: predicated region body
PF: predicated region fallthrough
CT: control target
= control target key end

     0   :  { %s2101_s21 = smov 0   ;;  %s2497_s0 = inlined_call_operand.vmem [shape: bf16[8,8,16], index: 0, kind: input, shape index: {}]   ;;  %s2498_s1 = inlined_call_operand.vmem [shape: bf16[16,512], index: 1, kind: input, shape index: {}]   ;;  %s2499_s2 = inlined_call_operand.vmem [shape: bf16[128,512], index: 2, kind: input, shape index: {}]   ;;  %s2500_s3 = inlined_call_operand.vmem [shape: f32[1,512], index: 3, kind: input, shape index: {}]   ;;  %s2501_s4 = inlined_call_operand.vmem [shape: bf16[8,8,128], index: 4, kind: output, shape index: {0}]   ;;  %s2502_s5 = inlined_call_operand.vmem [shape: f32[8,128], index: 5, kind: output, shape index: {1}]   ;;  %s2503_s6 = inlined_call_operand.vmem [shape: f32[8,128], index: 6, kind: output, shape index: {2}]  }
   0x1 LB: > { %s1781_s22 = sadd.s32 4294967295, %s2062_s21   ;;  %p1785_p0 = scmp.ge.s32.totalorder %s2062_s21, 1  ;;  %s2062_s21 = sphi %s2101_s21, %s17_s21  }
   0x2   : > { %p208_p1 = scmp.lt.s32.totalorder %s2062_s21, 3 }
   0x4   : > { %p209_p2 = pnand %p1785_p0, %p208_p1 }
   0x6   : > { %212 = sbr.rel (%p209_p2) target bundleno = 1015 (0x3f7), region = 36 }
   0xb   : > { %s1786_s23 = sshll.u32 %s1781_s22, 2  ;;  %p1790_p4 = scmp.ne.s32.totalorder %s1781_s22, 0 }
   0xc   : > { %p239_p3 = scmp.lt.s32.totalorder %s1786_s23, 7 }
   0xd   : > { %254 = sbr.rel (%p1790_p4) target bundleno = 20 (0x14), region = 40 }
   0xe   : > { %s2514_s23 = smov (!%p239_p3, %s1786_s23), 7 }
   0xf   : > { %s1787_s24 = sshll.u32 %s2514_s23, 2 }
  0x10   : > { %s2112_s27 = scalar_lea.vmem %s2497_s0, %s1787_s24  ;;  %s2117_s30 = scalar_lea.vmem %s2501_s4, %s1787_s24 }
  0x12   : > { %v2064_v0 = vmov 0.0  }
  0x13   : > { %255 = vst [vmem:[%s2502_s5] sm:$0xff] %v2064_v0  ;;  %256 = vst [vmem:[%s2503_s6] sm:$0xff] %v2064_v0 }
  0x14 PF: > { %v1960_v1 = vld [vmem:[%s2498_s1 + $0x4] ss:$16 sps:$4 sm:$0xff]   ;;  %v1962_v2 = vld [vmem:[%s2498_s1 + $0xc] ss:$16 sps:$4 sm:$0xff]   ;;  %v2504_v3 = vmov 0   ;;  %vm317_vm0 = vcmask 130048   ;;  %v267_v42 = vlaneseq }
  0x15   : > { %356 = vmatprep.mubr.bf16.mxu0 %v2504_v3  ;;  %409 = vmatprep.mubr.bf16.mxu1 %v2504_v3  ;;  %v1964_v4 = vld [vmem:[%s2498_s1] ss:$16 sps:$4 sm:$0xff]   ;;  %v1965_v5 = vld [vmem:[%s2498_s1 + $0x8] ss:$16 sps:$4 sm:$0xff]   ;;  %v2148_v8 = vld [vmem:[%s2499_s2 + $0xe4] ss:$16 sps:$4 sm:$0xff]  }
  0x16   : > { %338 = vmatprep.subr.bf16.mxu0 %v1960_v1  ;;  %391 = vmatprep.subr.bf16.mxu1 %v1962_v2  ;;  %v1966_v6 = vld [vmem:[%s2112_s27] sm:$0xff]   ;;  %v2153_v9 = vld [vmem:[%s2499_s2 + $0xe8] ss:$16 sps:$4 sm:$0xff]   ;;  %v2159_v10 = vld [vmem:[%s2499_s2 + $0xec] ss:$16 sps:$4 sm:$0xff]   ;;  %v268_v43 = vshrl.u32 %v267_v42, 7 }
  0x17   : > { %339 = vmatpush1.bf16.msra.mxu0 %v1964_v4  ;;  %392 = vmatpush1.bf16.msra.mxu1 %v1965_v5  ;;  %v2143_v7 = vld [vmem:[%s2499_s2 + $0xe0] ss:$16 sps:$4 sm:$0xff]   ;;  %v2166_v11 = vld [vmem:[%s2499_s2 + $0xc4] ss:$16 sps:$4 sm:$0xff]   ;;  %v2178_v13 = vld [vmem:[%s2499_s2 + $0xcc] ss:$16 sps:$4 sm:$0xff]  }
  0x18   : > { %687 = vmatprep.subr.bf16.mxu0 %v2148_v8  ;;  %728 = vmatprep.subr.bf16.mxu1 %v2159_v10  ;;  %v2173_v12 = vld [vmem:[%s2499_s2 + $0xc0] ss:$16 sps:$4 sm:$0xff]   ;;  %v2185_v14 = vld [vmem:[%s2499_s2 + $0xc8] ss:$16 sps:$4 sm:$0xff]   ;;  %v2191_v15 = vld [vmem:[%s2499_s2 + $0xa4] ss:$16 sps:$4 sm:$0xff]  }
  0x19   : > { %v2197_v16 = vld [vmem:[%s2499_s2 + $0xac] ss:$16 sps:$4 sm:$0xff]   ;;  %v2204_v17 = vld [vmem:[%s2499_s2 + $0xa0] ss:$16 sps:$4 sm:$0xff]   ;;  %v2209_v18 = vld [vmem:[%s2499_s2 + $0xa8] ss:$16 sps:$4 sm:$0xff]  }
  0x1a   : > { %1797 = vmatmul.mubr.msk.bf16.vlgmr.msra.gmra.mxu0 %vm317_vm0, %v1966_v6  ;;  %1799 = vmatmul.mubr.msk.bf16.vlgmr.msra.gmra.mxu1 %vm317_vm0, %v1966_v6  ;;  %v2216_v19 = vld [vmem:[%s2499_s2 + $0x84] ss:$16 sps:$4 sm:$0xff]   ;;  %v2222_v20 = vld [vmem:[%s2499_s2 + $0x8c] ss:$16 sps:$4 sm:$0xff]   ;;  %v2227_v21 = vld [vmem:[%s2499_s2 + $0x80] ss:$16 sps:$4 sm:$0xff]  }
  0x1b   : > { %688 = vmatpush1.bf16.msra.mxu0 %v2143_v7  ;;  %729 = vmatpush1.bf16.msra.mxu1 %v2153_v9  ;;  %v2233_v22 = vld [vmem:[%s2499_s2 + $0x88] ss:$16 sps:$4 sm:$0xff]   ;;  %v2238_v23 = vld [vmem:[%s2499_s2 + $0x64] ss:$16 sps:$4 sm:$0xff]   ;;  %v2247_v25 = vld [vmem:[%s2499_s2 + $0x6c] ss:$16 sps:$4 sm:$0xff]  }
  0x1c   : > { %689 = vmatprep.subr.bf16.mxu0 %v2166_v11  ;;  %730 = vmatprep.subr.bf16.mxu1 %v2178_v13  ;;  %v1997_v24 = vld [vmem:[%s2112_s27 + $0x8] sm:$0xff]   ;;  %v2255_v26 = vld [vmem:[%s2499_s2 + $0x60] ss:$16 sps:$4 sm:$0xff]   ;;  %v2268_v28 = vld [vmem:[%s2499_s2 + $0x44] ss:$16 sps:$4 sm:$0xff]   ;;  %v277_v44 = vsub.s32 2, %v268_v43 }
  0x1d   : > { %366 = vmatprep.mubr.bf16.mxu0 %v2504_v3  ;;  %419 = vmatprep.mubr.bf16.mxu1 %v2504_v3  ;;  %v2263_v27 = vld [vmem:[%s2499_s2 + $0x68] ss:$16 sps:$4 sm:$0xff]   ;;  %v2274_v29 = vld [vmem:[%s2499_s2 + $0x4c] ss:$16 sps:$4 sm:$0xff]   ;;  %v2281_v30 = vld [vmem:[%s2499_s2 + $0x40] ss:$16 sps:$4 sm:$0xff]  }
  0x1e   : > { %v2288_v31 = vld [vmem:[%s2499_s2 + $0x48] ss:$16 sps:$4 sm:$0xff]   ;;  %v2293_v32 = vld [vmem:[%s2499_s2 + $0x24] ss:$16 sps:$4 sm:$0xff]   ;;  %v2299_v33 = vld [vmem:[%s2499_s2 + $0x2c] ss:$16 sps:$4 sm:$0xff]  }
  0x1f   : > { %690 = vmatpush1.bf16.msra.mxu0 %v2173_v12  ;;  %731 = vmatpush1.bf16.msra.mxu1 %v2185_v14  ;;  %v2305_v34 = vld [vmem:[%s2499_s2 + $0x20] ss:$16 sps:$4 sm:$0xff]   ;;  %v2312_v35 = vld [vmem:[%s2499_s2 + $0x28] ss:$16 sps:$4 sm:$0xff]   ;;  %v2317_v36 = vld [vmem:[%s2499_s2 + $0x4] ss:$16 sps:$4 sm:$0xff]  }
  0x20   : > { %691 = vmatprep.subr.bf16.mxu0 %v2191_v15  ;;  %732 = vmatprep.subr.bf16.mxu1 %v2197_v16  ;;  %v2323_v37 = vld [vmem:[%s2499_s2 + $0xc] ss:$16 sps:$4 sm:$0xff]   ;;  %v2329_v38 = vld [vmem:[%s2499_s2] ss:$16 sps:$4 sm:$0xff]   ;;  %v2339_v40 = vld [vmem:[%s2499_s2 + $0x8] ss:$16 sps:$4 sm:$0xff]  }
  0x21   : > { %v486_v39 = vld [vmem:[%s2502_s5] sm:$0xff]  ;;  %v269_v45 = vsub.s32 0, %v268_v43  ;;  %v281_v46 = vsub.s32 3, %v268_v43  ;;  %v273_v51 = vsub.s32 1, %v268_v43 }
  0x22   : > { %1798 = vmatmul.mubr.msk.bf16.gmra.mxu0 %vm317_vm0, %v1997_v24  ;;  %1800 = vmatmul.mubr.msk.bf16.gmra.mxu1 %vm317_vm0, %v1997_v24  ;;  %v494_v41 = vpack.c.bf16 %v486_v39, %v486_v39  ;;  %v265_v47 = vld [vmem:[%s2500_s3] sm:$0xf] }
  0x23   : > { %692 = vmatpush1.bf16.msra.mxu0 %v2204_v17  ;;  %733 = vmatpush1.bf16.msra.mxu1 %v2209_v18  ;;  %v278_v50 = vrot.slane %v265_v47, %v277_v44  ;;  %v270_v54 = vrot.slane %v265_v47, %v269_v45  ;;  %v282_v55 = vrot.slane %v265_v47, %v281_v46 }
  0x24   : > { %693 = vmatprep.subr.bf16.mxu0 %v2216_v19  ;;  %734 = vmatprep.subr.bf16.mxu1 %v2222_v20  ;;  %v274_v58 = vrot.slane %v265_v47, %v273_v51 }
  0x25   : > { %719 = vmatprep.mubr.bf16.mxu0 %v2504_v3  ;;  %760 = vmatprep.mubr.bf16.mxu1 %v2504_v3 }
  0x27   : > { %694 = vmatpush1.bf16.msra.mxu0 %v2227_v21  ;;  %735 = vmatpush1.bf16.msra.mxu1 %v2233_v22 }
  0x28   : > { %695 = vmatprep.subr.bf16.mxu0 %v2238_v23  ;;  %736 = vmatprep.subr.bf16.mxu1 %v2247_v25 }
  0x2b   : > { %696 = vmatpush1.bf16.msra.mxu0 %v2255_v26  ;;  %737 = vmatpush1.bf16.msra.mxu1 %v2263_v27 }
  0x2c   : > { %697 = vmatprep.subr.bf16.mxu0 %v2268_v28  ;;  %738 = vmatprep.subr.bf16.mxu1 %v2274_v29 }
  0x2f   : > { %698 = vmatpush1.bf16.msra.mxu0 %v2281_v30  ;;  %739 = vmatpush1.bf16.msra.mxu1 %v2288_v31 }
  0x30   : > { %699 = vmatprep.subr.bf16.mxu0 %v2293_v32  ;;  %740 = vmatprep.subr.bf16.mxu1 %v2299_v33 }
  0x33   : > { %700 = vmatpush1.bf16.msra.mxu0 %v2305_v34  ;;  %741 = vmatpush1.bf16.msra.mxu1 %v2312_v35 }
  0x34   : > { %701 = vmatprep.subr.bf16.mxu0 %v2317_v36  ;;  %742 = vmatprep.subr.bf16.mxu1 %v2323_v37 }
  0x37   : > { %702 = vmatpush1.bf16.msra.mxu0 %v2329_v38  ;;  %743 = vmatpush1.bf16.msra.mxu1 %v2339_v40 }
  0x38   : > { %992 = vmatprep.subr.bf16.mxu0 %v2148_v8  ;;  %1033 = vmatprep.subr.bf16.mxu1 %v2159_v10 }
  0x3a   : > { %720 = vmatmul.mubr.bf16.vlgmr.msra.gmra.mxu0 %v494_v41  ;;  %761 = vmatmul.mubr.bf16.vlgmr.msra.gmra.mxu1 %v494_v41 }
  0x3b   : > { %993 = vmatpush1.bf16.msra.mxu0 %v2143_v7  ;;  %1034 = vmatpush1.bf16.msra.mxu1 %v2153_v9 }
  0x3c   : > { %994 = vmatprep.subr.bf16.mxu0 %v2166_v11  ;;  %1035 = vmatprep.subr.bf16.mxu1 %v2178_v13 }
  0x3d   : > { %1024 = vmatprep.mubr.bf16.mxu0 %v2504_v3  ;;  %1065 = vmatprep.mubr.bf16.mxu1 %v2504_v3 }
  0x3f   : > { %995 = vmatpush1.bf16.msra.mxu0 %v2173_v12  ;;  %1036 = vmatpush1.bf16.msra.mxu1 %v2185_v14 }
  0x40   : > { %996 = vmatprep.subr.bf16.mxu0 %v2191_v15  ;;  %1037 = vmatprep.subr.bf16.mxu1 %v2197_v16 }
  0x43   : > { %997 = vmatpush1.bf16.msra.mxu0 %v2204_v17  ;;  %1038 = vmatpush1.bf16.msra.mxu1 %v2209_v18 }
  0x44   : > { %998 = vmatprep.subr.bf16.mxu0 %v2216_v19  ;;  %1039 = vmatprep.subr.bf16.mxu1 %v2222_v20 }
  0x47   : > { %999 = vmatpush1.bf16.msra.mxu0 %v2227_v21  ;;  %1040 = vmatpush1.bf16.msra.mxu1 %v2233_v22 }
  0x48   : > { %1000 = vmatprep.subr.bf16.mxu0 %v2238_v23  ;;  %1041 = vmatprep.subr.bf16.mxu1 %v2247_v25 }
  0x4b   : > { %1001 = vmatpush1.bf16.msra.mxu0 %v2255_v26  ;;  %1042 = vmatpush1.bf16.msra.mxu1 %v2263_v27 }
  0x4c   : > { %1002 = vmatprep.subr.bf16.mxu0 %v2268_v28  ;;  %1043 = vmatprep.subr.bf16.mxu1 %v2274_v29 }
  0x4f   : > { %1003 = vmatpush1.bf16.msra.mxu0 %v2281_v30  ;;  %1044 = vmatpush1.bf16.msra.mxu1 %v2288_v31 }
  0x50   : > { %1004 = vmatprep.subr.bf16.mxu0 %v2293_v32  ;;  %1045 = vmatprep.subr.bf16.mxu1 %v2299_v33 }
  0x53   : > { %1005 = vmatpush1.bf16.msra.mxu0 %v2305_v34  ;;  %1046 = vmatpush1.bf16.msra.mxu1 %v2312_v35 }
  0x54   : > { %1006 = vmatprep.subr.bf16.mxu0 %v2317_v36  ;;  %1047 = vmatprep.subr.bf16.mxu1 %v2323_v37 }
  0x57   : > { %1007 = vmatpush1.bf16.msra.mxu0 %v2329_v38  ;;  %1048 = vmatpush1.bf16.msra.mxu1 %v2339_v40 }
  0x58   : > { %1298 = vmatprep.subr.bf16.mxu0 %v2148_v8  ;;  %1339 = vmatprep.subr.bf16.mxu1 %v2159_v10 }
  0xda   : > { %v358_v48 = vpop.f32.mrf.mxu0  ;;  %v411_v49 = vpop.f32.mrf.mxu1 }
  0xdc   : > { %v360_v52 = vpop.f32.mrf.mxu0  ;;  %v413_v53 = vpop.f32.mrf.mxu1 }
  0xde   : > { %v362_v56 = vpop.f32.mrf.mxu0  ;;  %v415_v57 = vpop.f32.mrf.mxu1 }
  0xdf   : > { %v363_v59 = vadd.f32 %v362_v56, %v270_v54  ;;  %v416_v60 = vadd.f32 %v415_v57, %v278_v50 }
  0xe0   : > { %v364_v61 = vpop.f32.mrf.mxu0  ;;  %v417_v62 = vpop.f32.mrf.mxu1 }
  0xe1   : > { %v365_v63 = vadd.f32 %v364_v61, %v274_v58  ;;  %v418_v0 = vadd.f32 %v417_v62, %v282_v55 }
  0xe2   : > { %v368_v4 = vpop.f32.mrf.mxu0  ;;  %v421_v5 = vpop.f32.mrf.mxu1 }
  0xe3   : > { %v2383_v1 = vpack.c.bf16 %v365_v63, %v363_v59  ;;  %v2385_v2 = vpack.c.bf16 %v418_v0, %v416_v60  ;;  %v369_v6 = vadd.f32 %v368_v4, %v270_v54  ;;  %v422_v24 = vadd.f32 %v421_v5, %v278_v50 }
  0xe4   : > { %v370_v39 = vpop.f32.mrf.mxu0  ;;  %v423_v41 = vpop.f32.mrf.mxu1  ;;  %v359_v0 = vadd.f32 %v358_v48, %v270_v54  ;;  %v361_v4 = vadd.f32 %v360_v52, %v274_v58 }
  0xe5   : > { %v371_v42 = vadd.f32 %v370_v39, %v274_v58  ;;  %v424_v43 = vadd.f32 %v423_v41, %v282_v55  ;;  %v412_v39 = vadd.f32 %v411_v49, %v278_v50  ;;  %v414_v41 = vadd.f32 %v413_v53, %v282_v55 }
  0xe6   : > { %v372_v44 = vpop.f32.mrf.mxu0  ;;  %v425_v45 = vpop.f32.mrf.mxu1  ;;  %v1942_v5 = vpack.c.bf16 %v361_v4, %v359_v0 }
  0xe7   : > { %v2387_v46 = vpack.c.bf16 %v371_v42, %v369_v6  ;;  %v373_v47 = vadd.f32 %v372_v44, %v270_v54  ;;  %v2389_v51 = vpack.c.bf16 %v424_v43, %v422_v24  ;;  %v426_v56 = vadd.f32 %v425_v45, %v278_v50 }
  0xe8   : > { %v374_v57 = vpop.f32.mrf.mxu0  ;;  %v427_v59 = vpop.f32.mrf.mxu1  ;;  %v490_v3 = vunpack.c.l.bf16 %v1942_v5  ;;  %v1943_v42 = vpack.c.bf16 %v414_v41, %v412_v39  ;;  %v491_v43 = vunpack.c.h.bf16 %v1942_v5 }
  0xe9   : > { %2508 = vst [vmem:[#allocation3_spill] sm:$0xff] %v2387_v46  ;;  %2509 = vst [vmem:[#allocation4_spill] sm:$0xff] %v2389_v51  ;;  %v375_v60 = vadd.f32 %v374_v57, %v274_v58  ;;  %v428_v61 = vadd.f32 %v427_v59, %v282_v55 }
  0xea   : > { %v492_v50 = vunpack.c.l.bf16 %v1943_v42 }
  0xeb   : > { %v2391_v62 = vpack.c.bf16 %v375_v60, %v373_v47  ;;  %v2393_v63 = vpack.c.bf16 %v428_v61, %v426_v56  ;;  %v493_v56 = vunpack.c.h.bf16 %v1943_v42 }
  0xfa   : > { %v721_v6 = vpop.f32.mrf.mxu0  ;;  %v762_v24 = vpop.f32.mrf.mxu1 }
  0xfb   : > { %v769_v44 = vadd.f32 %v721_v6, %v490_v3  ;;  %v771_v53 = vadd.f32 %v762_v24, %v492_v50 }
  0xfc   : > { %v723_v45 = vpop.f32.mrf.mxu0  ;;  %v764_v57 = vpop.f32.mrf.mxu1 }
  0xfd   : > { %v773_v51 = vmul.f32 0.5, %v769_v44  ;;  %v770_v46 = vadd.f32 %v723_v45, %v491_v43  ;;  %v772_v52 = vadd.f32 %v764_v57, %v493_v56  ;;  %v775_v54 = vmul.f32 0.5, %v771_v53 }
  0xfe   : > { %v725_v59 = vpop.f32.mrf.mxu0  ;;  %v766_v60 = vpop.f32.mrf.mxu1  ;;  %v2510_v57 = vmov 0  }
  0xff   : > { %2016 = vtanh.f32 %v773_v51  ;;  %v774_v47 = vmul.f32 0.5, %v770_v46  ;;  %v487_v46 = vld [vmem:[%s2503_s6] sm:$0xff]  ;;  %v796_v59 = vunpack.c.l.bf16 %v2383_v1 }
 0x100   : > { %v726_v48 = vpop.f32.mrf.mxu0  ;;  %v767_v49 = vpop.f32.mrf.mxu1 }
 0x101   : > { %2018 = vtanh.f32 %v774_v47  ;;  %v797_v48 = vunpack.c.h.bf16 %v2383_v1 }
 0x102   : > { %2020 = vtanh.f32 %v772_v52 }
 0x103   : > { %2022 = vtanh.f32 %v775_v54  ;;  %v799_v54 = vunpack.c.h.bf16 %v2385_v2 }
 0x10c   : > { %v2017_v3 = vpop.eup %2016 }
 0x10d   : > { %v779_v55 = vmul.f32 0.5, %v2017_v3 }
 0x10e   : > { %v2019_v58 = vpop.eup %2018 }
 0x10f   : > { %v782_v61 = vadd.f32 0.5, %v779_v55  ;;  %v780_v0 = vmul.f32 0.5, %v2019_v58  ;;  %v2021_v4 = vpop.eup %2020 }
 0x110   : > { %v2023_v6 = vpop.eup %2022 }
 0x111   : > { %v783_v51 = vadd.f32 0.5, %v780_v0  ;;  %v787_v39 = vmul.f32 %v2021_v4, %v782_v61  ;;  %v781_v42 = vmul.f32 0.5, %v2023_v6  ;;  %v798_v0 = vunpack.c.l.bf16 %v2385_v2 }
 0x113   : > { %v786_v5 = vmul.f32 %v783_v51, %v487_v46  ;;  %v784_v44 = vadd.f32 0.5, %v781_v42 }
 0x115   : > { %v2398_v41 = vadd.f32 %v787_v39, %v786_v5 }
 0x117   : > { %2024 = vtanh.f32 %v2398_v41 }
 0x124   : > { %v2025_v24 = vpop.eup %2024 }
 0x125   : > { %v790_v43 = vmul.f32 %v2025_v24, %v784_v44 }
 0x127   : > { %v791_v45 = vpack.c.bf16 %v790_v43, %v790_v43 }
 0x129   : > { %792 = vst [vmem:[%s2117_s30] sm:$0xf] %v791_v45  ;;  %1025 = vmatmul.mubr.bf16.vlgmr.msra.gmra.mxu0 %v791_v45  ;;  %1066 = vmatmul.mubr.bf16.vlgmr.msra.gmra.mxu1 %v791_v45 }
 0x12a   : > { %1299 = vmatpush1.bf16.msra.mxu0 %v2143_v7  ;;  %1340 = vmatpush1.bf16.msra.mxu1 %v2153_v9 }
 0x12b   : > { %1300 = vmatprep.subr.bf16.mxu0 %v2166_v11  ;;  %1341 = vmatprep.subr.bf16.mxu1 %v2178_v13 }
 0x12c   : > { %1330 = vmatprep.mubr.bf16.mxu0 %v2510_v57  ;;  %1371 = vmatprep.mubr.bf16.mxu1 %v2510_v57 }
 0x12e   : > { %1301 = vmatpush1.bf16.msra.mxu0 %v2173_v12  ;;  %1342 = vmatpush1.bf16.msra.mxu1 %v2185_v14 }
 0x12f   : > { %1302 = vmatprep.subr.bf16.mxu0 %v2191_v15  ;;  %1343 = vmatprep.subr.bf16.mxu1 %v2197_v16 }
 0x132   : > { %1303 = vmatpush1.bf16.msra.mxu0 %v2204_v17  ;;  %1344 = vmatpush1.bf16.msra.mxu1 %v2209_v18 }
 0x133   : > { %1304 = vmatprep.subr.bf16.mxu0 %v2216_v19  ;;  %1345 = vmatprep.subr.bf16.mxu1 %v2222_v20 }
 0x136   : > { %1305 = vmatpush1.bf16.msra.mxu0 %v2227_v21  ;;  %1346 = vmatpush1.bf16.msra.mxu1 %v2233_v22 }
 0x137   : > { %1306 = vmatprep.subr.bf16.mxu0 %v2238_v23  ;;  %1347 = vmatprep.subr.bf16.mxu1 %v2247_v25 }
 0x13a   : > { %1307 = vmatpush1.bf16.msra.mxu0 %v2255_v26  ;;  %1348 = vmatpush1.bf16.msra.mxu1 %v2263_v27 }
 0x13b   : > { %1308 = vmatprep.subr.bf16.mxu0 %v2268_v28  ;;  %1349 = vmatprep.subr.bf16.mxu1 %v2274_v29 }
 0x13e   : > { %1309 = vmatpush1.bf16.msra.mxu0 %v2281_v30  ;;  %1350 = vmatpush1.bf16.msra.mxu1 %v2288_v31 }
 0x13f   : > { %1310 = vmatprep.subr.bf16.mxu0 %v2293_v32  ;;  %1351 = vmatprep.subr.bf16.mxu1 %v2299_v33 }
 0x142   : > { %1311 = vmatpush1.bf16.msra.mxu0 %v2305_v34  ;;  %1352 = vmatpush1.bf16.msra.mxu1 %v2312_v35 }
 0x143   : > { %1312 = vmatprep.subr.bf16.mxu0 %v2317_v36  ;;  %1353 = vmatprep.subr.bf16.mxu1 %v2323_v37 }
 0x146   : > { %1313 = vmatpush1.bf16.msra.mxu0 %v2329_v38  ;;  %1354 = vmatpush1.bf16.msra.mxu1 %v2339_v40 }
 0x147   : > { %1604 = vmatprep.subr.bf16.mxu0 %v2148_v8  ;;  %1645 = vmatprep.subr.bf16.mxu1 %v2159_v10 }
 0x1e9   : > { %v1026_v47 = vpop.f32.mrf.mxu0  ;;  %v1067_v56 = vpop.f32.mrf.mxu1 }
 0x1ea   : > { %v1074_v60 = vadd.f32 %v1026_v47, %v796_v59  ;;  %v1076_v46 = vadd.f32 %v1067_v56, %v798_v0 }
 0x1eb   : > { %v1028_v52 = vpop.f32.mrf.mxu0  ;;  %v1069_v49 = vpop.f32.mrf.mxu1 }
 0x1ec   : > { %v1078_v50 = vmul.f32 0.5, %v1074_v60  ;;  %v1075_v53 = vadd.f32 %v1028_v52, %v797_v48  ;;  %v1077_v8 = vadd.f32 %v1069_v49, %v799_v54  ;;  %v1080_v51 = vmul.f32 0.5, %v1076_v46 }
 0x1ed   : > { %v1030_v3 = vpop.f32.mrf.mxu0  ;;  %v1071_v55 = vpop.f32.mrf.mxu1 }
 0x1ee   : > { %2026 = vtanh.f32 %v1078_v50  ;;  %v1079_v58 = vmul.f32 0.5, %v1075_v53  ;;  %v1408_v3 = vunpack.c.l.bf16 %v2391_v62 }
 0x1ef   : > { %v1031_v61 = vpop.f32.mrf.mxu0  ;;  %v1072_v10 = vpop.f32.mrf.mxu1 }
 0x1f0   : > { %2028 = vtanh.f32 %v1079_v58  ;;  %v1409_v61 = vunpack.c.h.bf16 %v2391_v62 }
 0x1f1   : > { %2030 = vtanh.f32 %v1077_v8 }
 0x1f2   : > { %2032 = vtanh.f32 %v1080_v51 }
 0x1fb   : > { %v2027_v1 = vpop.eup %2026 }
 0x1fc   : > { %v1084_v4 = vmul.f32 0.5, %v2027_v1  ;;  %v1411_v1 = vunpack.c.h.bf16 %v2393_v63 }
 0x1fd   : > { %v2029_v5 = vpop.eup %2028 }
 0x1fe   : > { %v1087_v39 = vadd.f32 0.5, %v1084_v4  ;;  %v1085_v6 = vmul.f32 0.5, %v2029_v5  ;;  %v2031_v42 = vpop.eup %2030 }
 0x1ff   : > { %v2033_v59 = vpop.eup %2032 }
 0x200   : > { %v1088_v44 = vadd.f32 0.5, %v1085_v6  ;;  %v1092_v24 = vmul.f32 %v2031_v42, %v1087_v39  ;;  %v1086_v2 = vmul.f32 0.5, %v2033_v59 }
 0x202   : > { %v1091_v43 = vmul.f32 %v1088_v44, %v2398_v41  ;;  %v1089_v47 = vadd.f32 0.5, %v1086_v2 }
 0x204   : > { %v2441_v45 = vadd.f32 %v1092_v24, %v1091_v43  ;;  %v1410_v24 = vunpack.c.l.bf16 %v2393_v63 }
 0x206   : > { %2034 = vtanh.f32 %v2441_v45 }
 0x213   : > { %v2035_v56 = vpop.eup %2034 }
 0x214   : > { %v1095_v60 = vmul.f32 %v2035_v56, %v1089_v47 }
 0x216   : > { %v1096_v48 = vpack.c.bf16 %v1095_v60, %v1095_v60 }
 0x218   : > { %1873 = vst [vmem:[%s2117_s30 + $0x4] sm:$0xf] %v1096_v48  ;;  %1331 = vmatmul.mubr.bf16.vlgmr.msra.gmra.mxu0 %v1096_v48  ;;  %1372 = vmatmul.mubr.bf16.vlgmr.msra.gmra.mxu1 %v1096_v48 }
 0x219   : > { %1605 = vmatpush1.bf16.msra.mxu0 %v2143_v7  ;;  %1646 = vmatpush1.bf16.msra.mxu1 %v2153_v9  ;;  %v2511_v7 = vld [vmem:[#allocation3_spill] sm:$0xff] }
 0x21a   : > { %1606 = vmatprep.subr.bf16.mxu0 %v2166_v11  ;;  %1647 = vmatprep.subr.bf16.mxu1 %v2178_v13  ;;  %v1102_v9 = vunpack.c.l.bf16 %v2511_v7 }
 0x21b   : > { %1636 = vmatprep.mubr.bf16.mxu0 %v2510_v57  ;;  %1677 = vmatprep.mubr.bf16.mxu1 %v2510_v57 }
 0x21d   : > { %1607 = vmatpush1.bf16.msra.mxu0 %v2173_v12  ;;  %1648 = vmatpush1.bf16.msra.mxu1 %v2185_v14  ;;  %v1103_v14 = vunpack.c.h.bf16 %v2511_v7 }
 0x21e   : > { %1608 = vmatprep.subr.bf16.mxu0 %v2191_v15  ;;  %1649 = vmatprep.subr.bf16.mxu1 %v2197_v16 }
 0x221   : > { %1609 = vmatpush1.bf16.msra.mxu0 %v2204_v17  ;;  %1650 = vmatpush1.bf16.msra.mxu1 %v2209_v18 }
 0x222   : > { %1610 = vmatprep.subr.bf16.mxu0 %v2216_v19  ;;  %1651 = vmatprep.subr.bf16.mxu1 %v2222_v20  ;;  %v2512_v19 = vld [vmem:[#allocation4_spill] sm:$0xff] }
 0x223   : > { %v1105_v20 = vunpack.c.h.bf16 %v2512_v19 }
 0x225   : > { %1611 = vmatpush1.bf16.msra.mxu0 %v2227_v21  ;;  %1652 = vmatpush1.bf16.msra.mxu1 %v2233_v22 }
 0x226   : > { %1612 = vmatprep.subr.bf16.mxu0 %v2238_v23  ;;  %1653 = vmatprep.subr.bf16.mxu1 %v2247_v25 }
 0x229   : > { %1613 = vmatpush1.bf16.msra.mxu0 %v2255_v26  ;;  %1654 = vmatpush1.bf16.msra.mxu1 %v2263_v27 }
 0x22a   : > { %1614 = vmatprep.subr.bf16.mxu0 %v2268_v28  ;;  %1655 = vmatprep.subr.bf16.mxu1 %v2274_v29  ;;  %v1104_v28 = vunpack.c.l.bf16 %v2512_v19 }
 0x22d   : > { %1615 = vmatpush1.bf16.msra.mxu0 %v2281_v30  ;;  %1656 = vmatpush1.bf16.msra.mxu1 %v2288_v31 }
 0x22e   : > { %1616 = vmatprep.subr.bf16.mxu0 %v2293_v32  ;;  %1657 = vmatprep.subr.bf16.mxu1 %v2299_v33 }
 0x231   : > { %1617 = vmatpush1.bf16.msra.mxu0 %v2305_v34  ;;  %1658 = vmatpush1.bf16.msra.mxu1 %v2312_v35 }
 0x232   : > { %1618 = vmatprep.subr.bf16.mxu0 %v2317_v36  ;;  %1659 = vmatprep.subr.bf16.mxu1 %v2323_v37 }
 0x235   : > { %1619 = vmatpush1.bf16.msra.mxu0 %v2329_v38  ;;  %1660 = vmatpush1.bf16.msra.mxu1 %v2339_v40 }
 0x2d8   : > { %v1332_v11 = vpop.f32.mrf.mxu0  ;;  %v1373_v12 = vpop.f32.mrf.mxu1 }
 0x2d9   : > { %v1380_v13 = vadd.f32 %v1332_v11, %v1102_v9  ;;  %v1382_v29 = vadd.f32 %v1373_v12, %v1104_v28 }
 0x2da   : > { %v1334_v15 = vpop.f32.mrf.mxu0  ;;  %v1375_v16 = vpop.f32.mrf.mxu1 }
 0x2db   : > { %v1384_v17 = vmul.f32 0.5, %v1380_v13  ;;  %v1381_v18 = vadd.f32 %v1334_v15, %v1103_v14  ;;  %v1383_v25 = vadd.f32 %v1375_v16, %v1105_v20  ;;  %v1386_v30 = vmul.f32 0.5, %v1382_v29 }
 0x2dc   : > { %v1336_v21 = vpop.f32.mrf.mxu0  ;;  %v1377_v22 = vpop.f32.mrf.mxu1 }
 0x2dd   : > { %2036 = vtanh.f32 %v1384_v17  ;;  %v1385_v23 = vmul.f32 0.5, %v1381_v18 }
 0x2de   : > { %v1337_v26 = vpop.f32.mrf.mxu0  ;;  %v1378_v27 = vpop.f32.mrf.mxu1 }
 0x2df   : > { %2038 = vtanh.f32 %v1385_v23 }
 0x2e0   : > { %2040 = vtanh.f32 %v1383_v25 }
 0x2e1   : > { %2042 = vtanh.f32 %v1386_v30 }
 0x2ea   : > { %v2037_v31 = vpop.eup %2036 }
 0x2eb   : > { %v1390_v32 = vmul.f32 0.5, %v2037_v31 }
 0x2ec   : > { %v2039_v33 = vpop.eup %2038 }
 0x2ed   : > { %v1393_v34 = vadd.f32 0.5, %v1390_v32  ;;  %v1391_v35 = vmul.f32 0.5, %v2039_v33  ;;  %v2041_v36 = vpop.eup %2040 }
 0x2ee   : > { %v2043_v57 = vpop.eup %2042 }
 0x2ef   : > { %v1394_v37 = vadd.f32 0.5, %v1391_v35  ;;  %v1398_v38 = vmul.f32 %v2041_v36, %v1393_v34  ;;  %v1392_v52 = vmul.f32 0.5, %v2043_v57 }
 0x2f1   : > { %v1397_v40 = vmul.f32 %v1394_v37, %v2441_v45  ;;  %v1395_v49 = vadd.f32 0.5, %v1392_v52 }
 0x2f3   : > { %v1399_v41 = vadd.f32 %v1398_v38, %v1397_v40 }
 0x2f5   : > { %2044 = vtanh.f32 %v1399_v41 }
 0x302   : > { %v2045_v50 = vpop.eup %2044 }
 0x303   : > { %v1401_v53 = vmul.f32 %v2045_v50, %v1395_v49 }
 0x305   : > { %v1402_v54 = vpack.c.bf16 %v1401_v53, %v1401_v53 }
 0x307   : > { %1906 = vst [vmem:[%s2117_s30 + $0x8] sm:$0xf] %v1402_v54  ;;  %1637 = vmatmul.mubr.bf16.vlgmr.msra.gmra.mxu0 %v1402_v54  ;;  %1678 = vmatmul.mubr.bf16.vlgmr.msra.gmra.mxu1 %v1402_v54 }
 0x3c7   : > { %v1638_v55 = vpop.f32.mrf.mxu0  ;;  %v1679_v58 = vpop.f32.mrf.mxu1 }
 0x3c8   : > { %v1686_v8 = vadd.f32 %v1638_v55, %v1408_v3  ;;  %v1688_v43 = vadd.f32 %v1679_v58, %v1410_v24 }
 0x3c9   : > { %v1640_v10 = vpop.f32.mrf.mxu0  ;;  %v1681_v0 = vpop.f32.mrf.mxu1 }
 0x3ca   : > { %v1690_v46 = vmul.f32 0.5, %v1686_v8  ;;  %v1687_v51 = vadd.f32 %v1640_v10, %v1409_v61  ;;  %v1689_v6 = vadd.f32 %v1681_v0, %v1411_v1  ;;  %v1692_v45 = vmul.f32 0.5, %v1688_v43 }
 0x3cb   : > { %v1642_v4 = vpop.f32.mrf.mxu0  ;;  %v1683_v5 = vpop.f32.mrf.mxu1 }
 0x3cc   : > { %2046 = vtanh.f32 %v1690_v46  ;;  %v1691_v39 = vmul.f32 0.5, %v1687_v51 }
 0x3cd   : > { %v1643_v42 = vpop.f32.mrf.mxu0  ;;  %v1684_v44 = vpop.f32.mrf.mxu1 }
 0x3ce   : > { %2048 = vtanh.f32 %v1691_v39 }
 0x3cf   : > { %2050 = vtanh.f32 %v1689_v6 }
 0x3d0   : > { %2052 = vtanh.f32 %v1692_v45 }
 0x3d9   : > { %v2047_v62 = vpop.eup %2046 }
 0x3da   : > { %v1696_v59 = vmul.f32 0.5, %v2047_v62 }
 0x3db   : > { %v2049_v2 = vpop.eup %2048 }
 0x3dc   : > { %v1699_v47 = vadd.f32 0.5, %v1696_v59  ;;  %v1697_v56 = vmul.f32 0.5, %v2049_v2  ;;  %v2051_v60 = vpop.eup %2050 }
 0x3dd   : > { %v2053_v63 = vpop.eup %2052 }
 0x3de   : > { %v1700_v48 = vadd.f32 0.5, %v1697_v56  ;;  %v1704_v7 = vmul.f32 %v2051_v60, %v1699_v47  ;;  %v1698_v12 = vmul.f32 0.5, %v2053_v63 }
 0x3e0   : > { %v1703_v9 = vmul.f32 %v1700_v48, %v1399_v41  ;;  %v1701_v13 = vadd.f32 0.5, %v1698_v12 }
 0x3e2   : > { %v1705_v11 = vadd.f32 %v1704_v7, %v1703_v9 }
 0x3e4   : > { %2054 = vtanh.f32 %v1705_v11  ;;  %1712 = vst [vmem:[%s2503_s6] sm:$0xff] %v1705_v11 }
 0x3f1   : > { %v2055_v14 = vpop.eup %2054 }
 0x3f2   : > { %v1707_v15 = vmul.f32 %v2055_v14, %v1701_v13 }
 0x3f4   : > { %v1708_v16 = vpack.c.bf16 %v1707_v15, %v1707_v15  ;;  %1711 = vst [vmem:[%s2502_s5] sm:$0xff] %v1707_v15 }
 0x3f6   : > { %1939 = vst [vmem:[%s2117_s30 + $0xc] sm:$0xf] %v1708_v16 }
 0x3f7 PF: > { %s17_s21 = sadd.s32 1, %s2062_s21  }
 0x3f8   : > { %p14_p5 = scmp.ge.s32.totalorder %s17_s21, 4  }
 0x3fa   :  { %16 = sbr.rel (!%p14_p5) target bundleno = 1 (0x1), region = 92 }

// kernel: custom_lstm_forward.3
= control target key start
LH: loop header
LB: loop body
LE: loop exit
PB: predicated region body
PF: predicated region fallthrough
CT: control target
= control target key end

     0   :  { %s2329_s21 = smov 0   ;;  %s2805_s0 = inlined_call_operand.vmem [shape: bf16[8,8,128], index: 0, kind: input, shape index: {}]   ;;  %s2806_s1 = inlined_call_operand.vmem [shape: bf16[128,512], index: 1, kind: input, shape index: {}]   ;;  %s2807_s2 = inlined_call_operand.vmem [shape: bf16[128,512], index: 2, kind: input, shape index: {}]   ;;  %s2808_s3 = inlined_call_operand.vmem [shape: f32[1,512], index: 3, kind: input, shape index: {}]   ;;  %s2809_s4 = inlined_call_operand.vmem [shape: f32[8,8,128], index: 4, kind: output, shape index: {0}]   ;;  %s2810_s5 = inlined_call_operand.vmem [shape: f32[8,128], index: 5, kind: output, shape index: {1}]   ;;  %s2811_s6 = inlined_call_operand.vmem [shape: f32[8,128], index: 6, kind: output, shape index: {2}]  }
   0x1 LB: > { %s1943_s22 = sadd.s32 4294967295, %s2290_s21   ;;  %p1947_p0 = scmp.ge.s32.totalorder %s2290_s21, 1  ;;  %s2290_s21 = sphi %s2329_s21, %s17_s21  }
   0x2   : > { %p208_p1 = scmp.lt.s32.totalorder %s2290_s21, 3 }
   0x4   : > { %p209_p2 = pnand %p1947_p0, %p208_p1 }
   0x6   : > { %212 = sbr.rel (%p209_p2) target bundleno = 1041 (0x411), region = 36 }
   0xb   : > { %s1948_s23 = sshll.u32 %s1943_s22, 2  ;;  %p1952_p4 = scmp.ne.s32.totalorder %s1943_s22, 0 }
   0xc   : > { %p239_p3 = scmp.lt.s32.totalorder %s1948_s23, 7 }
   0xd   : > { %254 = sbr.rel (%p1952_p4) target bundleno = 20 (0x14), region = 40 }
   0xe   : > { %s2822_s23 = smov (!%p239_p3, %s1948_s23), 7 }
   0xf   : > { %s1949_s24 = sshll.u32 %s2822_s23, 2  ;;  %s1951_s25 = sshll.u32 %s2822_s23, 3 }
  0x10   : > { %s2340_s28 = scalar_lea.vmem %s2805_s0, %s1949_s24  ;;  %s2345_s7 = scalar_lea.vmem %s2809_s4, %s1951_s25 }
  0x12   : > { %v2292_v0 = vmov 0.0  }
  0x13   : > { %255 = vst [vmem:[%s2810_s5] sm:$0xff] %v2292_v0  ;;  %256 = vst [vmem:[%s2811_s6] sm:$0xff] %v2292_v0 }
  0x14 PF: > { %v2146_v1 = vld [vmem:[%s2806_s1 + $0xe4] ss:$16 sps:$4 sm:$0xff]   ;;  %v2148_v2 = vld [vmem:[%s2806_s1 + $0xec] ss:$16 sps:$4 sm:$0xff]   ;;  %v2812_v3 = vmov 0  }
  0x15   : > { %519 = vmatprep.mubr.bf16.mxu0 %v2812_v3  ;;  %572 = vmatprep.mubr.bf16.mxu1 %v2812_v3  ;;  %v2150_v4 = vld [vmem:[%s2806_s1 + $0xe0] ss:$16 sps:$4 sm:$0xff]   ;;  %v2151_v5 = vld [vmem:[%s2806_s1 + $0xe8] ss:$16 sps:$4 sm:$0xff]   ;;  %v2152_v6 = vld [vmem:[%s2806_s1 + $0xc4] ss:$16 sps:$4 sm:$0xff]  }
  0x16   : > { %487 = vmatprep.subr.bf16.mxu0 %v2146_v1  ;;  %540 = vmatprep.subr.bf16.mxu1 %v2148_v2  ;;  %v2154_v7 = vld [vmem:[%s2806_s1 + $0xcc] ss:$16 sps:$4 sm:$0xff]   ;;  %v2156_v8 = vld [vmem:[%s2806_s1 + $0xc0] ss:$16 sps:$4 sm:$0xff]   ;;  %v2157_v9 = vld [vmem:[%s2806_s1 + $0xc8] ss:$16 sps:$4 sm:$0xff]  }
  0x17   : > { %488 = vmatpush1.bf16.msra.mxu0 %v2150_v4  ;;  %541 = vmatpush1.bf16.msra.mxu1 %v2151_v5  ;;  %v2158_v10 = vld [vmem:[%s2806_s1 + $0xa4] ss:$16 sps:$4 sm:$0xff]   ;;  %v2160_v11 = vld [vmem:[%s2806_s1 + $0xac] ss:$16 sps:$4 sm:$0xff]   ;;  %v2162_v12 = vld [vmem:[%s2806_s1 + $0xa0] ss:$16 sps:$4 sm:$0xff]  }
  0x18   : > { %489 = vmatprep.subr.bf16.mxu0 %v2152_v6  ;;  %542 = vmatprep.subr.bf16.mxu1 %v2154_v7  ;;  %v2163_v13 = vld [vmem:[%s2806_s1 + $0xa8] ss:$16 sps:$4 sm:$0xff]   ;;  %v2164_v14 = vld [vmem:[%s2806_s1 + $0x84] ss:$16 sps:$4 sm:$0xff]   ;;  %v2166_v15 = vld [vmem:[%s2806_s1 + $0x8c] ss:$16 sps:$4 sm:$0xff]   ;;  %v295_v7 = vlaneseq }
  0x19   : > { %v2168_v16 = vld [vmem:[%s2806_s1 + $0x80] ss:$16 sps:$4 sm:$0xff]   ;;  %v2169_v17 = vld [vmem:[%s2806_s1 + $0x88] ss:$16 sps:$4 sm:$0xff]   ;;  %v2170_v18 = vld [vmem:[%s2806_s1 + $0x64] ss:$16 sps:$4 sm:$0xff]  }
  0x1a   : > { %v2172_v19 = vld [vmem:[%s2806_s1 + $0x6c] ss:$16 sps:$4 sm:$0xff]   ;;  %v2174_v20 = vld [vmem:[%s2806_s1 + $0x60] ss:$16 sps:$4 sm:$0xff]   ;;  %v2175_v21 = vld [vmem:[%s2806_s1 + $0x68] ss:$16 sps:$4 sm:$0xff]  }
  0x1b   : > { %490 = vmatpush1.bf16.msra.mxu0 %v2156_v8  ;;  %543 = vmatpush1.bf16.msra.mxu1 %v2157_v9  ;;  %v2176_v22 = vld [vmem:[%s2806_s1 + $0x44] ss:$16 sps:$4 sm:$0xff]   ;;  %v2178_v23 = vld [vmem:[%s2806_s1 + $0x4c] ss:$16 sps:$4 sm:$0xff]   ;;  %v2180_v24 = vld [vmem:[%s2806_s1 + $0x40] ss:$16 sps:$4 sm:$0xff]  }
  0x1c   : > { %491 = vmatprep.subr.bf16.mxu0 %v2158_v10  ;;  %544 = vmatprep.subr.bf16.mxu1 %v2160_v11  ;;  %v2181_v25 = vld [vmem:[%s2806_s1 + $0x48] ss:$16 sps:$4 sm:$0xff]   ;;  %v2182_v26 = vld [vmem:[%s2806_s1 + $0x24] ss:$16 sps:$4 sm:$0xff]   ;;  %v2184_v27 = vld [vmem:[%s2806_s1 + $0x2c] ss:$16 sps:$4 sm:$0xff]  }
  0x1d   : > { %v2186_v28 = vld [vmem:[%s2806_s1 + $0x20] ss:$16 sps:$4 sm:$0xff]   ;;  %v2187_v29 = vld [vmem:[%s2806_s1 + $0x28] ss:$16 sps:$4 sm:$0xff]   ;;  %v2188_v30 = vld [vmem:[%s2806_s1 + $0x4] ss:$16 sps:$4 sm:$0xff]  }
  0x1e   : > { %v2190_v31 = vld [vmem:[%s2806_s1 + $0xc] ss:$16 sps:$4 sm:$0xff]   ;;  %v2192_v32 = vld [vmem:[%s2806_s1] ss:$16 sps:$4 sm:$0xff]   ;;  %v2193_v33 = vld [vmem:[%s2806_s1 + $0x8] ss:$16 sps:$4 sm:$0xff]  }
  0x1f   : > { %492 = vmatpush1.bf16.msra.mxu0 %v2162_v12  ;;  %545 = vmatpush1.bf16.msra.mxu1 %v2163_v13  ;;  %v2454_v34 = vld [vmem:[%s2807_s2 + $0xe4] ss:$16 sps:$4 sm:$0xff]   ;;  %v2459_v35 = vld [vmem:[%s2807_s2 + $0xec] ss:$16 sps:$4 sm:$0xff]   ;;  %v2465_v37 = vld [vmem:[%s2807_s2 + $0xe0] ss:$16 sps:$4 sm:$0xff]  }
  0x20   : > { %493 = vmatprep.subr.bf16.mxu0 %v2164_v14  ;;  %546 = vmatprep.subr.bf16.mxu1 %v2166_v15  ;;  %v2194_v36 = vld [vmem:[%s2340_s28] sm:$0xff]   ;;  %v2470_v38 = vld [vmem:[%s2807_s2 + $0xe8] ss:$16 sps:$4 sm:$0xff]   ;;  %v2482_v40 = vld [vmem:[%s2807_s2 + $0xcc] ss:$16 sps:$4 sm:$0xff]   ;;  %v296_v8 = vshrl.u32 %v295_v7, 7 }
  0x21   : > { %v2475_v39 = vld [vmem:[%s2807_s2 + $0xc4] ss:$16 sps:$4 sm:$0xff]   ;;  %v2487_v41 = vld [vmem:[%s2807_s2 + $0xc0] ss:$16 sps:$4 sm:$0xff]   ;;  %v2494_v42 = vld [vmem:[%s2807_s2 + $0xc8] ss:$16 sps:$4 sm:$0xff]  }
  0x22   : > { %v2501_v43 = vld [vmem:[%s2807_s2 + $0xa4] ss:$16 sps:$4 sm:$0xff]   ;;  %v2506_v44 = vld [vmem:[%s2807_s2 + $0xac] ss:$16 sps:$4 sm:$0xff]   ;;  %v2516_v46 = vld [vmem:[%s2807_s2 + $0xa0] ss:$16 sps:$4 sm:$0xff]  }
  0x23   : > { %494 = vmatpush1.bf16.msra.mxu0 %v2168_v16  ;;  %547 = vmatpush1.bf16.msra.mxu1 %v2169_v17  ;;  %v2225_v45 = vld [vmem:[%s2340_s28 + $0x8] sm:$0xff]   ;;  %v2528_v48 = vld [vmem:[%s2807_s2 + $0x84] ss:$16 sps:$4 sm:$0xff]   ;;  %v2540_v50 = vld [vmem:[%s2807_s2 + $0x80] ss:$16 sps:$4 sm:$0xff]   ;;  %v305_v9 = vsub.s32 2, %v296_v8 }
  0x24   : > { %495 = vmatprep.subr.bf16.mxu0 %v2170_v18  ;;  %548 = vmatprep.subr.bf16.mxu1 %v2172_v19  ;;  %v2521_v47 = vld [vmem:[%s2807_s2 + $0xa8] ss:$16 sps:$4 sm:$0xff]   ;;  %v2533_v49 = vld [vmem:[%s2807_s2 + $0x8c] ss:$16 sps:$4 sm:$0xff]   ;;  %v2552_v52 = vld [vmem:[%s2807_s2 + $0x64] ss:$16 sps:$4 sm:$0xff]  }
  0x25   : > { %v2545_v51 = vld [vmem:[%s2807_s2 + $0x88] ss:$16 sps:$4 sm:$0xff]   ;;  %v2557_v53 = vld [vmem:[%s2807_s2 + $0x6c] ss:$16 sps:$4 sm:$0xff]   ;;  %v2566_v54 = vld [vmem:[%s2807_s2 + $0x60] ss:$16 sps:$4 sm:$0xff]  }
  0x26   : > { %v2571_v55 = vld [vmem:[%s2807_s2 + $0x68] ss:$16 sps:$4 sm:$0xff]   ;;  %v2578_v56 = vld [vmem:[%s2807_s2 + $0x44] ss:$16 sps:$4 sm:$0xff]   ;;  %v2583_v57 = vld [vmem:[%s2807_s2 + $0x4c] ss:$16 sps:$4 sm:$0xff]  }
  0x27   : > { %496 = vmatpush1.bf16.msra.mxu0 %v2174_v20  ;;  %549 = vmatpush1.bf16.msra.mxu1 %v2175_v21  ;;  %v2590_v58 = vld [vmem:[%s2807_s2 + $0x40] ss:$16 sps:$4 sm:$0xff]   ;;  %v2595_v59 = vld [vmem:[%s2807_s2 + $0x48] ss:$16 sps:$4 sm:$0xff]   ;;  %v2602_v60 = vld [vmem:[%s2807_s2 + $0x24] ss:$16 sps:$4 sm:$0xff]  }
  0x28   : > { %497 = vmatprep.subr.bf16.mxu0 %v2176_v22  ;;  %550 = vmatprep.subr.bf16.mxu1 %v2178_v23  ;;  %v2607_v61 = vld [vmem:[%s2807_s2 + $0x2c] ss:$16 sps:$4 sm:$0xff]   ;;  %v2614_v62 = vld [vmem:[%s2807_s2 + $0x20] ss:$16 sps:$4 sm:$0xff]   ;;  %v2619_v63 = vld [vmem:[%s2807_s2 + $0x28] ss:$16 sps:$4 sm:$0xff]  }
  0x29   : > { %v2626_v0 = vld [vmem:[%s2807_s2 + $0x4] ss:$16 sps:$4 sm:$0xff]   ;;  %v2631_v1 = vld [vmem:[%s2807_s2 + $0xc] ss:$16 sps:$4 sm:$0xff]   ;;  %v2638_v2 = vld [vmem:[%s2807_s2] ss:$16 sps:$4 sm:$0xff]  }
  0x2a   : > { %v2643_v4 = vld [vmem:[%s2807_s2 + $0x8] ss:$16 sps:$4 sm:$0xff]   ;;  %v649_v5 = vld [vmem:[%s2810_s5] sm:$0xff]  ;;  %v297_v10 = vsub.s32 0, %v296_v8  ;;  %v309_v11 = vsub.s32 3, %v296_v8  ;;  %v301_v16 = vsub.s32 1, %v296_v8 }
  0x2b   : > { %498 = vmatpush1.bf16.msra.mxu0 %v2180_v24  ;;  %551 = vmatpush1.bf16.msra.mxu1 %v2181_v25  ;;  %v657_v6 = vpack.c.bf16 %v649_v5, %v649_v5  ;;  %v293_v12 = vld [vmem:[%s2808_s3] sm:$0xf] }
  0x2c   : > { %499 = vmatprep.subr.bf16.mxu0 %v2182_v26  ;;  %552 = vmatprep.subr.bf16.mxu1 %v2184_v27  ;;  %v306_v15 = vrot.slane %v293_v12, %v305_v9  ;;  %v298_v19 = vrot.slane %v293_v12, %v297_v10  ;;  %v310_v20 = vrot.slane %v293_v12, %v309_v11 }
  0x2d   : > { %v302_v23 = vrot.slane %v293_v12, %v301_v16 }
  0x2f   : > { %500 = vmatpush1.bf16.msra.mxu0 %v2186_v28  ;;  %553 = vmatpush1.bf16.msra.mxu1 %v2187_v29 }
  0x30   : > { %501 = vmatprep.subr.bf16.mxu0 %v2188_v30  ;;  %554 = vmatprep.subr.bf16.mxu1 %v2190_v31 }
  0x33   : > { %502 = vmatpush1.bf16.msra.mxu0 %v2192_v32  ;;  %555 = vmatpush1.bf16.msra.mxu1 %v2193_v33 }
  0x34   : > { %850 = vmatprep.subr.bf16.mxu0 %v2454_v34  ;;  %891 = vmatprep.subr.bf16.mxu1 %v2459_v35 }
  0x36   : > { %520 = vmatmul.mubr.bf16.vlgmr.msra.gmra.mxu0 %v2194_v36  ;;  %573 = vmatmul.mubr.bf16.vlgmr.msra.gmra.mxu1 %v2194_v36 }
  0x37   : > { %851 = vmatpush1.bf16.msra.mxu0 %v2465_v37  ;;  %892 = vmatpush1.bf16.msra.mxu1 %v2470_v38 }
  0x38   : > { %852 = vmatprep.subr.bf16.mxu0 %v2475_v39  ;;  %893 = vmatprep.subr.bf16.mxu1 %v2482_v40 }
  0x39   : > { %529 = vmatprep.mubr.bf16.mxu0 %v2812_v3  ;;  %582 = vmatprep.mubr.bf16.mxu1 %v2812_v3 }
  0x3b   : > { %853 = vmatpush1.bf16.msra.mxu0 %v2487_v41  ;;  %894 = vmatpush1.bf16.msra.mxu1 %v2494_v42 }
  0x3c   : > { %854 = vmatprep.subr.bf16.mxu0 %v2501_v43  ;;  %895 = vmatprep.subr.bf16.mxu1 %v2506_v44 }
  0x3e   : > { %530 = vmatmul.mubr.bf16.gmra.mxu0 %v2225_v45  ;;  %583 = vmatmul.mubr.bf16.gmra.mxu1 %v2225_v45 }
  0x3f   : > { %855 = vmatpush1.bf16.msra.mxu0 %v2516_v46  ;;  %896 = vmatpush1.bf16.msra.mxu1 %v2521_v47 }
  0x40   : > { %856 = vmatprep.subr.bf16.mxu0 %v2528_v48  ;;  %897 = vmatprep.subr.bf16.mxu1 %v2533_v49 }
  0x41   : > { %882 = vmatprep.mubr.bf16.mxu0 %v2812_v3  ;;  %923 = vmatprep.mubr.bf16.mxu1 %v2812_v3 }
  0x43   : > { %857 = vmatpush1.bf16.msra.mxu0 %v2540_v50  ;;  %898 = vmatpush1.bf16.msra.mxu1 %v2545_v51 }
  0x44   : > { %858 = vmatprep.subr.bf16.mxu0 %v2552_v52  ;;  %899 = vmatprep.subr.bf16.mxu1 %v2557_v53 }
  0x47   : > { %859 = vmatpush1.bf16.msra.mxu0 %v2566_v54  ;;  %900 = vmatpush1.bf16.msra.mxu1 %v2571_v55 }
  0x48   : > { %860 = vmatprep.subr.bf16.mxu0 %v2578_v56  ;;  %901 = vmatprep.subr.bf16.mxu1 %v2583_v57 }
  0x4b   : > { %861 = vmatpush1.bf16.msra.mxu0 %v2590_v58  ;;  %902 = vmatpush1.bf16.msra.mxu1 %v2595_v59 }
  0x4c   : > { %862 = vmatprep.subr.bf16.mxu0 %v2602_v60  ;;  %903 = vmatprep.subr.bf16.mxu1 %v2607_v61 }
  0x4f   : > { %863 = vmatpush1.bf16.msra.mxu0 %v2614_v62  ;;  %904 = vmatpush1.bf16.msra.mxu1 %v2619_v63 }
  0x50   : > { %864 = vmatprep.subr.bf16.mxu0 %v2626_v0  ;;  %905 = vmatprep.subr.bf16.mxu1 %v2631_v1 }
  0x53   : > { %865 = vmatpush1.bf16.msra.mxu0 %v2638_v2  ;;  %906 = vmatpush1.bf16.msra.mxu1 %v2643_v4 }
  0x54   : > { %1155 = vmatprep.subr.bf16.mxu0 %v2454_v34  ;;  %1196 = vmatprep.subr.bf16.mxu1 %v2459_v35 }
  0x56   : > { %883 = vmatmul.mubr.bf16.vlgmr.msra.gmra.mxu0 %v657_v6  ;;  %924 = vmatmul.mubr.bf16.vlgmr.msra.gmra.mxu1 %v657_v6 }
  0x57   : > { %1156 = vmatpush1.bf16.msra.mxu0 %v2465_v37  ;;  %1197 = vmatpush1.bf16.msra.mxu1 %v2470_v38 }
  0x58   : > { %1157 = vmatprep.subr.bf16.mxu0 %v2475_v39  ;;  %1198 = vmatprep.subr.bf16.mxu1 %v2482_v40 }
  0x59   : > { %1187 = vmatprep.mubr.bf16.mxu0 %v2812_v3  ;;  %1228 = vmatprep.mubr.bf16.mxu1 %v2812_v3 }
  0x5b   : > { %1158 = vmatpush1.bf16.msra.mxu0 %v2487_v41  ;;  %1199 = vmatpush1.bf16.msra.mxu1 %v2494_v42 }
  0x5c   : > { %1159 = vmatprep.subr.bf16.mxu0 %v2501_v43  ;;  %1200 = vmatprep.subr.bf16.mxu1 %v2506_v44 }
  0x5f   : > { %1160 = vmatpush1.bf16.msra.mxu0 %v2516_v46  ;;  %1201 = vmatpush1.bf16.msra.mxu1 %v2521_v47 }
  0x60   : > { %1161 = vmatprep.subr.bf16.mxu0 %v2528_v48  ;;  %1202 = vmatprep.subr.bf16.mxu1 %v2533_v49 }
  0x63   : > { %1162 = vmatpush1.bf16.msra.mxu0 %v2540_v50  ;;  %1203 = vmatpush1.bf16.msra.mxu1 %v2545_v51 }
  0x64   : > { %1163 = vmatprep.subr.bf16.mxu0 %v2552_v52  ;;  %1204 = vmatprep.subr.bf16.mxu1 %v2557_v53 }
  0x67   : > { %1164 = vmatpush1.bf16.msra.mxu0 %v2566_v54  ;;  %1205 = vmatpush1.bf16.msra.mxu1 %v2571_v55 }
  0x68   : > { %1165 = vmatprep.subr.bf16.mxu0 %v2578_v56  ;;  %1206 = vmatprep.subr.bf16.mxu1 %v2583_v57 }
  0x6b   : > { %1166 = vmatpush1.bf16.msra.mxu0 %v2590_v58  ;;  %1207 = vmatpush1.bf16.msra.mxu1 %v2595_v59 }
  0x6c   : > { %1167 = vmatprep.subr.bf16.mxu0 %v2602_v60  ;;  %1208 = vmatprep.subr.bf16.mxu1 %v2607_v61 }
  0x6f   : > { %1168 = vmatpush1.bf16.msra.mxu0 %v2614_v62  ;;  %1209 = vmatpush1.bf16.msra.mxu1 %v2619_v63 }
  0x70   : > { %1169 = vmatprep.subr.bf16.mxu0 %v2626_v0  ;;  %1210 = vmatprep.subr.bf16.mxu1 %v2631_v1 }
  0x73   : > { %1170 = vmatpush1.bf16.msra.mxu0 %v2638_v2  ;;  %1211 = vmatpush1.bf16.msra.mxu1 %v2643_v4 }
  0x74   : > { %1461 = vmatprep.subr.bf16.mxu0 %v2454_v34  ;;  %1502 = vmatprep.subr.bf16.mxu1 %v2459_v35 }
  0xf6   : > { %v521_v13 = vpop.f32.mrf.mxu0  ;;  %v574_v14 = vpop.f32.mrf.mxu1 }
  0xf8   : > { %v523_v17 = vpop.f32.mrf.mxu0  ;;  %v576_v18 = vpop.f32.mrf.mxu1 }
  0xfa   : > { %v525_v21 = vpop.f32.mrf.mxu0  ;;  %v578_v22 = vpop.f32.mrf.mxu1 }
  0xfb   : > { %v526_v24 = vadd.f32 %v525_v21, %v298_v19  ;;  %v579_v25 = vadd.f32 %v578_v22, %v306_v15 }
  0xfc   : > { %v527_v26 = vpop.f32.mrf.mxu0  ;;  %v580_v27 = vpop.f32.mrf.mxu1 }
  0xfd   : > { %v528_v28 = vadd.f32 %v527_v26, %v302_v23  ;;  %v581_v29 = vadd.f32 %v580_v27, %v310_v20 }
  0xfe   : > { %v531_v30 = vpop.f32.mrf.mxu0  ;;  %v584_v31 = vpop.f32.mrf.mxu1 }
  0xff   : > { %v2691_v32 = vpack.c.bf16 %v528_v28, %v526_v24  ;;  %v2693_v33 = vpack.c.bf16 %v581_v29, %v579_v25  ;;  %v532_v36 = vadd.f32 %v531_v30, %v298_v19  ;;  %v585_v45 = vadd.f32 %v584_v31, %v306_v15 }
 0x100   : > { %v533_v5 = vpop.f32.mrf.mxu0  ;;  %v586_v6 = vpop.f32.mrf.mxu1  ;;  %v522_v29 = vadd.f32 %v521_v13, %v298_v19  ;;  %v524_v30 = vadd.f32 %v523_v17, %v302_v23 }
 0x101   : > { %v534_v7 = vadd.f32 %v533_v5, %v302_v23  ;;  %v587_v8 = vadd.f32 %v586_v6, %v310_v20  ;;  %v575_v5 = vadd.f32 %v574_v14, %v306_v15  ;;  %v577_v6 = vadd.f32 %v576_v18, %v310_v20 }
 0x102   : > { %v535_v9 = vpop.f32.mrf.mxu0  ;;  %v588_v10 = vpop.f32.mrf.mxu1  ;;  %v2128_v31 = vpack.c.bf16 %v524_v30, %v522_v29 }
 0x103   : > { %v2695_v11 = vpack.c.bf16 %v534_v7, %v532_v36  ;;  %v536_v12 = vadd.f32 %v535_v9, %v298_v19  ;;  %v2697_v16 = vpack.c.bf16 %v587_v8, %v585_v45  ;;  %v589_v21 = vadd.f32 %v588_v10, %v306_v15 }
 0x104   : > { %v537_v22 = vpop.f32.mrf.mxu0  ;;  %v590_v26 = vpop.f32.mrf.mxu1  ;;  %v653_v3 = vunpack.c.l.bf16 %v2128_v31  ;;  %v2129_v9 = vpack.c.bf16 %v577_v6, %v575_v5  ;;  %v654_v8 = vunpack.c.h.bf16 %v2128_v31 }
 0x105   : > { %2816 = vst [vmem:[#allocation3_spill] sm:$0xff] %v2695_v11  ;;  %2817 = vst [vmem:[#allocation4_spill] sm:$0xff] %v2697_v16  ;;  %v538_v24 = vadd.f32 %v537_v22, %v302_v23  ;;  %v591_v27 = vadd.f32 %v590_v26, %v310_v20 }
 0x106   : > { %v655_v15 = vunpack.c.l.bf16 %v2129_v9 }
 0x107   : > { %v2699_v25 = vpack.c.bf16 %v538_v24, %v536_v12  ;;  %v2701_v28 = vpack.c.bf16 %v591_v27, %v589_v21  ;;  %v656_v24 = vunpack.c.h.bf16 %v2129_v9 }
 0x116   : > { %v884_v36 = vpop.f32.mrf.mxu0  ;;  %v925_v7 = vpop.f32.mrf.mxu1 }
 0x117   : > { %v932_v45 = vadd.f32 %v884_v36, %v653_v3  ;;  %v934_v18 = vadd.f32 %v925_v7, %v655_v15 }
 0x118   : > { %v886_v10 = vpop.f32.mrf.mxu0  ;;  %v927_v16 = vpop.f32.mrf.mxu1 }
 0x119   : > { %v936_v11 = vmul.f32 0.5, %v932_v45  ;;  %v933_v22 = vadd.f32 %v886_v10, %v654_v8  ;;  %v935_v14 = vadd.f32 %v927_v16, %v656_v24  ;;  %v938_v19 = vmul.f32 0.5, %v934_v18 }
 0x11a   : > { %v888_v26 = vpop.f32.mrf.mxu0  ;;  %v929_v12 = vpop.f32.mrf.mxu1 }
 0x11b   : > { %2244 = vtanh.f32 %v936_v11  ;;  %v937_v21 = vmul.f32 0.5, %v933_v22  ;;  %v650_v11 = vld [vmem:[%s2811_s6] sm:$0xff]  ;;  %v2818_v22 = vmov 0   ;;  %v958_v26 = vunpack.c.l.bf16 %v2691_v32 }
 0x11c   : > { %v889_v13 = vpop.f32.mrf.mxu0  ;;  %v930_v17 = vpop.f32.mrf.mxu1 }
 0x11d   : > { %2246 = vtanh.f32 %v937_v21  ;;  %v959_v13 = vunpack.c.h.bf16 %v2691_v32 }
 0x11e   : > { %2248 = vtanh.f32 %v935_v14 }
 0x11f   : > { %2250 = vtanh.f32 %v938_v19  ;;  %v961_v19 = vunpack.c.h.bf16 %v2693_v33 }
 0x128   : > { %v2245_v20 = vpop.eup %2244 }
 0x129   : > { %v942_v3 = vmul.f32 0.5, %v2245_v20 }
 0x12a   : > { %v2247_v23 = vpop.eup %2246 }
 0x12b   : > { %v945_v27 = vadd.f32 0.5, %v942_v3  ;;  %v943_v29 = vmul.f32 0.5, %v2247_v23  ;;  %v2249_v31 = vpop.eup %2248 }
 0x12c   : > { %v2251_v36 = vpop.eup %2250 }
 0x12d   : > { %v946_v30 = vadd.f32 0.5, %v943_v29  ;;  %v950_v6 = vmul.f32 %v2249_v31, %v945_v27  ;;  %v944_v7 = vmul.f32 0.5, %v2251_v36  ;;  %v960_v29 = vunpack.c.l.bf16 %v2693_v33 }
 0x12f   : > { %v949_v5 = vmul.f32 %v946_v30, %v650_v11  ;;  %v947_v9 = vadd.f32 0.5, %v944_v7 }
 0x131   : > { %v2706_v16 = vadd.f32 %v950_v6, %v949_v5 }
 0x133   : > { %2252 = vtanh.f32 %v2706_v16 }
 0x140   : > { %v2253_v45 = vpop.eup %2252 }
 0x141   : > { %v953_v8 = vmul.f32 %v2253_v45, %v947_v9 }
 0x143   : > { %954 = vst [vmem:[%s2345_s7] sm:$0xff] %v953_v8  ;;  %v962_v10 = vpack.c.bf16 %v953_v8, %v953_v8 }
 0x145   : > { %1188 = vmatmul.mubr.bf16.vlgmr.msra.gmra.mxu0 %v962_v10  ;;  %1229 = vmatmul.mubr.bf16.vlgmr.msra.gmra.mxu1 %v962_v10 }
 0x146   : > { %1462 = vmatpush1.bf16.msra.mxu0 %v2465_v37  ;;  %1503 = vmatpush1.bf16.msra.mxu1 %v2470_v38 }
 0x147   : > { %1463 = vmatprep.subr.bf16.mxu0 %v2475_v39  ;;  %1504 = vmatprep.subr.bf16.mxu1 %v2482_v40 }
 0x148   : > { %1493 = vmatprep.mubr.bf16.mxu0 %v2818_v22  ;;  %1534 = vmatprep.mubr.bf16.mxu1 %v2818_v22 }
 0x14a   : > { %1464 = vmatpush1.bf16.msra.mxu0 %v2487_v41  ;;  %1505 = vmatpush1.bf16.msra.mxu1 %v2494_v42 }
 0x14b   : > { %1465 = vmatprep.subr.bf16.mxu0 %v2501_v43  ;;  %1506 = vmatprep.subr.bf16.mxu1 %v2506_v44 }
 0x14e   : > { %1466 = vmatpush1.bf16.msra.mxu0 %v2516_v46  ;;  %1507 = vmatpush1.bf16.msra.mxu1 %v2521_v47 }
 0x14f   : > { %1467 = vmatprep.subr.bf16.mxu0 %v2528_v48  ;;  %1508 = vmatprep.subr.bf16.mxu1 %v2533_v49 }
 0x152   : > { %1468 = vmatpush1.bf16.msra.mxu0 %v2540_v50  ;;  %1509 = vmatpush1.bf16.msra.mxu1 %v2545_v51 }
 0x153   : > { %1469 = vmatprep.subr.bf16.mxu0 %v2552_v52  ;;  %1510 = vmatprep.subr.bf16.mxu1 %v2557_v53 }
 0x156   : > { %1470 = vmatpush1.bf16.msra.mxu0 %v2566_v54  ;;  %1511 = vmatpush1.bf16.msra.mxu1 %v2571_v55 }
 0x157   : > { %1471 = vmatprep.subr.bf16.mxu0 %v2578_v56  ;;  %1512 = vmatprep.subr.bf16.mxu1 %v2583_v57 }
 0x15a   : > { %1472 = vmatpush1.bf16.msra.mxu0 %v2590_v58  ;;  %1513 = vmatpush1.bf16.msra.mxu1 %v2595_v59 }
 0x15b   : > { %1473 = vmatprep.subr.bf16.mxu0 %v2602_v60  ;;  %1514 = vmatprep.subr.bf16.mxu1 %v2607_v61 }
 0x15e   : > { %1474 = vmatpush1.bf16.msra.mxu0 %v2614_v62  ;;  %1515 = vmatpush1.bf16.msra.mxu1 %v2619_v63 }
 0x15f   : > { %1475 = vmatprep.subr.bf16.mxu0 %v2626_v0  ;;  %1516 = vmatprep.subr.bf16.mxu1 %v2631_v1 }
 0x162   : > { %1476 = vmatpush1.bf16.msra.mxu0 %v2638_v2  ;;  %1517 = vmatpush1.bf16.msra.mxu1 %v2643_v4 }
 0x163   : > { %1767 = vmatprep.subr.bf16.mxu0 %v2454_v34  ;;  %1808 = vmatprep.subr.bf16.mxu1 %v2459_v35 }
 0x205   : > { %v1189_v12 = vpop.f32.mrf.mxu0  ;;  %v1230_v21 = vpop.f32.mrf.mxu1 }
 0x206   : > { %v1237_v24 = vadd.f32 %v1189_v12, %v958_v26  ;;  %v1239_v11 = vadd.f32 %v1230_v21, %v960_v29 }
 0x207   : > { %v1191_v17 = vpop.f32.mrf.mxu0  ;;  %v1232_v14 = vpop.f32.mrf.mxu1 }
 0x208   : > { %v1241_v15 = vmul.f32 0.5, %v1237_v24  ;;  %v1238_v18 = vadd.f32 %v1191_v17, %v959_v13  ;;  %v1240_v34 = vadd.f32 %v1232_v14, %v961_v19  ;;  %v1243_v30 = vmul.f32 0.5, %v1239_v11 }
 0x209   : > { %v1193_v20 = vpop.f32.mrf.mxu0  ;;  %v1234_v3 = vpop.f32.mrf.mxu1 }
 0x20a   : > { %2254 = vtanh.f32 %v1241_v15  ;;  %v1242_v23 = vmul.f32 0.5, %v1238_v18  ;;  %v1570_v20 = vunpack.c.l.bf16 %v2699_v25 }
 0x20b   : > { %v1194_v27 = vpop.f32.mrf.mxu0  ;;  %v1235_v35 = vpop.f32.mrf.mxu1 }
 0x20c   : > { %2256 = vtanh.f32 %v1242_v23  ;;  %v1571_v27 = vunpack.c.h.bf16 %v2699_v25 }
 0x20d   : > { %2258 = vtanh.f32 %v1240_v34 }
 0x20e   : > { %2260 = vtanh.f32 %v1243_v30 }
 0x217   : > { %v2255_v32 = vpop.eup %2254 }
 0x218   : > { %v1247_v31 = vmul.f32 0.5, %v2255_v32  ;;  %v1573_v32 = vunpack.c.h.bf16 %v2701_v28 }
 0x219   : > { %v2257_v5 = vpop.eup %2256 }
 0x21a   : > { %v1250_v6 = vadd.f32 0.5, %v1247_v31  ;;  %v1248_v36 = vmul.f32 0.5, %v2257_v5  ;;  %v2259_v7 = vpop.eup %2258 }
 0x21b   : > { %v2261_v26 = vpop.eup %2260 }
 0x21c   : > { %v1251_v9 = vadd.f32 0.5, %v1248_v36  ;;  %v1255_v45 = vmul.f32 %v2259_v7, %v1250_v6  ;;  %v1249_v33 = vmul.f32 0.5, %v2261_v26 }
 0x21e   : > { %v1254_v8 = vmul.f32 %v1251_v9, %v2706_v16  ;;  %v1252_v12 = vadd.f32 0.5, %v1249_v33 }
 0x220   : > { %v2749_v10 = vadd.f32 %v1255_v45, %v1254_v8  ;;  %v1572_v45 = vunpack.c.l.bf16 %v2701_v28 }
 0x222   : > { %2262 = vtanh.f32 %v2749_v10 }
 0x22f   : > { %v2263_v21 = vpop.eup %2262 }
 0x230   : > { %v1258_v24 = vmul.f32 %v2263_v21, %v1252_v12 }
 0x232   : > { %2059 = vst [vmem:[%s2345_s7 + $0x8] sm:$0xff] %v1258_v24  ;;  %v1268_v13 = vpack.c.bf16 %v1258_v24, %v1258_v24 }
 0x234   : > { %1494 = vmatmul.mubr.bf16.vlgmr.msra.gmra.mxu0 %v1268_v13  ;;  %1535 = vmatmul.mubr.bf16.vlgmr.msra.gmra.mxu1 %v1268_v13 }
 0x235   : > { %1768 = vmatpush1.bf16.msra.mxu0 %v2465_v37  ;;  %1809 = vmatpush1.bf16.msra.mxu1 %v2470_v38  ;;  %v2819_v37 = vld [vmem:[#allocation3_spill] sm:$0xff] }
 0x236   : > { %1769 = vmatprep.subr.bf16.mxu0 %v2475_v39  ;;  %1810 = vmatprep.subr.bf16.mxu1 %v2482_v40  ;;  %v1264_v38 = vunpack.c.l.bf16 %v2819_v37 }
 0x237   : > { %1799 = vmatprep.mubr.bf16.mxu0 %v2818_v22  ;;  %1840 = vmatprep.mubr.bf16.mxu1 %v2818_v22 }
 0x239   : > { %1770 = vmatpush1.bf16.msra.mxu0 %v2487_v41  ;;  %1811 = vmatpush1.bf16.msra.mxu1 %v2494_v42  ;;  %v1265_v42 = vunpack.c.h.bf16 %v2819_v37 }
 0x23a   : > { %1771 = vmatprep.subr.bf16.mxu0 %v2501_v43  ;;  %1812 = vmatprep.subr.bf16.mxu1 %v2506_v44 }
 0x23d   : > { %1772 = vmatpush1.bf16.msra.mxu0 %v2516_v46  ;;  %1813 = vmatpush1.bf16.msra.mxu1 %v2521_v47 }
 0x23e   : > { %1773 = vmatprep.subr.bf16.mxu0 %v2528_v48  ;;  %1814 = vmatprep.subr.bf16.mxu1 %v2533_v49  ;;  %v2820_v48 = vld [vmem:[#allocation4_spill] sm:$0xff] }
 0x23f   : > { %v1267_v49 = vunpack.c.h.bf16 %v2820_v48 }
 0x241   : > { %1774 = vmatpush1.bf16.msra.mxu0 %v2540_v50  ;;  %1815 = vmatpush1.bf16.msra.mxu1 %v2545_v51 }
 0x242   : > { %1775 = vmatprep.subr.bf16.mxu0 %v2552_v52  ;;  %1816 = vmatprep.subr.bf16.mxu1 %v2557_v53 }
 0x245   : > { %1776 = vmatpush1.bf16.msra.mxu0 %v2566_v54  ;;  %1817 = vmatpush1.bf16.msra.mxu1 %v2571_v55 }
 0x246   : > { %1777 = vmatprep.subr.bf16.mxu0 %v2578_v56  ;;  %1818 = vmatprep.subr.bf16.mxu1 %v2583_v57  ;;  %v1266_v56 = vunpack.c.l.bf16 %v2820_v48 }
 0x249   : > { %1778 = vmatpush1.bf16.msra.mxu0 %v2590_v58  ;;  %1819 = vmatpush1.bf16.msra.mxu1 %v2595_v59 }
 0x24a   : > { %1779 = vmatprep.subr.bf16.mxu0 %v2602_v60  ;;  %1820 = vmatprep.subr.bf16.mxu1 %v2607_v61 }
 0x24d   : > { %1780 = vmatpush1.bf16.msra.mxu0 %v2614_v62  ;;  %1821 = vmatpush1.bf16.msra.mxu1 %v2619_v63 }
 0x24e   : > { %1781 = vmatprep.subr.bf16.mxu0 %v2626_v0  ;;  %1822 = vmatprep.subr.bf16.mxu1 %v2631_v1 }
 0x251   : > { %1782 = vmatpush1.bf16.msra.mxu0 %v2638_v2  ;;  %1823 = vmatpush1.bf16.msra.mxu1 %v2643_v4 }
 0x2f4   : > { %v1495_v39 = vpop.f32.mrf.mxu0  ;;  %v1536_v40 = vpop.f32.mrf.mxu1 }
 0x2f5   : > { %v1543_v41 = vadd.f32 %v1495_v39, %v1264_v38  ;;  %v1545_v57 = vadd.f32 %v1536_v40, %v1266_v56 }
 0x2f6   : > { %v1497_v43 = vpop.f32.mrf.mxu0  ;;  %v1538_v44 = vpop.f32.mrf.mxu1 }
 0x2f7   : > { %v1547_v46 = vmul.f32 0.5, %v1543_v41  ;;  %v1544_v47 = vadd.f32 %v1497_v43, %v1265_v42  ;;  %v1546_v53 = vadd.f32 %v1538_v44, %v1267_v49  ;;  %v1549_v58 = vmul.f32 0.5, %v1545_v57 }
 0x2f8   : > { %v1499_v50 = vpop.f32.mrf.mxu0  ;;  %v1540_v51 = vpop.f32.mrf.mxu1 }
 0x2f9   : > { %2264 = vtanh.f32 %v1547_v46  ;;  %v1548_v52 = vmul.f32 0.5, %v1544_v47 }
 0x2fa   : > { %v1500_v54 = vpop.f32.mrf.mxu0  ;;  %v1541_v55 = vpop.f32.mrf.mxu1 }
 0x2fb   : > { %2266 = vtanh.f32 %v1548_v52 }
 0x2fc   : > { %2268 = vtanh.f32 %v1546_v53 }
 0x2fd   : > { %2270 = vtanh.f32 %v1549_v58 }
 0x306   : > { %v2265_v59 = vpop.eup %2264 }
 0x307   : > { %v1553_v60 = vmul.f32 0.5, %v2265_v59 }
 0x308   : > { %v2267_v61 = vpop.eup %2266 }
 0x309   : > { %v1556_v62 = vadd.f32 0.5, %v1553_v60  ;;  %v1554_v63 = vmul.f32 0.5, %v2267_v61  ;;  %v2269_v0 = vpop.eup %2268 }
 0x30a   : > { %v2271_v22 = vpop.eup %2270 }
 0x30b   : > { %v1557_v1 = vadd.f32 0.5, %v1554_v63  ;;  %v1561_v2 = vmul.f32 %v2269_v0, %v1556_v62  ;;  %v1555_v17 = vmul.f32 0.5, %v2271_v22 }
 0x30d   : > { %v1560_v4 = vmul.f32 %v1557_v1, %v2749_v10  ;;  %v1558_v14 = vadd.f32 0.5, %v1555_v17 }
 0x30f   : > { %v1562_v16 = vadd.f32 %v1561_v2, %v1560_v4 }
 0x311   : > { %2272 = vtanh.f32 %v1562_v16 }
 0x31e   : > { %v2273_v15 = vpop.eup %2272 }
 0x31f   : > { %v1564_v18 = vmul.f32 %v2273_v15, %v1558_v14 }
 0x321   : > { %2092 = vst [vmem:[%s2345_s7 + $0x10] sm:$0xff] %v1564_v18  ;;  %v1574_v19 = vpack.c.bf16 %v1564_v18, %v1564_v18 }
 0x323   : > { %1800 = vmatmul.mubr.bf16.vlgmr.msra.gmra.mxu0 %v1574_v19  ;;  %1841 = vmatmul.mubr.bf16.vlgmr.msra.gmra.mxu1 %v1574_v19 }
 0x3e3   : > { %v1801_v3 = vpop.f32.mrf.mxu0  ;;  %v1842_v23 = vpop.f32.mrf.mxu1 }
 0x3e4   : > { %v1849_v34 = vadd.f32 %v1801_v3, %v1570_v20  ;;  %v1851_v8 = vadd.f32 %v1842_v23, %v1572_v45 }
 0x3e5   : > { %v1803_v35 = vpop.f32.mrf.mxu0  ;;  %v1844_v29 = vpop.f32.mrf.mxu1 }
 0x3e6   : > { %v1853_v11 = vmul.f32 0.5, %v1849_v34  ;;  %v1850_v30 = vadd.f32 %v1803_v35, %v1571_v27  ;;  %v1852_v36 = vadd.f32 %v1844_v29, %v1573_v32  ;;  %v1855_v10 = vmul.f32 0.5, %v1851_v8 }
 0x3e7   : > { %v1805_v31 = vpop.f32.mrf.mxu0  ;;  %v1846_v5 = vpop.f32.mrf.mxu1 }
 0x3e8   : > { %2274 = vtanh.f32 %v1853_v11  ;;  %v1854_v6 = vmul.f32 0.5, %v1850_v30 }
 0x3e9   : > { %v1806_v7 = vpop.f32.mrf.mxu0  ;;  %v1847_v9 = vpop.f32.mrf.mxu1 }
 0x3ea   : > { %2276 = vtanh.f32 %v1854_v6 }
 0x3eb   : > { %2278 = vtanh.f32 %v1852_v36 }
 0x3ec   : > { %2280 = vtanh.f32 %v1855_v10 }
 0x3f5   : > { %v2275_v25 = vpop.eup %2274 }
 0x3f6   : > { %v1859_v26 = vmul.f32 0.5, %v2275_v25 }
 0x3f7   : > { %v2277_v33 = vpop.eup %2276 }
 0x3f8   : > { %v1862_v12 = vadd.f32 0.5, %v1859_v26  ;;  %v1860_v21 = vmul.f32 0.5, %v2277_v33  ;;  %v2279_v24 = vpop.eup %2278 }
 0x3f9   : > { %v2281_v28 = vpop.eup %2280 }
 0x3fa   : > { %v1863_v13 = vadd.f32 0.5, %v1860_v21  ;;  %v1867_v37 = vmul.f32 %v2279_v24, %v1862_v12  ;;  %v1861_v40 = vmul.f32 0.5, %v2281_v28 }
 0x3fc   : > { %v1866_v38 = vmul.f32 %v1863_v13, %v1562_v16  ;;  %v1864_v41 = vadd.f32 0.5, %v1861_v40 }
 0x3fe   : > { %v1868_v39 = vadd.f32 %v1867_v37, %v1866_v38 }
 0x400   : > { %2282 = vtanh.f32 %v1868_v39  ;;  %1874 = vst [vmem:[%s2811_s6] sm:$0xff] %v1868_v39 }
 0x40d   : > { %v2283_v42 = vpop.eup %2282 }
 0x40e   : > { %v1870_v43 = vmul.f32 %v2283_v42, %v1864_v41 }
 0x410   : > { %2125 = vst [vmem:[%s2345_s7 + $0x18] sm:$0xff] %v1870_v43  ;;  %1873 = vst [vmem:[%s2810_s5] sm:$0xff] %v1870_v43 }
 0x411 PF: > { %s17_s21 = sadd.s32 1, %s2290_s21  }
 0x412   : > { %p14_p5 = scmp.ge.s32.totalorder %s17_s21, 4  }
 0x414   :  { %16 = sbr.rel (!%p14_p5) target bundleno = 1 (0x1), region = 92 }

// kernel: custom_lstm_forward.2
= control target key start
LH: loop header
LB: loop body
LE: loop exit
PB: predicated region body
PF: predicated region fallthrough
CT: control target
= control target key end

     0   :  { %s2101_s21 = smov 0   ;;  %s2497_s0 = inlined_call_operand.vmem [shape: bf16[8,8,16], index: 0, kind: input, shape index: {}]   ;;  %s2498_s1 = inlined_call_operand.vmem [shape: bf16[16,512], index: 1, kind: input, shape index: {}]   ;;  %s2499_s2 = inlined_call_operand.vmem [shape: bf16[128,512], index: 2, kind: input, shape index: {}]   ;;  %s2500_s3 = inlined_call_operand.vmem [shape: f32[1,512], index: 3, kind: input, shape index: {}]   ;;  %s2501_s4 = inlined_call_operand.vmem [shape: bf16[8,8,128], index: 4, kind: output, shape index: {0}]   ;;  %s2502_s5 = inlined_call_operand.vmem [shape: f32[8,128], index: 5, kind: output, shape index: {1}]   ;;  %s2503_s6 = inlined_call_operand.vmem [shape: f32[8,128], index: 6, kind: output, shape index: {2}]  }
   0x1 LB: > { %s1781_s22 = sadd.s32 4294967295, %s2062_s21   ;;  %p1785_p0 = scmp.ge.s32.totalorder %s2062_s21, 1  ;;  %s2062_s21 = sphi %s2101_s21, %s17_s21  }
   0x2   : > { %p208_p1 = scmp.lt.s32.totalorder %s2062_s21, 3 }
   0x4   : > { %p209_p2 = pnand %p1785_p0, %p208_p1 }
   0x6   : > { %212 = sbr.rel (%p209_p2) target bundleno = 1015 (0x3f7), region = 36 }
   0xb   : > { %s1786_s23 = sshll.u32 %s1781_s22, 2  ;;  %p1790_p4 = scmp.ne.s32.totalorder %s1781_s22, 0 }
   0xc   : > { %p239_p3 = scmp.lt.s32.totalorder %s1786_s23, 7 }
   0xd   : > { %254 = sbr.rel (%p1790_p4) target bundleno = 20 (0x14), region = 40 }
   0xe   : > { %s2514_s23 = smov (!%p239_p3, %s1786_s23), 7 }
   0xf   : > { %s1787_s24 = sshll.u32 %s2514_s23, 2 }
  0x10   : > { %s2112_s27 = scalar_lea.vmem %s2497_s0, %s1787_s24  ;;  %s2117_s30 = scalar_lea.vmem %s2501_s4, %s1787_s24 }
  0x12   : > { %v2064_v0 = vmov 0.0  }
  0x13   : > { %255 = vst [vmem:[%s2502_s5] sm:$0xff] %v2064_v0  ;;  %256 = vst [vmem:[%s2503_s6] sm:$0xff] %v2064_v0 }
  0x14 PF: > { %v1960_v1 = vld [vmem:[%s2498_s1 + $0x4] ss:$16 sps:$4 sm:$0xff]   ;;  %v1962_v2 = vld [vmem:[%s2498_s1 + $0xc] ss:$16 sps:$4 sm:$0xff]   ;;  %v2504_v3 = vmov 0   ;;  %vm317_vm0 = vcmask 130048   ;;  %v267_v42 = vlaneseq }
  0x15   : > { %356 = vmatprep.mubr.bf16.mxu0 %v2504_v3  ;;  %409 = vmatprep.mubr.bf16.mxu1 %v2504_v3  ;;  %v1964_v4 = vld [vmem:[%s2498_s1] ss:$16 sps:$4 sm:$0xff]   ;;  %v1965_v5 = vld [vmem:[%s2498_s1 + $0x8] ss:$16 sps:$4 sm:$0xff]   ;;  %v2148_v8 = vld [vmem:[%s2499_s2 + $0xe4] ss:$16 sps:$4 sm:$0xff]  }
  0x16   : > { %338 = vmatprep.subr.bf16.mxu0 %v1960_v1  ;;  %391 = vmatprep.subr.bf16.mxu1 %v1962_v2  ;;  %v1966_v6 = vld [vmem:[%s2112_s27] sm:$0xff]   ;;  %v2153_v9 = vld [vmem:[%s2499_s2 + $0xe8] ss:$16 sps:$4 sm:$0xff]   ;;  %v2159_v10 = vld [vmem:[%s2499_s2 + $0xec] ss:$16 sps:$4 sm:$0xff]   ;;  %v268_v43 = vshrl.u32 %v267_v42, 7 }
  0x17   : > { %339 = vmatpush1.bf16.msra.mxu0 %v1964_v4  ;;  %392 = vmatpush1.bf16.msra.mxu1 %v1965_v5  ;;  %v2143_v7 = vld [vmem:[%s2499_s2 + $0xe0] ss:$16 sps:$4 sm:$0xff]   ;;  %v2166_v11 = vld [vmem:[%s2499_s2 + $0xc4] ss:$16 sps:$4 sm:$0xff]   ;;  %v2178_v13 = vld [vmem:[%s2499_s2 + $0xcc] ss:$16 sps:$4 sm:$0xff]  }
  0x18   : > { %687 = vmatprep.subr.bf16.mxu0 %v2148_v8  ;;  %728 = vmatprep.subr.bf16.mxu1 %v2159_v10  ;;  %v2173_v12 = vld [vmem:[%s2499_s2 + $0xc0] ss:$16 sps:$4 sm:$0xff]   ;;  %v2185_v14 = vld [vmem:[%s2499_s2 + $0xc8] ss:$16 sps:$4 sm:$0xff]   ;;  %v2191_v15 = vld [vmem:[%s2499_s2 + $0xa4] ss:$16 sps:$4 sm:$0xff]  }
  0x19   : > { %v2197_v16 = vld [vmem:[%s2499_s2 + $0xac] ss:$16 sps:$4 sm:$0xff]   ;;  %v2204_v17 = vld [vmem:[%s2499_s2 + $0xa0] ss:$16 sps:$4 sm:$0xff]   ;;  %v2209_v18 = vld [vmem:[%s2499_s2 + $0xa8] ss:$16 sps:$4 sm:$0xff]  }
  0x1a   : > { %1797 = vmatmul.mubr.msk.bf16.vlgmr.msra.gmra.mxu0 %vm317_vm0, %v1966_v6  ;;  %1799 = vmatmul.mubr.msk.bf16.vlgmr.msra.gmra.mxu1 %vm317_vm0, %v1966_v6  ;;  %v2216_v19 = vld [vmem:[%s2499_s2 + $0x84] ss:$16 sps:$4 sm:$0xff]   ;;  %v2222_v20 = vld [vmem:[%s2499_s2 + $0x8c] ss:$16 sps:$4 sm:$0xff]   ;;  %v2227_v21 = vld [vmem:[%s2499_s2 + $0x80] ss:$16 sps:$4 sm:$0xff]  }
  0x1b   : > { %688 = vmatpush1.bf16.msra.mxu0 %v2143_v7  ;;  %729 = vmatpush1.bf16.msra.mxu1 %v2153_v9  ;;  %v2233_v22 = vld [vmem:[%s2499_s2 + $0x88] ss:$16 sps:$4 sm:$0xff]   ;;  %v2238_v23 = vld [vmem:[%s2499_s2 + $0x64] ss:$16 sps:$4 sm:$0xff]   ;;  %v2247_v25 = vld [vmem:[%s2499_s2 + $0x6c] ss:$16 sps:$4 sm:$0xff]  }
  0x1c   : > { %689 = vmatprep.subr.bf16.mxu0 %v2166_v11  ;;  %730 = vmatprep.subr.bf16.mxu1 %v2178_v13  ;;  %v1997_v24 = vld [vmem:[%s2112_s27 + $0x8] sm:$0xff]   ;;  %v2255_v26 = vld [vmem:[%s2499_s2 + $0x60] ss:$16 sps:$4 sm:$0xff]   ;;  %v2268_v28 = vld [vmem:[%s2499_s2 + $0x44] ss:$16 sps:$4 sm:$0xff]   ;;  %v277_v44 = vsub.s32 2, %v268_v43 }
  0x1d   : > { %366 = vmatprep.mubr.bf16.mxu0 %v2504_v3  ;;  %419 = vmatprep.mubr.bf16.mxu1 %v2504_v3  ;;  %v2263_v27 = vld [vmem:[%s2499_s2 + $0x68] ss:$16 sps:$4 sm:$0xff]   ;;  %v2274_v29 = vld [vmem:[%s2499_s2 + $0x4c] ss:$16 sps:$4 sm:$0xff]   ;;  %v2281_v30 = vld [vmem:[%s2499_s2 + $0x40] ss:$16 sps:$4 sm:$0xff]  }
  0x1e   : > { %v2288_v31 = vld [vmem:[%s2499_s2 + $0x48] ss:$16 sps:$4 sm:$0xff]   ;;  %v2293_v32 = vld [vmem:[%s2499_s2 + $0x24] ss:$16 sps:$4 sm:$0xff]   ;;  %v2299_v33 = vld [vmem:[%s2499_s2 + $0x2c] ss:$16 sps:$4 sm:$0xff]  }
  0x1f   : > { %690 = vmatpush1.bf16.msra.mxu0 %v2173_v12  ;;  %731 = vmatpush1.bf16.msra.mxu1 %v2185_v14  ;;  %v2305_v34 = vld [vmem:[%s2499_s2 + $0x20] ss:$16 sps:$4 sm:$0xff]   ;;  %v2312_v35 = vld [vmem:[%s2499_s2 + $0x28] ss:$16 sps:$4 sm:$0xff]   ;;  %v2317_v36 = vld [vmem:[%s2499_s2 + $0x4] ss:$16 sps:$4 sm:$0xff]  }
  0x20   : > { %691 = vmatprep.subr.bf16.mxu0 %v2191_v15  ;;  %732 = vmatprep.subr.bf16.mxu1 %v2197_v16  ;;  %v2323_v37 = vld [vmem:[%s2499_s2 + $0xc] ss:$16 sps:$4 sm:$0xff]   ;;  %v2329_v38 = vld [vmem:[%s2499_s2] ss:$16 sps:$4 sm:$0xff]   ;;  %v2339_v40 = vld [vmem:[%s2499_s2 + $0x8] ss:$16 sps:$4 sm:$0xff]  }
  0x21   : > { %v486_v39 = vld [vmem:[%s2502_s5] sm:$0xff]  ;;  %v269_v45 = vsub.s32 0, %v268_v43  ;;  %v281_v46 = vsub.s32 3, %v268_v43  ;;  %v273_v51 = vsub.s32 1, %v268_v43 }
  0x22   : > { %1798 = vmatmul.mubr.msk.bf16.gmra.mxu0 %vm317_vm0, %v1997_v24  ;;  %1800 = vmatmul.mubr.msk.bf16.gmra.mxu1 %vm317_vm0, %v1997_v24  ;;  %v494_v41 = vpack.c.bf16 %v486_v39, %v486_v39  ;;  %v265_v47 = vld [vmem:[%s2500_s3] sm:$0xf] }
  0x23   : > { %692 = vmatpush1.bf16.msra.mxu0 %v2204_v17  ;;  %733 = vmatpush1.bf16.msra.mxu1 %v2209_v18  ;;  %v278_v50 = vrot.slane %v265_v47, %v277_v44  ;;  %v270_v54 = vrot.slane %v265_v47, %v269_v45  ;;  %v282_v55 = vrot.slane %v265_v47, %v281_v46 }
  0x24   : > { %693 = vmatprep.subr.bf16.mxu0 %v2216_v19  ;;  %734 = vmatprep.subr.bf16.mxu1 %v2222_v20  ;;  %v274_v58 = vrot.slane %v265_v47, %v273_v51 }
  0x25   : > { %719 = vmatprep.mubr.bf16.mxu0 %v2504_v3  ;;  %760 = vmatprep.mubr.bf16.mxu1 %v2504_v3 }
  0x27   : > { %694 = vmatpush1.bf16.msra.mxu0 %v2227_v21  ;;  %735 = vmatpush1.bf16.msra.mxu1 %v2233_v22 }
  0x28   : > { %695 = vmatprep.subr.bf16.mxu0 %v2238_v23  ;;  %736 = vmatprep.subr.bf16.mxu1 %v2247_v25 }
  0x2b   : > { %696 = vmatpush1.bf16.msra.mxu0 %v2255_v26  ;;  %737 = vmatpush1.bf16.msra.mxu1 %v2263_v27 }
  0x2c   : > { %697 = vmatprep.subr.bf16.mxu0 %v2268_v28  ;;  %738 = vmatprep.subr.bf16.mxu1 %v2274_v29 }
  0x2f   : > { %698 = vmatpush1.bf16.msra.mxu0 %v2281_v30  ;;  %739 = vmatpush1.bf16.msra.mxu1 %v2288_v31 }
  0x30   : > { %699 = vmatprep.subr.bf16.mxu0 %v2293_v32  ;;  %740 = vmatprep.subr.bf16.mxu1 %v2299_v33 }
  0x33   : > { %700 = vmatpush1.bf16.msra.mxu0 %v2305_v34  ;;  %741 = vmatpush1.bf16.msra.mxu1 %v2312_v35 }
  0x34   : > { %701 = vmatprep.subr.bf16.mxu0 %v2317_v36  ;;  %742 = vmatprep.subr.bf16.mxu1 %v2323_v37 }
  0x37   : > { %702 = vmatpush1.bf16.msra.mxu0 %v2329_v38  ;;  %743 = vmatpush1.bf16.msra.mxu1 %v2339_v40 }
  0x38   : > { %992 = vmatprep.subr.bf16.mxu0 %v2148_v8  ;;  %1033 = vmatprep.subr.bf16.mxu1 %v2159_v10 }
  0x3a   : > { %720 = vmatmul.mubr.bf16.vlgmr.msra.gmra.mxu0 %v494_v41  ;;  %761 = vmatmul.mubr.bf16.vlgmr.msra.gmra.mxu1 %v494_v41 }
  0x3b   : > { %993 = vmatpush1.bf16.msra.mxu0 %v2143_v7  ;;  %1034 = vmatpush1.bf16.msra.mxu1 %v2153_v9 }
  0x3c   : > { %994 = vmatprep.subr.bf16.mxu0 %v2166_v11  ;;  %1035 = vmatprep.subr.bf16.mxu1 %v2178_v13 }
  0x3d   : > { %1024 = vmatprep.mubr.bf16.mxu0 %v2504_v3  ;;  %1065 = vmatprep.mubr.bf16.mxu1 %v2504_v3 }
  0x3f   : > { %995 = vmatpush1.bf16.msra.mxu0 %v2173_v12  ;;  %1036 = vmatpush1.bf16.msra.mxu1 %v2185_v14 }
  0x40   : > { %996 = vmatprep.subr.bf16.mxu0 %v2191_v15  ;;  %1037 = vmatprep.subr.bf16.mxu1 %v2197_v16 }
  0x43   : > { %997 = vmatpush1.bf16.msra.mxu0 %v2204_v17  ;;  %1038 = vmatpush1.bf16.msra.mxu1 %v2209_v18 }
  0x44   : > { %998 = vmatprep.subr.bf16.mxu0 %v2216_v19  ;;  %1039 = vmatprep.subr.bf16.mxu1 %v2222_v20 }
  0x47   : > { %999 = vmatpush1.bf16.msra.mxu0 %v2227_v21  ;;  %1040 = vmatpush1.bf16.msra.mxu1 %v2233_v22 }
  0x48   : > { %1000 = vmatprep.subr.bf16.mxu0 %v2238_v23  ;;  %1041 = vmatprep.subr.bf16.mxu1 %v2247_v25 }
  0x4b   : > { %1001 = vmatpush1.bf16.msra.mxu0 %v2255_v26  ;;  %1042 = vmatpush1.bf16.msra.mxu1 %v2263_v27 }
  0x4c   : > { %1002 = vmatprep.subr.bf16.mxu0 %v2268_v28  ;;  %1043 = vmatprep.subr.bf16.mxu1 %v2274_v29 }
  0x4f   : > { %1003 = vmatpush1.bf16.msra.mxu0 %v2281_v30  ;;  %1044 = vmatpush1.bf16.msra.mxu1 %v2288_v31 }
  0x50   : > { %1004 = vmatprep.subr.bf16.mxu0 %v2293_v32  ;;  %1045 = vmatprep.subr.bf16.mxu1 %v2299_v33 }
  0x53   : > { %1005 = vmatpush1.bf16.msra.mxu0 %v2305_v34  ;;  %1046 = vmatpush1.bf16.msra.mxu1 %v2312_v35 }
  0x54   : > { %1006 = vmatprep.subr.bf16.mxu0 %v2317_v36  ;;  %1047 = vmatprep.subr.bf16.mxu1 %v2323_v37 }
  0x57   : > { %1007 = vmatpush1.bf16.msra.mxu0 %v2329_v38  ;;  %1048 = vmatpush1.bf16.msra.mxu1 %v2339_v40 }
  0x58   : > { %1298 = vmatprep.subr.bf16.mxu0 %v2148_v8  ;;  %1339 = vmatprep.subr.bf16.mxu1 %v2159_v10 }
  0xda   : > { %v358_v48 = vpop.f32.mrf.mxu0  ;;  %v411_v49 = vpop.f32.mrf.mxu1 }
  0xdc   : > { %v360_v52 = vpop.f32.mrf.mxu0  ;;  %v413_v53 = vpop.f32.mrf.mxu1 }
  0xde   : > { %v362_v56 = vpop.f32.mrf.mxu0  ;;  %v415_v57 = vpop.f32.mrf.mxu1 }
  0xdf   : > { %v363_v59 = vadd.f32 %v362_v56, %v270_v54  ;;  %v416_v60 = vadd.f32 %v415_v57, %v278_v50 }
  0xe0   : > { %v364_v61 = vpop.f32.mrf.mxu0  ;;  %v417_v62 = vpop.f32.mrf.mxu1 }
  0xe1   : > { %v365_v63 = vadd.f32 %v364_v61, %v274_v58  ;;  %v418_v0 = vadd.f32 %v417_v62, %v282_v55 }
  0xe2   : > { %v368_v4 = vpop.f32.mrf.mxu0  ;;  %v421_v5 = vpop.f32.mrf.mxu1 }
  0xe3   : > { %v2383_v1 = vpack.c.bf16 %v365_v63, %v363_v59  ;;  %v2385_v2 = vpack.c.bf16 %v418_v0, %v416_v60  ;;  %v369_v6 = vadd.f32 %v368_v4, %v270_v54  ;;  %v422_v24 = vadd.f32 %v421_v5, %v278_v50 }
  0xe4   : > { %v370_v39 = vpop.f32.mrf.mxu0  ;;  %v423_v41 = vpop.f32.mrf.mxu1  ;;  %v359_v0 = vadd.f32 %v358_v48, %v270_v54  ;;  %v361_v4 = vadd.f32 %v360_v52, %v274_v58 }
  0xe5   : > { %v371_v42 = vadd.f32 %v370_v39, %v274_v58  ;;  %v424_v43 = vadd.f32 %v423_v41, %v282_v55  ;;  %v412_v39 = vadd.f32 %v411_v49, %v278_v50  ;;  %v414_v41 = vadd.f32 %v413_v53, %v282_v55 }
  0xe6   : > { %v372_v44 = vpop.f32.mrf.mxu0  ;;  %v425_v45 = vpop.f32.mrf.mxu1  ;;  %v1942_v5 = vpack.c.bf16 %v361_v4, %v359_v0 }
  0xe7   : > { %v2387_v46 = vpack.c.bf16 %v371_v42, %v369_v6  ;;  %v373_v47 = vadd.f32 %v372_v44, %v270_v54  ;;  %v2389_v51 = vpack.c.bf16 %v424_v43, %v422_v24  ;;  %v426_v56 = vadd.f32 %v425_v45, %v278_v50 }
  0xe8   : > { %v374_v57 = vpop.f32.mrf.mxu0  ;;  %v427_v59 = vpop.f32.mrf.mxu1  ;;  %v490_v3 = vunpack.c.l.bf16 %v1942_v5  ;;  %v1943_v42 = vpack.c.bf16 %v414_v41, %v412_v39  ;;  %v491_v43 = vunpack.c.h.bf16 %v1942_v5 }
  0xe9   : > { %2508 = vst [vmem:[#allocation3_spill] sm:$0xff] %v2387_v46  ;;  %2509 = vst [vmem:[#allocation4_spill] sm:$0xff] %v2389_v51  ;;  %v375_v60 = vadd.f32 %v374_v57, %v274_v58  ;;  %v428_v61 = vadd.f32 %v427_v59, %v282_v55 }
  0xea   : > { %v492_v50 = vunpack.c.l.bf16 %v1943_v42 }
  0xeb   : > { %v2391_v62 = vpack.c.bf16 %v375_v60, %v373_v47  ;;  %v2393_v63 = vpack.c.bf16 %v428_v61, %v426_v56  ;;  %v493_v56 = vunpack.c.h.bf16 %v1943_v42 }
  0xfa   : > { %v721_v6 = vpop.f32.mrf.mxu0  ;;  %v762_v24 = vpop.f32.mrf.mxu1 }
  0xfb   : > { %v769_v44 = vadd.f32 %v721_v6, %v490_v3  ;;  %v771_v53 = vadd.f32 %v762_v24, %v492_v50 }
  0xfc   : > { %v723_v45 = vpop.f32.mrf.mxu0  ;;  %v764_v57 = vpop.f32.mrf.mxu1 }
  0xfd   : > { %v773_v51 = vmul.f32 0.5, %v769_v44  ;;  %v770_v46 = vadd.f32 %v723_v45, %v491_v43  ;;  %v772_v52 = vadd.f32 %v764_v57, %v493_v56  ;;  %v775_v54 = vmul.f32 0.5, %v771_v53 }
  0xfe   : > { %v725_v59 = vpop.f32.mrf.mxu0  ;;  %v766_v60 = vpop.f32.mrf.mxu1  ;;  %v2510_v57 = vmov 0  }
  0xff   : > { %2016 = vtanh.f32 %v773_v51  ;;  %v774_v47 = vmul.f32 0.5, %v770_v46  ;;  %v487_v46 = vld [vmem:[%s2503_s6] sm:$0xff]  ;;  %v796_v59 = vunpack.c.l.bf16 %v2383_v1 }
 0x100   : > { %v726_v48 = vpop.f32.mrf.mxu0  ;;  %v767_v49 = vpop.f32.mrf.mxu1 }
 0x101   : > { %2018 = vtanh.f32 %v774_v47  ;;  %v797_v48 = vunpack.c.h.bf16 %v2383_v1 }
 0x102   : > { %2020 = vtanh.f32 %v772_v52 }
 0x103   : > { %2022 = vtanh.f32 %v775_v54  ;;  %v799_v54 = vunpack.c.h.bf16 %v2385_v2 }
 0x10c   : > { %v2017_v3 = vpop.eup %2016 }
 0x10d   : > { %v779_v55 = vmul.f32 0.5, %v2017_v3 }
 0x10e   : > { %v2019_v58 = vpop.eup %2018 }
 0x10f   : > { %v782_v61 = vadd.f32 0.5, %v779_v55  ;;  %v780_v0 = vmul.f32 0.5, %v2019_v58  ;;  %v2021_v4 = vpop.eup %2020 }
 0x110   : > { %v2023_v6 = vpop.eup %2022 }
 0x111   : > { %v783_v51 = vadd.f32 0.5, %v780_v0  ;;  %v787_v39 = vmul.f32 %v2021_v4, %v782_v61  ;;  %v781_v42 = vmul.f32 0.5, %v2023_v6  ;;  %v798_v0 = vunpack.c.l.bf16 %v2385_v2 }
 0x113   : > { %v786_v5 = vmul.f32 %v783_v51, %v487_v46  ;;  %v784_v44 = vadd.f32 0.5, %v781_v42 }
 0x115   : > { %v2398_v41 = vadd.f32 %v787_v39, %v786_v5 }
 0x117   : > { %2024 = vtanh.f32 %v2398_v41 }
 0x124   : > { %v2025_v24 = vpop.eup %2024 }
 0x125   : > { %v790_v43 = vmul.f32 %v2025_v24, %v784_v44 }
 0x127   : > { %v791_v45 = vpack.c.bf16 %v790_v43, %v790_v43 }
 0x129   : > { %792 = vst [vmem:[%s2117_s30] sm:$0xf] %v791_v45  ;;  %1025 = vmatmul.mubr.bf16.vlgmr.msra.gmra.mxu0 %v791_v45  ;;  %1066 = vmatmul.mubr.bf16.vlgmr.msra.gmra.mxu1 %v791_v45 }
 0x12a   : > { %1299 = vmatpush1.bf16.msra.mxu0 %v2143_v7  ;;  %1340 = vmatpush1.bf16.msra.mxu1 %v2153_v9 }
 0x12b   : > { %1300 = vmatprep.subr.bf16.mxu0 %v2166_v11  ;;  %1341 = vmatprep.subr.bf16.mxu1 %v2178_v13 }
 0x12c   : > { %1330 = vmatprep.mubr.bf16.mxu0 %v2510_v57  ;;  %1371 = vmatprep.mubr.bf16.mxu1 %v2510_v57 }
 0x12e   : > { %1301 = vmatpush1.bf16.msra.mxu0 %v2173_v12  ;;  %1342 = vmatpush1.bf16.msra.mxu1 %v2185_v14 }
 0x12f   : > { %1302 = vmatprep.subr.bf16.mxu0 %v2191_v15  ;;  %1343 = vmatprep.subr.bf16.mxu1 %v2197_v16 }
 0x132   : > { %1303 = vmatpush1.bf16.msra.mxu0 %v2204_v17  ;;  %1344 = vmatpush1.bf16.msra.mxu1 %v2209_v18 }
 0x133   : > { %1304 = vmatprep.subr.bf16.mxu0 %v2216_v19  ;;  %1345 = vmatprep.subr.bf16.mxu1 %v2222_v20 }
 0x136   : > { %1305 = vmatpush1.bf16.msra.mxu0 %v2227_v21  ;;  %1346 = vmatpush1.bf16.msra.mxu1 %v2233_v22 }
 0x137   : > { %1306 = vmatprep.subr.bf16.mxu0 %v2238_v23  ;;  %1347 = vmatprep.subr.bf16.mxu1 %v2247_v25 }
 0x13a   : > { %1307 = vmatpush1.bf16.msra.mxu0 %v2255_v26  ;;  %1348 = vmatpush1.bf16.msra.mxu1 %v2263_v27 }
 0x13b   : > { %1308 = vmatprep.subr.bf16.mxu0 %v2268_v28  ;;  %1349 = vmatprep.subr.bf16.mxu1 %v2274_v29 }
 0x13e   : > { %1309 = vmatpush1.bf16.msra.mxu0 %v2281_v30  ;;  %1350 = vmatpush1.bf16.msra.mxu1 %v2288_v31 }
 0x13f   : > { %1310 = vmatprep.subr.bf16.mxu0 %v2293_v32  ;;  %1351 = vmatprep.subr.bf16.mxu1 %v2299_v33 }
 0x142   : > { %1311 = vmatpush1.bf16.msra.mxu0 %v2305_v34  ;;  %1352 = vmatpush1.bf16.msra.mxu1 %v2312_v35 }
 0x143   : > { %1312 = vmatprep.subr.bf16.mxu0 %v2317_v36  ;;  %1353 = vmatprep.subr.bf16.mxu1 %v2323_v37 }
 0x146   : > { %1313 = vmatpush1.bf16.msra.mxu0 %v2329_v38  ;;  %1354 = vmatpush1.bf16.msra.mxu1 %v2339_v40 }
 0x147   : > { %1604 = vmatprep.subr.bf16.mxu0 %v2148_v8  ;;  %1645 = vmatprep.subr.bf16.mxu1 %v2159_v10 }
 0x1e9   : > { %v1026_v47 = vpop.f32.mrf.mxu0  ;;  %v1067_v56 = vpop.f32.mrf.mxu1 }
 0x1ea   : > { %v1074_v60 = vadd.f32 %v1026_v47, %v796_v59  ;;  %v1076_v46 = vadd.f32 %v1067_v56, %v798_v0 }
 0x1eb   : > { %v1028_v52 = vpop.f32.mrf.mxu0  ;;  %v1069_v49 = vpop.f32.mrf.mxu1 }
 0x1ec   : > { %v1078_v50 = vmul.f32 0.5, %v1074_v60  ;;  %v1075_v53 = vadd.f32 %v1028_v52, %v797_v48  ;;  %v1077_v8 = vadd.f32 %v1069_v49, %v799_v54  ;;  %v1080_v51 = vmul.f32 0.5, %v1076_v46 }
 0x1ed   : > { %v1030_v3 = vpop.f32.mrf.mxu0  ;;  %v1071_v55 = vpop.f32.mrf.mxu1 }
 0x1ee   : > { %2026 = vtanh.f32 %v1078_v50  ;;  %v1079_v58 = vmul.f32 0.5, %v1075_v53  ;;  %v1408_v3 = vunpack.c.l.bf16 %v2391_v62 }
 0x1ef   : > { %v1031_v61 = vpop.f32.mrf.mxu0  ;;  %v1072_v10 = vpop.f32.mrf.mxu1 }
 0x1f0   : > { %2028 = vtanh.f32 %v1079_v58  ;;  %v1409_v61 = vunpack.c.h.bf16 %v2391_v62 }
 0x1f1   : > { %2030 = vtanh.f32 %v1077_v8 }
 0x1f2   : > { %2032 = vtanh.f32 %v1080_v51 }
 0x1fb   : > { %v2027_v1 = vpop.eup %2026 }
 0x1fc   : > { %v1084_v4 = vmul.f32 0.5, %v2027_v1  ;;  %v1411_v1 = vunpack.c.h.bf16 %v2393_v63 }
 0x1fd   : > { %v2029_v5 = vpop.eup %2028 }
 0x1fe   : > { %v1087_v39 = vadd.f32 0.5, %v1084_v4  ;;  %v1085_v6 = vmul.f32 0.5, %v2029_v5  ;;  %v2031_v42 = vpop.eup %2030 }
 0x1ff   : > { %v2033_v59 = vpop.eup %2032 }
 0x200   : > { %v1088_v44 = vadd.f32 0.5, %v1085_v6  ;;  %v1092_v24 = vmul.f32 %v2031_v42, %v1087_v39  ;;  %v1086_v2 = vmul.f32 0.5, %v2033_v59 }
 0x202   : > { %v1091_v43 = vmul.f32 %v1088_v44, %v2398_v41  ;;  %v1089_v47 = vadd.f32 0.5, %v1086_v2 }
 0x204   : > { %v2441_v45 = vadd.f32 %v1092_v24, %v1091_v43  ;;  %v1410_v24 = vunpack.c.l.bf16 %v2393_v63 }
 0x206   : > { %2034 = vtanh.f32 %v2441_v45 }
 0x213   : > { %v2035_v56 = vpop.eup %2034 }
 0x214   : > { %v1095_v60 = vmul.f32 %v2035_v56, %v1089_v47 }
 0x216   : > { %v1096_v48 = vpack.c.bf16 %v1095_v60, %v1095_v60 }
 0x218   : > { %1873 = vst [vmem:[%s2117_s30 + $0x4] sm:$0xf] %v1096_v48  ;;  %1331 = vmatmul.mubr.bf16.vlgmr.msra.gmra.mxu0 %v1096_v48  ;;  %1372 = vmatmul.mubr.bf16.vlgmr.msra.gmra.mxu1 %v1096_v48 }
 0x219   : > { %1605 = vmatpush1.bf16.msra.mxu0 %v2143_v7  ;;  %1646 = vmatpush1.bf16.msra.mxu1 %v2153_v9  ;;  %v2511_v7 = vld [vmem:[#allocation3_spill] sm:$0xff] }
 0x21a   : > { %1606 = vmatprep.subr.bf16.mxu0 %v2166_v11  ;;  %1647 = vmatprep.subr.bf16.mxu1 %v2178_v13  ;;  %v1102_v9 = vunpack.c.l.bf16 %v2511_v7 }
 0x21b   : > { %1636 = vmatprep.mubr.bf16.mxu0 %v2510_v57  ;;  %1677 = vmatprep.mubr.bf16.mxu1 %v2510_v57 }
 0x21d   : > { %1607 = vmatpush1.bf16.msra.mxu0 %v2173_v12  ;;  %1648 = vmatpush1.bf16.msra.mxu1 %v2185_v14  ;;  %v1103_v14 = vunpack.c.h.bf16 %v2511_v7 }
 0x21e   : > { %1608 = vmatprep.subr.bf16.mxu0 %v2191_v15  ;;  %1649 = vmatprep.subr.bf16.mxu1 %v2197_v16 }
 0x221   : > { %1609 = vmatpush1.bf16.msra.mxu0 %v2204_v17  ;;  %1650 = vmatpush1.bf16.msra.mxu1 %v2209_v18 }
 0x222   : > { %1610 = vmatprep.subr.bf16.mxu0 %v2216_v19  ;;  %1651 = vmatprep.subr.bf16.mxu1 %v2222_v20  ;;  %v2512_v19 = vld [vmem:[#allocation4_spill] sm:$0xff] }
 0x223   : > { %v1105_v20 = vunpack.c.h.bf16 %v2512_v19 }
 0x225   : > { %1611 = vmatpush1.bf16.msra.mxu0 %v2227_v21  ;;  %1652 = vmatpush1.bf16.msra.mxu1 %v2233_v22 }
 0x226   : > { %1612 = vmatprep.subr.bf16.mxu0 %v2238_v23  ;;  %1653 = vmatprep.subr.bf16.mxu1 %v2247_v25 }
 0x229   : > { %1613 = vmatpush1.bf16.msra.mxu0 %v2255_v26  ;;  %1654 = vmatpush1.bf16.msra.mxu1 %v2263_v27 }
 0x22a   : > { %1614 = vmatprep.subr.bf16.mxu0 %v2268_v28  ;;  %1655 = vmatprep.subr.bf16.mxu1 %v2274_v29  ;;  %v1104_v28 = vunpack.c.l.bf16 %v2512_v19 }
 0x22d   : > { %1615 = vmatpush1.bf16.msra.mxu0 %v2281_v30  ;;  %1656 = vmatpush1.bf16.msra.mxu1 %v2288_v31 }
 0x22e   : > { %1616 = vmatprep.subr.bf16.mxu0 %v2293_v32  ;;  %1657 = vmatprep.subr.bf16.mxu1 %v2299_v33 }
 0x231   : > { %1617 = vmatpush1.bf16.msra.mxu0 %v2305_v34  ;;  %1658 = vmatpush1.bf16.msra.mxu1 %v2312_v35 }
 0x232   : > { %1618 = vmatprep.subr.bf16.mxu0 %v2317_v36  ;;  %1659 = vmatprep.subr.bf16.mxu1 %v2323_v37 }
 0x235   : > { %1619 = vmatpush1.bf16.msra.mxu0 %v2329_v38  ;;  %1660 = vmatpush1.bf16.msra.mxu1 %v2339_v40 }
 0x2d8   : > { %v1332_v11 = vpop.f32.mrf.mxu0  ;;  %v1373_v12 = vpop.f32.mrf.mxu1 }
 0x2d9   : > { %v1380_v13 = vadd.f32 %v1332_v11, %v1102_v9  ;;  %v1382_v29 = vadd.f32 %v1373_v12, %v1104_v28 }
 0x2da   : > { %v1334_v15 = vpop.f32.mrf.mxu0  ;;  %v1375_v16 = vpop.f32.mrf.mxu1 }
 0x2db   : > { %v1384_v17 = vmul.f32 0.5, %v1380_v13  ;;  %v1381_v18 = vadd.f32 %v1334_v15, %v1103_v14  ;;  %v1383_v25 = vadd.f32 %v1375_v16, %v1105_v20  ;;  %v1386_v30 = vmul.f32 0.5, %v1382_v29 }
 0x2dc   : > { %v1336_v21 = vpop.f32.mrf.mxu0  ;;  %v1377_v22 = vpop.f32.mrf.mxu1 }
 0x2dd   : > { %2036 = vtanh.f32 %v1384_v17  ;;  %v1385_v23 = vmul.f32 0.5, %v1381_v18 }
 0x2de   : > { %v1337_v26 = vpop.f32.mrf.mxu0  ;;  %v1378_v27 = vpop.f32.mrf.mxu1 }
 0x2df   : > { %2038 = vtanh.f32 %v1385_v23 }
 0x2e0   : > { %2040 = vtanh.f32 %v1383_v25 }
 0x2e1   : > { %2042 = vtanh.f32 %v1386_v30 }
 0x2ea   : > { %v2037_v31 = vpop.eup %2036 }
 0x2eb   : > { %v1390_v32 = vmul.f32 0.5, %v2037_v31 }
 0x2ec   : > { %v2039_v33 = vpop.eup %2038 }
 0x2ed   : > { %v1393_v34 = vadd.f32 0.5, %v1390_v32  ;;  %v1391_v35 = vmul.f32 0.5, %v2039_v33  ;;  %v2041_v36 = vpop.eup %2040 }
 0x2ee   : > { %v2043_v57 = vpop.eup %2042 }
 0x2ef   : > { %v1394_v37 = vadd.f32 0.5, %v1391_v35  ;;  %v1398_v38 = vmul.f32 %v2041_v36, %v1393_v34  ;;  %v1392_v52 = vmul.f32 0.5, %v2043_v57 }
 0x2f1   : > { %v1397_v40 = vmul.f32 %v1394_v37, %v2441_v45  ;;  %v1395_v49 = vadd.f32 0.5, %v1392_v52 }
 0x2f3   : > { %v1399_v41 = vadd.f32 %v1398_v38, %v1397_v40 }
 0x2f5   : > { %2044 = vtanh.f32 %v1399_v41 }
 0x302   : > { %v2045_v50 = vpop.eup %2044 }
 0x303   : > { %v1401_v53 = vmul.f32 %v2045_v50, %v1395_v49 }
 0x305   : > { %v1402_v54 = vpack.c.bf16 %v1401_v53, %v1401_v53 }
 0x307   : > { %1906 = vst [vmem:[%s2117_s30 + $0x8] sm:$0xf] %v1402_v54  ;;  %1637 = vmatmul.mubr.bf16.vlgmr.msra.gmra.mxu0 %v1402_v54  ;;  %1678 = vmatmul.mubr.bf16.vlgmr.msra.gmra.mxu1 %v1402_v54 }
 0x3c7   : > { %v1638_v55 = vpop.f32.mrf.mxu0  ;;  %v1679_v58 = vpop.f32.mrf.mxu1 }
 0x3c8   : > { %v1686_v8 = vadd.f32 %v1638_v55, %v1408_v3  ;;  %v1688_v43 = vadd.f32 %v1679_v58, %v1410_v24 }
 0x3c9   : > { %v1640_v10 = vpop.f32.mrf.mxu0  ;;  %v1681_v0 = vpop.f32.mrf.mxu1 }
 0x3ca   : > { %v1690_v46 = vmul.f32 0.5, %v1686_v8  ;;  %v1687_v51 = vadd.f32 %v1640_v10, %v1409_v61  ;;  %v1689_v6 = vadd.f32 %v1681_v0, %v1411_v1  ;;  %v1692_v45 = vmul.f32 0.5, %v1688_v43 }
 0x3cb   : > { %v1642_v4 = vpop.f32.mrf.mxu0  ;;  %v1683_v5 = vpop.f32.mrf.mxu1 }
 0x3cc   : > { %2046 = vtanh.f32 %v1690_v46  ;;  %v1691_v39 = vmul.f32 0.5, %v1687_v51 }
 0x3cd   : > { %v1643_v42 = vpop.f32.mrf.mxu0  ;;  %v1684_v44 = vpop.f32.mrf.mxu1 }
 0x3ce   : > { %2048 = vtanh.f32 %v1691_v39 }
 0x3cf   : > { %2050 = vtanh.f32 %v1689_v6 }
 0x3d0   : > { %2052 = vtanh.f32 %v1692_v45 }
 0x3d9   : > { %v2047_v62 = vpop.eup %2046 }
 0x3da   : > { %v1696_v59 = vmul.f32 0.5, %v2047_v62 }
 0x3db   : > { %v2049_v2 = vpop.eup %2048 }
 0x3dc   : > { %v1699_v47 = vadd.f32 0.5, %v1696_v59  ;;  %v1697_v56 = vmul.f32 0.5, %v2049_v2  ;;  %v2051_v60 = vpop.eup %2050 }
 0x3dd   : > { %v2053_v63 = vpop.eup %2052 }
 0x3de   : > { %v1700_v48 = vadd.f32 0.5, %v1697_v56  ;;  %v1704_v7 = vmul.f32 %v2051_v60, %v1699_v47  ;;  %v1698_v12 = vmul.f32 0.5, %v2053_v63 }
 0x3e0   : > { %v1703_v9 = vmul.f32 %v1700_v48, %v1399_v41  ;;  %v1701_v13 = vadd.f32 0.5, %v1698_v12 }
 0x3e2   : > { %v1705_v11 = vadd.f32 %v1704_v7, %v1703_v9 }
 0x3e4   : > { %2054 = vtanh.f32 %v1705_v11  ;;  %1712 = vst [vmem:[%s2503_s6] sm:$0xff] %v1705_v11 }
 0x3f1   : > { %v2055_v14 = vpop.eup %2054 }
 0x3f2   : > { %v1707_v15 = vmul.f32 %v2055_v14, %v1701_v13 }
 0x3f4   : > { %v1708_v16 = vpack.c.bf16 %v1707_v15, %v1707_v15  ;;  %1711 = vst [vmem:[%s2502_s5] sm:$0xff] %v1707_v15 }
 0x3f6   : > { %1939 = vst [vmem:[%s2117_s30 + $0xc] sm:$0xf] %v1708_v16 }
 0x3f7 PF: > { %s17_s21 = sadd.s32 1, %s2062_s21  }
 0x3f8   : > { %p14_p5 = scmp.ge.s32.totalorder %s17_s21, 4  }
 0x3fa   :  { %16 = sbr.rel (!%p14_p5) target bundleno = 1 (0x1), region = 92 }

// kernel: custom_lstm_forward.3
= control target key start
LH: loop header
LB: loop body
LE: loop exit
PB: predicated region body
PF: predicated region fallthrough
CT: control target
= control target key end

     0   :  { %s2329_s21 = smov 0   ;;  %s2805_s0 = inlined_call_operand.vmem [shape: bf16[8,8,128], index: 0, kind: input, shape index: {}]   ;;  %s2806_s1 = inlined_call_operand.vmem [shape: bf16[128,512], index: 1, kind: input, shape index: {}]   ;;  %s2807_s2 = inlined_call_operand.vmem [shape: bf16[128,512], index: 2, kind: input, shape index: {}]   ;;  %s2808_s3 = inlined_call_operand.vmem [shape: f32[1,512], index: 3, kind: input, shape index: {}]   ;;  %s2809_s4 = inlined_call_operand.vmem [shape: f32[8,8,128], index: 4, kind: output, shape index: {0}]   ;;  %s2810_s5 = inlined_call_operand.vmem [shape: f32[8,128], index: 5, kind: output, shape index: {1}]   ;;  %s2811_s6 = inlined_call_operand.vmem [shape: f32[8,128], index: 6, kind: output, shape index: {2}]  }
   0x1 LB: > { %s1943_s22 = sadd.s32 4294967295, %s2290_s21   ;;  %p1947_p0 = scmp.ge.s32.totalorder %s2290_s21, 1  ;;  %s2290_s21 = sphi %s2329_s21, %s17_s21  }
   0x2   : > { %p208_p1 = scmp.lt.s32.totalorder %s2290_s21, 3 }
   0x4   : > { %p209_p2 = pnand %p1947_p0, %p208_p1 }
   0x6   : > { %212 = sbr.rel (%p209_p2) target bundleno = 1041 (0x411), region = 36 }
   0xb   : > { %s1948_s23 = sshll.u32 %s1943_s22, 2  ;;  %p1952_p4 = scmp.ne.s32.totalorder %s1943_s22, 0 }
   0xc   : > { %p239_p3 = scmp.lt.s32.totalorder %s1948_s23, 7 }
   0xd   : > { %254 = sbr.rel (%p1952_p4) target bundleno = 20 (0x14), region = 40 }
   0xe   : > { %s2822_s23 = smov (!%p239_p3, %s1948_s23), 7 }
   0xf   : > { %s1949_s24 = sshll.u32 %s2822_s23, 2  ;;  %s1951_s25 = sshll.u32 %s2822_s23, 3 }
  0x10   : > { %s2340_s28 = scalar_lea.vmem %s2805_s0, %s1949_s24  ;;  %s2345_s7 = scalar_lea.vmem %s2809_s4, %s1951_s25 }
  0x12   : > { %v2292_v0 = vmov 0.0  }
  0x13   : > { %255 = vst [vmem:[%s2810_s5] sm:$0xff] %v2292_v0  ;;  %256 = vst [vmem:[%s2811_s6] sm:$0xff] %v2292_v0 }
  0x14 PF: > { %v2146_v1 = vld [vmem:[%s2806_s1 + $0xe4] ss:$16 sps:$4 sm:$0xff]   ;;  %v2148_v2 = vld [vmem:[%s2806_s1 + $0xec] ss:$16 sps:$4 sm:$0xff]   ;;  %v2812_v3 = vmov 0  }
  0x15   : > { %519 = vmatprep.mubr.bf16.mxu0 %v2812_v3  ;;  %572 = vmatprep.mubr.bf16.mxu1 %v2812_v3  ;;  %v2150_v4 = vld [vmem:[%s2806_s1 + $0xe0] ss:$16 sps:$4 sm:$0xff]   ;;  %v2151_v5 = vld [vmem:[%s2806_s1 + $0xe8] ss:$16 sps:$4 sm:$0xff]   ;;  %v2152_v6 = vld [vmem:[%s2806_s1 + $0xc4] ss:$16 sps:$4 sm:$0xff]  }
  0x16   : > { %487 = vmatprep.subr.bf16.mxu0 %v2146_v1  ;;  %540 = vmatprep.subr.bf16.mxu1 %v2148_v2  ;;  %v2154_v7 = vld [vmem:[%s2806_s1 + $0xcc] ss:$16 sps:$4 sm:$0xff]   ;;  %v2156_v8 = vld [vmem:[%s2806_s1 + $0xc0] ss:$16 sps:$4 sm:$0xff]   ;;  %v2157_v9 = vld [vmem:[%s2806_s1 + $0xc8] ss:$16 sps:$4 sm:$0xff]  }
  0x17   : > { %488 = vmatpush1.bf16.msra.mxu0 %v2150_v4  ;;  %541 = vmatpush1.bf16.msra.mxu1 %v2151_v5  ;;  %v2158_v10 = vld [vmem:[%s2806_s1 + $0xa4] ss:$16 sps:$4 sm:$0xff]   ;;  %v2160_v11 = vld [vmem:[%s2806_s1 + $0xac] ss:$16 sps:$4 sm:$0xff]   ;;  %v2162_v12 = vld [vmem:[%s2806_s1 + $0xa0] ss:$16 sps:$4 sm:$0xff]  }
  0x18   : > { %489 = vmatprep.subr.bf16.mxu0 %v2152_v6  ;;  %542 = vmatprep.subr.bf16.mxu1 %v2154_v7  ;;  %v2163_v13 = vld [vmem:[%s2806_s1 + $0xa8] ss:$16 sps:$4 sm:$0xff]   ;;  %v2164_v14 = vld [vmem:[%s2806_s1 + $0x84] ss:$16 sps:$4 sm:$0xff]   ;;  %v2166_v15 = vld [vmem:[%s2806_s1 + $0x8c] ss:$16 sps:$4 sm:$0xff]   ;;  %v295_v7 = vlaneseq }
  0x19   : > { %v2168_v16 = vld [vmem:[%s2806_s1 + $0x80] ss:$16 sps:$4 sm:$0xff]   ;;  %v2169_v17 = vld [vmem:[%s2806_s1 + $0x88] ss:$16 sps:$4 sm:$0xff]   ;;  %v2170_v18 = vld [vmem:[%s2806_s1 + $0x64] ss:$16 sps:$4 sm:$0xff]  }
  0x1a   : > { %v2172_v19 = vld [vmem:[%s2806_s1 + $0x6c] ss:$16 sps:$4 sm:$0xff]   ;;  %v2174_v20 = vld [vmem:[%s2806_s1 + $0x60] ss:$16 sps:$4 sm:$0xff]   ;;  %v2175_v21 = vld [vmem:[%s2806_s1 + $0x68] ss:$16 sps:$4 sm:$0xff]  }
  0x1b   : > { %490 = vmatpush1.bf16.msra.mxu0 %v2156_v8  ;;  %543 = vmatpush1.bf16.msra.mxu1 %v2157_v9  ;;  %v2176_v22 = vld [vmem:[%s2806_s1 + $0x44] ss:$16 sps:$4 sm:$0xff]   ;;  %v2178_v23 = vld [vmem:[%s2806_s1 + $0x4c] ss:$16 sps:$4 sm:$0xff]   ;;  %v2180_v24 = vld [vmem:[%s2806_s1 + $0x40] ss:$16 sps:$4 sm:$0xff]  }
  0x1c   : > { %491 = vmatprep.subr.bf16.mxu0 %v2158_v10  ;;  %544 = vmatprep.subr.bf16.mxu1 %v2160_v11  ;;  %v2181_v25 = vld [vmem:[%s2806_s1 + $0x48] ss:$16 sps:$4 sm:$0xff]   ;;  %v2182_v26 = vld [vmem:[%s2806_s1 + $0x24] ss:$16 sps:$4 sm:$0xff]   ;;  %v2184_v27 = vld [vmem:[%s2806_s1 + $0x2c] ss:$16 sps:$4 sm:$0xff]  }
  0x1d   : > { %v2186_v28 = vld [vmem:[%s2806_s1 + $0x20] ss:$16 sps:$4 sm:$0xff]   ;;  %v2187_v29 = vld [vmem:[%s2806_s1 + $0x28] ss:$16 sps:$4 sm:$0xff]   ;;  %v2188_v30 = vld [vmem:[%s2806_s1 + $0x4] ss:$16 sps:$4 sm:$0xff]  }
  0x1e   : > { %v2190_v31 = vld [vmem:[%s2806_s1 + $0xc] ss:$16 sps:$4 sm:$0xff]   ;;  %v2192_v32 = vld [vmem:[%s2806_s1] ss:$16 sps:$4 sm:$0xff]   ;;  %v2193_v33 = vld [vmem:[%s2806_s1 + $0x8] ss:$16 sps:$4 sm:$0xff]  }
  0x1f   : > { %492 = vmatpush1.bf16.msra.mxu0 %v2162_v12  ;;  %545 = vmatpush1.bf16.msra.mxu1 %v2163_v13  ;;  %v2454_v34 = vld [vmem:[%s2807_s2 + $0xe4] ss:$16 sps:$4 sm:$0xff]   ;;  %v2459_v35 = vld [vmem:[%s2807_s2 + $0xec] ss:$16 sps:$4 sm:$0xff]   ;;  %v2465_v37 = vld [vmem:[%s2807_s2 + $0xe0] ss:$16 sps:$4 sm:$0xff]  }
  0x20   : > { %493 = vmatprep.subr.bf16.mxu0 %v2164_v14  ;;  %546 = vmatprep.subr.bf16.mxu1 %v2166_v15  ;;  %v2194_v36 = vld [vmem:[%s2340_s28] sm:$0xff]   ;;  %v2470_v38 = vld [vmem:[%s2807_s2 + $0xe8] ss:$16 sps:$4 sm:$0xff]   ;;  %v2482_v40 = vld [vmem:[%s2807_s2 + $0xcc] ss:$16 sps:$4 sm:$0xff]   ;;  %v296_v8 = vshrl.u32 %v295_v7, 7 }
  0x21   : > { %v2475_v39 = vld [vmem:[%s2807_s2 + $0xc4] ss:$16 sps:$4 sm:$0xff]   ;;  %v2487_v41 = vld [vmem:[%s2807_s2 + $0xc0] ss:$16 sps:$4 sm:$0xff]   ;;  %v2494_v42 = vld [vmem:[%s2807_s2 + $0xc8] ss:$16 sps:$4 sm:$0xff]  }
  0x22   : > { %v2501_v43 = vld [vmem:[%s2807_s2 + $0xa4] ss:$16 sps:$4 sm:$0xff]   ;;  %v2506_v44 = vld [vmem:[%s2807_s2 + $0xac] ss:$16 sps:$4 sm:$0xff]   ;;  %v2516_v46 = vld [vmem:[%s2807_s2 + $0xa0] ss:$16 sps:$4 sm:$0xff]  }
  0x23   : > { %494 = vmatpush1.bf16.msra.mxu0 %v2168_v16  ;;  %547 = vmatpush1.bf16.msra.mxu1 %v2169_v17  ;;  %v2225_v45 = vld [vmem:[%s2340_s28 + $0x8] sm:$0xff]   ;;  %v2528_v48 = vld [vmem:[%s2807_s2 + $0x84] ss:$16 sps:$4 sm:$0xff]   ;;  %v2540_v50 = vld [vmem:[%s2807_s2 + $0x80] ss:$16 sps:$4 sm:$0xff]   ;;  %v305_v9 = vsub.s32 2, %v296_v8 }
  0x24   : > { %495 = vmatprep.subr.bf16.mxu0 %v2170_v18  ;;  %548 = vmatprep.subr.bf16.mxu1 %v2172_v19  ;;  %v2521_v47 = vld [vmem:[%s2807_s2 + $0xa8] ss:$16 sps:$4 sm:$0xff]   ;;  %v2533_v49 = vld [vmem:[%s2807_s2 + $0x8c] ss:$16 sps:$4 sm:$0xff]   ;;  %v2552_v52 = vld [vmem:[%s2807_s2 + $0x64] ss:$16 sps:$4 sm:$0xff]  }
  0x25   : > { %v2545_v51 = vld [vmem:[%s2807_s2 + $0x88] ss:$16 sps:$4 sm:$0xff]   ;;  %v2557_v53 = vld [vmem:[%s2807_s2 + $0x6c] ss:$16 sps:$4 sm:$0xff]   ;;  %v2566_v54 = vld [vmem:[%s2807_s2 + $0x60] ss:$16 sps:$4 sm:$0xff]  }
  0x26   : > { %v2571_v55 = vld [vmem:[%s2807_s2 + $0x68] ss:$16 sps:$4 sm:$0xff]   ;;  %v2578_v56 = vld [vmem:[%s2807_s2 + $0x44] ss:$16 sps:$4 sm:$0xff]   ;;  %v2583_v57 = vld [vmem:[%s2807_s2 + $0x4c] ss:$16 sps:$4 sm:$0xff]  }
  0x27   : > { %496 = vmatpush1.bf16.msra.mxu0 %v2174_v20  ;;  %549 = vmatpush1.bf16.msra.mxu1 %v2175_v21  ;;  %v2590_v58 = vld [vmem:[%s2807_s2 + $0x40] ss:$16 sps:$4 sm:$0xff]   ;;  %v2595_v59 = vld [vmem:[%s2807_s2 + $0x48] ss:$16 sps:$4 sm:$0xff]   ;;  %v2602_v60 = vld [vmem:[%s2807_s2 + $0x24] ss:$16 sps:$4 sm:$0xff]  }
  0x28   : > { %497 = vmatprep.subr.bf16.mxu0 %v2176_v22  ;;  %550 = vmatprep.subr.bf16.mxu1 %v2178_v23  ;;  %v2607_v61 = vld [vmem:[%s2807_s2 + $0x2c] ss:$16 sps:$4 sm:$0xff]   ;;  %v2614_v62 = vld [vmem:[%s2807_s2 + $0x20] ss:$16 sps:$4 sm:$0xff]   ;;  %v2619_v63 = vld [vmem:[%s2807_s2 + $0x28] ss:$16 sps:$4 sm:$0xff]  }
  0x29   : > { %v2626_v0 = vld [vmem:[%s2807_s2 + $0x4] ss:$16 sps:$4 sm:$0xff]   ;;  %v2631_v1 = vld [vmem:[%s2807_s2 + $0xc] ss:$16 sps:$4 sm:$0xff]   ;;  %v2638_v2 = vld [vmem:[%s2807_s2] ss:$16 sps:$4 sm:$0xff]  }
  0x2a   : > { %v2643_v4 = vld [vmem:[%s2807_s2 + $0x8] ss:$16 sps:$4 sm:$0xff]   ;;  %v649_v5 = vld [vmem:[%s2810_s5] sm:$0xff]  ;;  %v297_v10 = vsub.s32 0, %v296_v8  ;;  %v309_v11 = vsub.s32 3, %v296_v8  ;;  %v301_v16 = vsub.s32 1, %v296_v8 }
  0x2b   : > { %498 = vmatpush1.bf16.msra.mxu0 %v2180_v24  ;;  %551 = vmatpush1.bf16.msra.mxu1 %v2181_v25  ;;  %v657_v6 = vpack.c.bf16 %v649_v5, %v649_v5  ;;  %v293_v12 = vld [vmem:[%s2808_s3] sm:$0xf] }
  0x2c   : > { %499 = vmatprep.subr.bf16.mxu0 %v2182_v26  ;;  %552 = vmatprep.subr.bf16.mxu1 %v2184_v27  ;;  %v306_v15 = vrot.slane %v293_v12, %v305_v9  ;;  %v298_v19 = vrot.slane %v293_v12, %v297_v10  ;;  %v310_v20 = vrot.slane %v293_v12, %v309_v11 }
  0x2d   : > { %v302_v23 = vrot.slane %v293_v12, %v301_v16 }
  0x2f   : > { %500 = vmatpush1.bf16.msra.mxu0 %v2186_v28  ;;  %553 = vmatpush1.bf16.msra.mxu1 %v2187_v29 }
  0x30   : > { %501 = vmatprep.subr.bf16.mxu0 %v2188_v30  ;;  %554 = vmatprep.subr.bf16.mxu1 %v2190_v31 }
  0x33   : > { %502 = vmatpush1.bf16.msra.mxu0 %v2192_v32  ;;  %555 = vmatpush1.bf16.msra.mxu1 %v2193_v33 }
  0x34   : > { %850 = vmatprep.subr.bf16.mxu0 %v2454_v34  ;;  %891 = vmatprep.subr.bf16.mxu1 %v2459_v35 }
  0x36   : > { %520 = vmatmul.mubr.bf16.vlgmr.msra.gmra.mxu0 %v2194_v36  ;;  %573 = vmatmul.mubr.bf16.vlgmr.msra.gmra.mxu1 %v2194_v36 }
  0x37   : > { %851 = vmatpush1.bf16.msra.mxu0 %v2465_v37  ;;  %892 = vmatpush1.bf16.msra.mxu1 %v2470_v38 }
  0x38   : > { %852 = vmatprep.subr.bf16.mxu0 %v2475_v39  ;;  %893 = vmatprep.subr.bf16.mxu1 %v2482_v40 }
  0x39   : > { %529 = vmatprep.mubr.bf16.mxu0 %v2812_v3  ;;  %582 = vmatprep.mubr.bf16.mxu1 %v2812_v3 }
  0x3b   : > { %853 = vmatpush1.bf16.msra.mxu0 %v2487_v41  ;;  %894 = vmatpush1.bf16.msra.mxu1 %v2494_v42 }
  0x3c   : > { %854 = vmatprep.subr.bf16.mxu0 %v2501_v43  ;;  %895 = vmatprep.subr.bf16.mxu1 %v2506_v44 }
  0x3e   : > { %530 = vmatmul.mubr.bf16.gmra.mxu0 %v2225_v45  ;;  %583 = vmatmul.mubr.bf16.gmra.mxu1 %v2225_v45 }
  0x3f   : > { %855 = vmatpush1.bf16.msra.mxu0 %v2516_v46  ;;  %896 = vmatpush1.bf16.msra.mxu1 %v2521_v47 }
  0x40   : > { %856 = vmatprep.subr.bf16.mxu0 %v2528_v48  ;;  %897 = vmatprep.subr.bf16.mxu1 %v2533_v49 }
  0x41   : > { %882 = vmatprep.mubr.bf16.mxu0 %v2812_v3  ;;  %923 = vmatprep.mubr.bf16.mxu1 %v2812_v3 }
  0x43   : > { %857 = vmatpush1.bf16.msra.mxu0 %v2540_v50  ;;  %898 = vmatpush1.bf16.msra.mxu1 %v2545_v51 }
  0x44   : > { %858 = vmatprep.subr.bf16.mxu0 %v2552_v52  ;;  %899 = vmatprep.subr.bf16.mxu1 %v2557_v53 }
  0x47   : > { %859 = vmatpush1.bf16.msra.mxu0 %v2566_v54  ;;  %900 = vmatpush1.bf16.msra.mxu1 %v2571_v55 }
  0x48   : > { %860 = vmatprep.subr.bf16.mxu0 %v2578_v56  ;;  %901 = vmatprep.subr.bf16.mxu1 %v2583_v57 }
  0x4b   : > { %861 = vmatpush1.bf16.msra.mxu0 %v2590_v58  ;;  %902 = vmatpush1.bf16.msra.mxu1 %v2595_v59 }
  0x4c   : > { %862 = vmatprep.subr.bf16.mxu0 %v2602_v60  ;;  %903 = vmatprep.subr.bf16.mxu1 %v2607_v61 }
  0x4f   : > { %863 = vmatpush1.bf16.msra.mxu0 %v2614_v62  ;;  %904 = vmatpush1.bf16.msra.mxu1 %v2619_v63 }
  0x50   : > { %864 = vmatprep.subr.bf16.mxu0 %v2626_v0  ;;  %905 = vmatprep.subr.bf16.mxu1 %v2631_v1 }
  0x53   : > { %865 = vmatpush1.bf16.msra.mxu0 %v2638_v2  ;;  %906 = vmatpush1.bf16.msra.mxu1 %v2643_v4 }
  0x54   : > { %1155 = vmatprep.subr.bf16.mxu0 %v2454_v34  ;;  %1196 = vmatprep.subr.bf16.mxu1 %v2459_v35 }
  0x56   : > { %883 = vmatmul.mubr.bf16.vlgmr.msra.gmra.mxu0 %v657_v6  ;;  %924 = vmatmul.mubr.bf16.vlgmr.msra.gmra.mxu1 %v657_v6 }
  0x57   : > { %1156 = vmatpush1.bf16.msra.mxu0 %v2465_v37  ;;  %1197 = vmatpush1.bf16.msra.mxu1 %v2470_v38 }
  0x58   : > { %1157 = vmatprep.subr.bf16.mxu0 %v2475_v39  ;;  %1198 = vmatprep.subr.bf16.mxu1 %v2482_v40 }
  0x59   : > { %1187 = vmatprep.mubr.bf16.mxu0 %v2812_v3  ;;  %1228 = vmatprep.mubr.bf16.mxu1 %v2812_v3 }
  0x5b   : > { %1158 = vmatpush1.bf16.msra.mxu0 %v2487_v41  ;;  %1199 = vmatpush1.bf16.msra.mxu1 %v2494_v42 }
  0x5c   : > { %1159 = vmatprep.subr.bf16.mxu0 %v2501_v43  ;;  %1200 = vmatprep.subr.bf16.mxu1 %v2506_v44 }
  0x5f   : > { %1160 = vmatpush1.bf16.msra.mxu0 %v2516_v46  ;;  %1201 = vmatpush1.bf16.msra.mxu1 %v2521_v47 }
  0x60   : > { %1161 = vmatprep.subr.bf16.mxu0 %v2528_v48  ;;  %1202 = vmatprep.subr.bf16.mxu1 %v2533_v49 }
  0x63   : > { %1162 = vmatpush1.bf16.msra.mxu0 %v2540_v50  ;;  %1203 = vmatpush1.bf16.msra.mxu1 %v2545_v51 }
  0x64   : > { %1163 = vmatprep.subr.bf16.mxu0 %v2552_v52  ;;  %1204 = vmatprep.subr.bf16.mxu1 %v2557_v53 }
  0x67   : > { %1164 = vmatpush1.bf16.msra.mxu0 %v2566_v54  ;;  %1205 = vmatpush1.bf16.msra.mxu1 %v2571_v55 }
  0x68   : > { %1165 = vmatprep.subr.bf16.mxu0 %v2578_v56  ;;  %1206 = vmatprep.subr.bf16.mxu1 %v2583_v57 }
  0x6b   : > { %1166 = vmatpush1.bf16.msra.mxu0 %v2590_v58  ;;  %1207 = vmatpush1.bf16.msra.mxu1 %v2595_v59 }
  0x6c   : > { %1167 = vmatprep.subr.bf16.mxu0 %v2602_v60  ;;  %1208 = vmatprep.subr.bf16.mxu1 %v2607_v61 }
  0x6f   : > { %1168 = vmatpush1.bf16.msra.mxu0 %v2614_v62  ;;  %1209 = vmatpush1.bf16.msra.mxu1 %v2619_v63 }
  0x70   : > { %1169 = vmatprep.subr.bf16.mxu0 %v2626_v0  ;;  %1210 = vmatprep.subr.bf16.mxu1 %v2631_v1 }
  0x73   : > { %1170 = vmatpush1.bf16.msra.mxu0 %v2638_v2  ;;  %1211 = vmatpush1.bf16.msra.mxu1 %v2643_v4 }
  0x74   : > { %1461 = vmatprep.subr.bf16.mxu0 %v2454_v34  ;;  %1502 = vmatprep.subr.bf16.mxu1 %v2459_v35 }
  0xf6   : > { %v521_v13 = vpop.f32.mrf.mxu0  ;;  %v574_v14 = vpop.f32.mrf.mxu1 }
  0xf8   : > { %v523_v17 = vpop.f32.mrf.mxu0  ;;  %v576_v18 = vpop.f32.mrf.mxu1 }
  0xfa   : > { %v525_v21 = vpop.f32.mrf.mxu0  ;;  %v578_v22 = vpop.f32.mrf.mxu1 }
  0xfb   : > { %v526_v24 = vadd.f32 %v525_v21, %v298_v19  ;;  %v579_v25 = vadd.f32 %v578_v22, %v306_v15 }
  0xfc   : > { %v527_v26 = vpop.f32.mrf.mxu0  ;;  %v580_v27 = vpop.f32.mrf.mxu1 }
  0xfd   : > { %v528_v28 = vadd.f32 %v527_v26, %v302_v23  ;;  %v581_v29 = vadd.f32 %v580_v27, %v310_v20 }
  0xfe   : > { %v531_v30 = vpop.f32.mrf.mxu0  ;;  %v584_v31 = vpop.f32.mrf.mxu1 }
  0xff   : > { %v2691_v32 = vpack.c.bf16 %v528_v28, %v526_v24  ;;  %v2693_v33 = vpack.c.bf16 %v581_v29, %v579_v25  ;;  %v532_v36 = vadd.f32 %v531_v30, %v298_v19  ;;  %v585_v45 = vadd.f32 %v584_v31, %v306_v15 }
 0x100   : > { %v533_v5 = vpop.f32.mrf.mxu0  ;;  %v586_v6 = vpop.f32.mrf.mxu1  ;;  %v522_v29 = vadd.f32 %v521_v13, %v298_v19  ;;  %v524_v30 = vadd.f32 %v523_v17, %v302_v23 }
 0x101   : > { %v534_v7 = vadd.f32 %v533_v5, %v302_v23  ;;  %v587_v8 = vadd.f32 %v586_v6, %v310_v20  ;;  %v575_v5 = vadd.f32 %v574_v14, %v306_v15  ;;  %v577_v6 = vadd.f32 %v576_v18, %v310_v20 }
 0x102   : > { %v535_v9 = vpop.f32.mrf.mxu0  ;;  %v588_v10 = vpop.f32.mrf.mxu1  ;;  %v2128_v31 = vpack.c.bf16 %v524_v30, %v522_v29 }
 0x103   : > { %v2695_v11 = vpack.c.bf16 %v534_v7, %v532_v36  ;;  %v536_v12 = vadd.f32 %v535_v9, %v298_v19  ;;  %v2697_v16 = vpack.c.bf16 %v587_v8, %v585_v45  ;;  %v589_v21 = vadd.f32 %v588_v10, %v306_v15 }
 0x104   : > { %v537_v22 = vpop.f32.mrf.mxu0  ;;  %v590_v26 = vpop.f32.mrf.mxu1  ;;  %v653_v3 = vunpack.c.l.bf16 %v2128_v31  ;;  %v2129_v9 = vpack.c.bf16 %v577_v6, %v575_v5  ;;  %v654_v8 = vunpack.c.h.bf16 %v2128_v31 }
 0x105   : > { %2816 = vst [vmem:[#allocation3_spill] sm:$0xff] %v2695_v11  ;;  %2817 = vst [vmem:[#allocation4_spill] sm:$0xff] %v2697_v16  ;;  %v538_v24 = vadd.f32 %v537_v22, %v302_v23  ;;  %v591_v27 = vadd.f32 %v590_v26, %v310_v20 }
 0x106   : > { %v655_v15 = vunpack.c.l.bf16 %v2129_v9 }
 0x107   : > { %v2699_v25 = vpack.c.bf16 %v538_v24, %v536_v12  ;;  %v2701_v28 = vpack.c.bf16 %v591_v27, %v589_v21  ;;  %v656_v24 = vunpack.c.h.bf16 %v2129_v9 }
 0x116   : > { %v884_v36 = vpop.f32.mrf.mxu0  ;;  %v925_v7 = vpop.f32.mrf.mxu1 }
 0x117   : > { %v932_v45 = vadd.f32 %v884_v36, %v653_v3  ;;  %v934_v18 = vadd.f32 %v925_v7, %v655_v15 }
 0x118   : > { %v886_v10 = vpop.f32.mrf.mxu0  ;;  %v927_v16 = vpop.f32.mrf.mxu1 }
 0x119   : > { %v936_v11 = vmul.f32 0.5, %v932_v45  ;;  %v933_v22 = vadd.f32 %v886_v10, %v654_v8  ;;  %v935_v14 = vadd.f32 %v927_v16, %v656_v24  ;;  %v938_v19 = vmul.f32 0.5, %v934_v18 }
 0x11a   : > { %v888_v26 = vpop.f32.mrf.mxu0  ;;  %v929_v12 = vpop.f32.mrf.mxu1 }
 0x11b   : > { %2244 = vtanh.f32 %v936_v11  ;;  %v937_v21 = vmul.f32 0.5, %v933_v22  ;;  %v650_v11 = vld [vmem:[%s2811_s6] sm:$0xff]  ;;  %v2818_v22 = vmov 0   ;;  %v958_v26 = vunpack.c.l.bf16 %v2691_v32 }
 0x11c   : > { %v889_v13 = vpop.f32.mrf.mxu0  ;;  %v930_v17 = vpop.f32.mrf.mxu1 }
 0x11d   : > { %2246 = vtanh.f32 %v937_v21  ;;  %v959_v13 = vunpack.c.h.bf16 %v2691_v32 }
 0x11e   : > { %2248 = vtanh.f32 %v935_v14 }
 0x11f   : > { %2250 = vtanh.f32 %v938_v19  ;;  %v961_v19 = vunpack.c.h.bf16 %v2693_v33 }
 0x128   : > { %v2245_v20 = vpop.eup %2244 }
 0x129   : > { %v942_v3 = vmul.f32 0.5, %v2245_v20 }
 0x12a   : > { %v2247_v23 = vpop.eup %2246 }
 0x12b   : > { %v945_v27 = vadd.f32 0.5, %v942_v3  ;;  %v943_v29 = vmul.f32 0.5, %v2247_v23  ;;  %v2249_v31 = vpop.eup %2248 }
 0x12c   : > { %v2251_v36 = vpop.eup %2250 }
 0x12d   : > { %v946_v30 = vadd.f32 0.5, %v943_v29  ;;  %v950_v6 = vmul.f32 %v2249_v31, %v945_v27  ;;  %v944_v7 = vmul.f32 0.5, %v2251_v36  ;;  %v960_v29 = vunpack.c.l.bf16 %v2693_v33 }
 0x12f   : > { %v949_v5 = vmul.f32 %v946_v30, %v650_v11  ;;  %v947_v9 = vadd.f32 0.5, %v944_v7 }
 0x131   : > { %v2706_v16 = vadd.f32 %v950_v6, %v949_v5 }
 0x133   : > { %2252 = vtanh.f32 %v2706_v16 }
 0x140   : > { %v2253_v45 = vpop.eup %2252 }
 0x141   : > { %v953_v8 = vmul.f32 %v2253_v45, %v947_v9 }
 0x143   : > { %954 = vst [vmem:[%s2345_s7] sm:$0xff] %v953_v8  ;;  %v962_v10 = vpack.c.bf16 %v953_v8, %v953_v8 }
 0x145   : > { %1188 = vmatmul.mubr.bf16.vlgmr.msra.gmra.mxu0 %v962_v10  ;;  %1229 = vmatmul.mubr.bf16.vlgmr.msra.gmra.mxu1 %v962_v10 }
 0x146   : > { %1462 = vmatpush1.bf16.msra.mxu0 %v2465_v37  ;;  %1503 = vmatpush1.bf16.msra.mxu1 %v2470_v38 }
 0x147   : > { %1463 = vmatprep.subr.bf16.mxu0 %v2475_v39  ;;  %1504 = vmatprep.subr.bf16.mxu1 %v2482_v40 }
 0x148   : > { %1493 = vmatprep.mubr.bf16.mxu0 %v2818_v22  ;;  %1534 = vmatprep.mubr.bf16.mxu1 %v2818_v22 }
 0x14a   : > { %1464 = vmatpush1.bf16.msra.mxu0 %v2487_v41  ;;  %1505 = vmatpush1.bf16.msra.mxu1 %v2494_v42 }
 0x14b   : > { %1465 = vmatprep.subr.bf16.mxu0 %v2501_v43  ;;  %1506 = vmatprep.subr.bf16.mxu1 %v2506_v44 }
 0x14e   : > { %1466 = vmatpush1.bf16.msra.mxu0 %v2516_v46  ;;  %1507 = vmatpush1.bf16.msra.mxu1 %v2521_v47 }
 0x14f   : > { %1467 = vmatprep.subr.bf16.mxu0 %v2528_v48  ;;  %1508 = vmatprep.subr.bf16.mxu1 %v2533_v49 }
 0x152   : > { %1468 = vmatpush1.bf16.msra.mxu0 %v2540_v50  ;;  %1509 = vmatpush1.bf16.msra.mxu1 %v2545_v51 }
 0x153   : > { %1469 = vmatprep.subr.bf16.mxu0 %v2552_v52  ;;  %1510 = vmatprep.subr.bf16.mxu1 %v2557_v53 }
 0x156   : > { %1470 = vmatpush1.bf16.msra.mxu0 %v2566_v54  ;;  %1511 = vmatpush1.bf16.msra.mxu1 %v2571_v55 }
 0x157   : > { %1471 = vmatprep.subr.bf16.mxu0 %v2578_v56  ;;  %1512 = vmatprep.subr.bf16.mxu1 %v2583_v57 }
 0x15a   : > { %1472 = vmatpush1.bf16.msra.mxu0 %v2590_v58  ;;  %1513 = vmatpush1.bf16.msra.mxu1 %v2595_v59 }
 0x15b   : > { %1473 = vmatprep.subr.bf16.mxu0 %v2602_v60  ;;  %1514 = vmatprep.subr.bf16.mxu1 %v2607_v61 }
 0x15e   : > { %1474 = vmatpush1.bf16.msra.mxu0 %v2614_v62  ;;  %1515 = vmatpush1.bf16.msra.mxu1 %v2619_v63 }
 0x15f   : > { %1475 = vmatprep.subr.bf16.mxu0 %v2626_v0  ;;  %1516 = vmatprep.subr.bf16.mxu1 %v2631_v1 }
 0x162   : > { %1476 = vmatpush1.bf16.msra.mxu0 %v2638_v2  ;;  %1517 = vmatpush1.bf16.msra.mxu1 %v2643_v4 }
 0x163   : > { %1767 = vmatprep.subr.bf16.mxu0 %v2454_v34  ;;  %1808 = vmatprep.subr.bf16.mxu1 %v2459_v35 }
 0x205   : > { %v1189_v12 = vpop.f32.mrf.mxu0  ;;  %v1230_v21 = vpop.f32.mrf.mxu1 }
 0x206   : > { %v1237_v24 = vadd.f32 %v1189_v12, %v958_v26  ;;  %v1239_v11 = vadd.f32 %v1230_v21, %v960_v29 }
 0x207   : > { %v1191_v17 = vpop.f32.mrf.mxu0  ;;  %v1232_v14 = vpop.f32.mrf.mxu1 }
 0x208   : > { %v1241_v15 = vmul.f32 0.5, %v1237_v24  ;;  %v1238_v18 = vadd.f32 %v1191_v17, %v959_v13  ;;  %v1240_v34 = vadd.f32 %v1232_v14, %v961_v19  ;;  %v1243_v30 = vmul.f32 0.5, %v1239_v11 }
 0x209   : > { %v1193_v20 = vpop.f32.mrf.mxu0  ;;  %v1234_v3 = vpop.f32.mrf.mxu1 }
 0x20a   : > { %2254 = vtanh.f32 %v1241_v15  ;;  %v1242_v23 = vmul.f32 0.5, %v1238_v18  ;;  %v1570_v20 = vunpack.c.l.bf16 %v2699_v25 }
 0x20b   : > { %v1194_v27 = vpop.f32.mrf.mxu0  ;;  %v1235_v35 = vpop.f32.mrf.mxu1 }
 0x20c   : > { %2256 = vtanh.f32 %v1242_v23  ;;  %v1571_v27 = vunpack.c.h.bf16 %v2699_v25 }
 0x20d   : > { %2258 = vtanh.f32 %v1240_v34 }
 0x20e   : > { %2260 = vtanh.f32 %v1243_v30 }
 0x217   : > { %v2255_v32 = vpop.eup %2254 }
 0x218   : > { %v1247_v31 = vmul.f32 0.5, %v2255_v32  ;;  %v1573_v32 = vunpack.c.h.bf16 %v2701_v28 }
 0x219   : > { %v2257_v5 = vpop.eup %2256 }
 0x21a   : > { %v1250_v6 = vadd.f32 0.5, %v1247_v31  ;;  %v1248_v36 = vmul.f32 0.5, %v2257_v5  ;;  %v2259_v7 = vpop.eup %2258 }
 0x21b   : > { %v2261_v26 = vpop.eup %2260 }
 0x21c   : > { %v1251_v9 = vadd.f32 0.5, %v1248_v36  ;;  %v1255_v45 = vmul.f32 %v2259_v7, %v1250_v6  ;;  %v1249_v33 = vmul.f32 0.5, %v2261_v26 }
 0x21e   : > { %v1254_v8 = vmul.f32 %v1251_v9, %v2706_v16  ;;  %v1252_v12 = vadd.f32 0.5, %v1249_v33 }
 0x220   : > { %v2749_v10 = vadd.f32 %v1255_v45, %v1254_v8  ;;  %v1572_v45 = vunpack.c.l.bf16 %v2701_v28 }
 0x222   : > { %2262 = vtanh.f32 %v2749_v10 }
 0x22f   : > { %v2263_v21 = vpop.eup %2262 }
 0x230   : > { %v1258_v24 = vmul.f32 %v2263_v21, %v1252_v12 }
 0x232   : > { %2059 = vst [vmem:[%s2345_s7 + $0x8] sm:$0xff] %v1258_v24  ;;  %v1268_v13 = vpack.c.bf16 %v1258_v24, %v1258_v24 }
 0x234   : > { %1494 = vmatmul.mubr.bf16.vlgmr.msra.gmra.mxu0 %v1268_v13  ;;  %1535 = vmatmul.mubr.bf16.vlgmr.msra.gmra.mxu1 %v1268_v13 }
 0x235   : > { %1768 = vmatpush1.bf16.msra.mxu0 %v2465_v37  ;;  %1809 = vmatpush1.bf16.msra.mxu1 %v2470_v38  ;;  %v2819_v37 = vld [vmem:[#allocation3_spill] sm:$0xff] }
 0x236   : > { %1769 = vmatprep.subr.bf16.mxu0 %v2475_v39  ;;  %1810 = vmatprep.subr.bf16.mxu1 %v2482_v40  ;;  %v1264_v38 = vunpack.c.l.bf16 %v2819_v37 }
 0x237   : > { %1799 = vmatprep.mubr.bf16.mxu0 %v2818_v22  ;;  %1840 = vmatprep.mubr.bf16.mxu1 %v2818_v22 }
 0x239   : > { %1770 = vmatpush1.bf16.msra.mxu0 %v2487_v41  ;;  %1811 = vmatpush1.bf16.msra.mxu1 %v2494_v42  ;;  %v1265_v42 = vunpack.c.h.bf16 %v2819_v37 }
 0x23a   : > { %1771 = vmatprep.subr.bf16.mxu0 %v2501_v43  ;;  %1812 = vmatprep.subr.bf16.mxu1 %v2506_v44 }
 0x23d   : > { %1772 = vmatpush1.bf16.msra.mxu0 %v2516_v46  ;;  %1813 = vmatpush1.bf16.msra.mxu1 %v2521_v47 }
 0x23e   : > { %1773 = vmatprep.subr.bf16.mxu0 %v2528_v48  ;;  %1814 = vmatprep.subr.bf16.mxu1 %v2533_v49  ;;  %v2820_v48 = vld [vmem:[#allocation4_spill] sm:$0xff] }
 0x23f   : > { %v1267_v49 = vunpack.c.h.bf16 %v2820_v48 }
 0x241   : > { %1774 = vmatpush1.bf16.msra.mxu0 %v2540_v50  ;;  %1815 = vmatpush1.bf16.msra.mxu1 %v2545_v51 }
 0x242   : > { %1775 = vmatprep.subr.bf16.mxu0 %v2552_v52  ;;  %1816 = vmatprep.subr.bf16.mxu1 %v2557_v53 }
 0x245   : > { %1776 = vmatpush1.bf16.msra.mxu0 %v2566_v54  ;;  %1817 = vmatpush1.bf16.msra.mxu1 %v2571_v55 }
 0x246   : > { %1777 = vmatprep.subr.bf16.mxu0 %v2578_v56  ;;  %1818 = vmatprep.subr.bf16.mxu1 %v2583_v57  ;;  %v1266_v56 = vunpack.c.l.bf16 %v2820_v48 }
 0x249   : > { %1778 = vmatpush1.bf16.msra.mxu0 %v2590_v58  ;;  %1819 = vmatpush1.bf16.msra.mxu1 %v2595_v59 }
 0x24a   : > { %1779 = vmatprep.subr.bf16.mxu0 %v2602_v60  ;;  %1820 = vmatprep.subr.bf16.mxu1 %v2607_v61 }
 0x24d   : > { %1780 = vmatpush1.bf16.msra.mxu0 %v2614_v62  ;;  %1821 = vmatpush1.bf16.msra.mxu1 %v2619_v63 }
 0x24e   : > { %1781 = vmatprep.subr.bf16.mxu0 %v2626_v0  ;;  %1822 = vmatprep.subr.bf16.mxu1 %v2631_v1 }
 0x251   : > { %1782 = vmatpush1.bf16.msra.mxu0 %v2638_v2  ;;  %1823 = vmatpush1.bf16.msra.mxu1 %v2643_v4 }
 0x2f4   : > { %v1495_v39 = vpop.f32.mrf.mxu0  ;;  %v1536_v40 = vpop.f32.mrf.mxu1 }
 0x2f5   : > { %v1543_v41 = vadd.f32 %v1495_v39, %v1264_v38  ;;  %v1545_v57 = vadd.f32 %v1536_v40, %v1266_v56 }
 0x2f6   : > { %v1497_v43 = vpop.f32.mrf.mxu0  ;;  %v1538_v44 = vpop.f32.mrf.mxu1 }
 0x2f7   : > { %v1547_v46 = vmul.f32 0.5, %v1543_v41  ;;  %v1544_v47 = vadd.f32 %v1497_v43, %v1265_v42  ;;  %v1546_v53 = vadd.f32 %v1538_v44, %v1267_v49  ;;  %v1549_v58 = vmul.f32 0.5, %v1545_v57 }
 0x2f8   : > { %v1499_v50 = vpop.f32.mrf.mxu0  ;;  %v1540_v51 = vpop.f32.mrf.mxu1 }
 0x2f9   : > { %2264 = vtanh.f32 %v1547_v46  ;;  %v1548_v52 = vmul.f32 0.5, %v1544_v47 }
 0x2fa   : > { %v1500_v54 = vpop.f32.mrf.mxu0  ;;  %v1541_v55 = vpop.f32.mrf.mxu1 }
 0x2fb   : > { %2266 = vtanh.f32 %v1548_v52 }
 0x2fc   : > { %2268 = vtanh.f32 %v1546_v53 }
 0x2fd   : > { %2270 = vtanh.f32 %v1549_v58 }
 0x306   : > { %v2265_v59 = vpop.eup %2264 }
 0x307   : > { %v1553_v60 = vmul.f32 0.5, %v2265_v59 }
 0x308   : > { %v2267_v61 = vpop.eup %2266 }
 0x309   : > { %v1556_v62 = vadd.f32 0.5, %v1553_v60  ;;  %v1554_v63 = vmul.f32 0.5, %v2267_v61  ;;  %v2269_v0 = vpop.eup %2268 }
 0x30a   : > { %v2271_v22 = vpop.eup %2270 }
 0x30b   : > { %v1557_v1 = vadd.f32 0.5, %v1554_v63  ;;  %v1561_v2 = vmul.f32 %v2269_v0, %v1556_v62  ;;  %v1555_v17 = vmul.f32 0.5, %v2271_v22 }
 0x30d   : > { %v1560_v4 = vmul.f32 %v1557_v1, %v2749_v10  ;;  %v1558_v14 = vadd.f32 0.5, %v1555_v17 }
 0x30f   : > { %v1562_v16 = vadd.f32 %v1561_v2, %v1560_v4 }
 0x311   : > { %2272 = vtanh.f32 %v1562_v16 }
 0x31e   : > { %v2273_v15 = vpop.eup %2272 }
 0x31f   : > { %v1564_v18 = vmul.f32 %v2273_v15, %v1558_v14 }
 0x321   : > { %2092 = vst [vmem:[%s2345_s7 + $0x10] sm:$0xff] %v1564_v18  ;;  %v1574_v19 = vpack.c.bf16 %v1564_v18, %v1564_v18 }
 0x323   : > { %1800 = vmatmul.mubr.bf16.vlgmr.msra.gmra.mxu0 %v1574_v19  ;;  %1841 = vmatmul.mubr.bf16.vlgmr.msra.gmra.mxu1 %v1574_v19 }
 0x3e3   : > { %v1801_v3 = vpop.f32.mrf.mxu0  ;;  %v1842_v23 = vpop.f32.mrf.mxu1 }
 0x3e4   : > { %v1849_v34 = vadd.f32 %v1801_v3, %v1570_v20  ;;  %v1851_v8 = vadd.f32 %v1842_v23, %v1572_v45 }
 0x3e5   : > { %v1803_v35 = vpop.f32.mrf.mxu0  ;;  %v1844_v29 = vpop.f32.mrf.mxu1 }
 0x3e6   : > { %v1853_v11 = vmul.f32 0.5, %v1849_v34  ;;  %v1850_v30 = vadd.f32 %v1803_v35, %v1571_v27  ;;  %v1852_v36 = vadd.f32 %v1844_v29, %v1573_v32  ;;  %v1855_v10 = vmul.f32 0.5, %v1851_v8 }
 0x3e7   : > { %v1805_v31 = vpop.f32.mrf.mxu0  ;;  %v1846_v5 = vpop.f32.mrf.mxu1 }
 0x3e8   : > { %2274 = vtanh.f32 %v1853_v11  ;;  %v1854_v6 = vmul.f32 0.5, %v1850_v30 }
 0x3e9   : > { %v1806_v7 = vpop.f32.mrf.mxu0  ;;  %v1847_v9 = vpop.f32.mrf.mxu1 }
 0x3ea   : > { %2276 = vtanh.f32 %v1854_v6 }
 0x3eb   : > { %2278 = vtanh.f32 %v1852_v36 }
 0x3ec   : > { %2280 = vtanh.f32 %v1855_v10 }
 0x3f5   : > { %v2275_v25 = vpop.eup %2274 }
 0x3f6   : > { %v1859_v26 = vmul.f32 0.5, %v2275_v25 }
 0x3f7   : > { %v2277_v33 = vpop.eup %2276 }
 0x3f8   : > { %v1862_v12 = vadd.f32 0.5, %v1859_v26  ;;  %v1860_v21 = vmul.f32 0.5, %v2277_v33  ;;  %v2279_v24 = vpop.eup %2278 }
 0x3f9   : > { %v2281_v28 = vpop.eup %2280 }
 0x3fa   : > { %v1863_v13 = vadd.f32 0.5, %v1860_v21  ;;  %v1867_v37 = vmul.f32 %v2279_v24, %v1862_v12  ;;  %v1861_v40 = vmul.f32 0.5, %v2281_v28 }
 0x3fc   : > { %v1866_v38 = vmul.f32 %v1863_v13, %v1562_v16  ;;  %v1864_v41 = vadd.f32 0.5, %v1861_v40 }
 0x3fe   : > { %v1868_v39 = vadd.f32 %v1867_v37, %v1866_v38 }
 0x400   : > { %2282 = vtanh.f32 %v1868_v39  ;;  %1874 = vst [vmem:[%s2811_s6] sm:$0xff] %v1868_v39 }
 0x40d   : > { %v2283_v42 = vpop.eup %2282 }
 0x40e   : > { %v1870_v43 = vmul.f32 %v2283_v42, %v1864_v41 }
 0x410   : > { %2125 = vst [vmem:[%s2345_s7 + $0x18] sm:$0xff] %v1870_v43  ;;  %1873 = vst [vmem:[%s2810_s5] sm:$0xff] %v1870_v43 }
 0x411 PF: > { %s17_s21 = sadd.s32 1, %s2290_s21  }
 0x412   : > { %p14_p5 = scmp.ge.s32.totalorder %s17_s21, 4  }
 0x414   :  { %16 = sbr.rel (!%p14_p5) target bundleno = 1 (0x1), region = 92 }

</bundles_post_ra>
